<compile_context>
chip_gen: v7x
topology: tpu7x:2x2x1
jax: 0.10.0
libtpu: 0.0.40
codegen_flags: <defaults>
</compile_context>

<pallas_src>
import math
from functools import partial

import jax
import jax.numpy as jnp
from jax.experimental import pallas as pl
from jax.experimental.pallas import tpu as pltpu

EPS = 1e-6


def _vmem_limit_bytes():
    """Scoped-VMEM budget derived from the actual chip (fallback: 64 MiB part)."""
    try:
        cap = int(pltpu.get_tpu_info().vmem_capacity_bytes)
    except Exception:
        cap = 64 * 1024 * 1024
    return int(min(cap * 3 // 4, 100 * 1024 * 1024))


VMEM_LIMIT = _vmem_limit_bytes()


def _round_up(x, m):
    return ((x + m - 1) // m) * m


def _pick_tile(size, target, align):
    """Return (tile, padded_size): tile <= target, multiple of `align`.

    Prefers a divisor of the (align-rounded) size; if only tiny divisors
    exist, pads the dimension up to a multiple of `target` instead, so the
    kernel always gets dense, pipelined blocks (never a full-dim fallback).
    """
    min_tile = max(align, target // 4)
    padded = _round_up(size, align)
    if padded <= target:
        return padded, padded
    for t in range(target, align - 1, -align):
        if padded % t == 0:
            if t >= min_tile:
                return t, padded
            break
    return target, _round_up(size, target)


# ---------------------------------------------------------------------------
# Kernel 1: tiled dense matmul + bias  (A @ W + b), bf16 operands, f32 acc
# ---------------------------------------------------------------------------
def _matmul_bias_kernel(a_ref, w_ref, b_ref, o_ref, acc_ref):
    @pl.when(pl.program_id(2) == 0)
    def _():
        acc_ref[...] = jnp.zeros_like(acc_ref)

    acc_ref[...] += jnp.dot(a_ref[...], w_ref[...],
                            preferred_element_type=jnp.float32)

    @pl.when(pl.program_id(2) == pl.num_programs(2) - 1)
    def _():
        o_ref[...] = (acc_ref[...] + b_ref[...]).astype(o_ref.dtype)


def matmul_bias(a, w, b, out_dtype=jnp.float32):
    """a: (M, K), w: (K, N), b: (N,) -> (M, N). Pads M/K/N as needed."""
    M, K = a.shape
    N = w.shape[1]
    tm, Mp = _pick_tile(M, 512, 8)
    tk, Kp = _pick_tile(K, 512, 128)
    tn, Npad = _pick_tile(N, 512, 128)

    a = a.astype(jnp.bfloat16)
    w = w.astype(jnp.bfloat16)
    bias = b.reshape(1, N).astype(jnp.float32)
    if (Mp, Kp) != (M, K):
        a = jnp.pad(a, ((0, Mp - M), (0, Kp - K)))
    if (Kp, Npad) != (K, N):
        w = jnp.pad(w, ((0, Kp - K), (0, Npad - N)))
    if Npad != N:
        bias = jnp.pad(bias, ((0, 0), (0, Npad - N)))

    out_bytes = jnp.dtype(out_dtype).itemsize
    cost = pl.CostEstimate(flops=2 * Mp * Npad * Kp, transcendentals=0,
                           bytes_accessed=Mp * Kp * 2 + Kp * Npad * 2
                           + Mp * Npad * out_bytes)
    out = pl.pallas_call(
        _matmul_bias_kernel,
        out_shape=jax.ShapeDtypeStruct((Mp, Npad), out_dtype),
        grid=(Mp // tm, Npad // tn, Kp // tk),
        in_specs=[pl.BlockSpec((tm, tk), lambda i, j, k: (i, k)),
                  pl.BlockSpec((tk, tn), lambda i, j, k: (k, j)),
                  pl.BlockSpec((1, tn), lambda i, j, k: (0, j))],
        out_specs=pl.BlockSpec((tm, tn), lambda i, j, k: (i, j)),
        scratch_shapes=[pltpu.VMEM((tm, tn), jnp.float32)],
        compiler_params=pltpu.CompilerParams(
            dimension_semantics=("parallel", "parallel", "arbitrary"),
            vmem_limit_bytes=VMEM_LIMIT),
        cost_estimate=cost,
    )(a, w, bias)
    if (Mp, Npad) != (M, N):
        out = out[:M, :N]
    return out


# ---------------------------------------------------------------------------
# Kernel 2: fused transformer stage (all blocks of a stage in one pallas_call)
# ---------------------------------------------------------------------------
def _stage_kernel(num_heads, n_valid, res_scale,
                  x_ref, g1_ref, be1_ref,
                  wqkv_ref, bqkv_ref, wo_ref, bo_ref,
                  g2_ref, be2_ref, w1_ref, bm1_ref, w2_ref, bm2_ref,
                  o_ref, acc_ref):
    layer = pl.program_id(1)
    Bt, Np, D = x_ref.shape
    H = num_heads
    dh = D // H
    scale = 1.0 / math.sqrt(dh)

    # Residual stream lives in an f32 VMEM scratch across all layers.
    @pl.when(layer == 0)
    def _():
        acc_ref[...] = x_ref[...].astype(jnp.float32)

    x = acc_ref[...]

    def ln(v, g_ref, b_ref):
        mu = jnp.mean(v, axis=-1, keepdims=True)
        var = jnp.mean(jnp.square(v - mu), axis=-1, keepdims=True)
        return (v - mu) * jax.lax.rsqrt(var + EPS) * g_ref[...] + b_ref[...]

    # ---- multi-head self-attention (fused QKV, batched over batch*heads) ----
    h = ln(x, g1_ref, be1_ref).astype(jnp.bfloat16).reshape(Bt * Np, D)
    qkv = jnp.dot(h, wqkv_ref[...], preferred_element_type=jnp.float32)
    qkv = (qkv + bqkv_ref[...]).astype(jnp.bfloat16).reshape(Bt, Np, 3 * D)

    def split_heads(t):                      # (Bt, Np, D) -> (H*Bt, Np, dh)
        return jnp.concatenate(
            [t[:, :, hh * dh:(hh + 1) * dh] for hh in range(H)], axis=0)

    q = split_heads(qkv[:, :, 0 * D:1 * D])
    k = split_heads(qkv[:, :, 1 * D:2 * D])
    v = split_heads(qkv[:, :, 2 * D:3 * D])

    # key-padding mask (padded token index >= n_valid)
    key_valid = jax.lax.broadcasted_iota(jnp.int32, (1, 1, Np), 2) < n_valid

    s = jnp.einsum('znd,zmd->znm', q, k,
                   preferred_element_type=jnp.float32) * scale
    s = jnp.where(key_valid, s, -1e30)
    s = s - jnp.max(s, axis=-1, keepdims=True)
    p = jnp.exp(s)
    p = p * pl.reciprocal(jnp.sum(p, axis=-1, keepdims=True), approx=False)
    ctx = jnp.einsum('znm,zmd->znd', p.astype(jnp.bfloat16), v,
                     preferred_element_type=jnp.float32)   # (H*Bt, Np, dh)
    # merge heads back to lanes [h*dh : (h+1)*dh]
    ctx = jnp.concatenate(
        [ctx[hh * Bt:(hh + 1) * Bt] for hh in range(H)], axis=-1)   # (Bt, Np, D)
    ctx = ctx.astype(jnp.bfloat16).reshape(Bt * Np, D)
    attn = jnp.dot(ctx, wo_ref[...],
                   preferred_element_type=jnp.float32) + bo_ref[...]
    x = x + res_scale * attn.reshape(Bt, Np, D)

    # ---- MLP ----
    h2 = ln(x, g2_ref, be2_ref).astype(jnp.bfloat16).reshape(Bt * Np, D)
    m = jnp.dot(h2, w1_ref[...], preferred_element_type=jnp.float32) + bm1_ref[...]
    m = jax.nn.gelu(m, approximate=True)
    m = jnp.dot(m.astype(jnp.bfloat16), w2_ref[...],
                preferred_element_type=jnp.float32) + bm2_ref[...]
    x = x + res_scale * m.reshape(Bt, Np, D)

    acc_ref[...] = x

    @pl.when(layer == pl.num_programs(1) - 1)
    def _():
        o_ref[...] = x.astype(o_ref.dtype)


def _pick_batch_tile(B, Np, D, hidden, num_heads, weight_bytes):
    """Largest divisor of B whose full in-kernel live set fits the budget."""
    budget = max(int(VMEM_LIMIT * 0.55) - weight_bytes, 1 << 16)

    def live(bt):
        act = bt * Np * D
        v = act * 4                               # f32 residual scratch
        v += 2 * act * 2 + act * 2                # dbl-buffered bf16 in + out block
        v += bt * Np * 3 * D * (4 + 2)            # qkv f32 + bf16 copy
        v += bt * num_heads * Np * Np * (4 + 2)   # scores f32 + probs bf16
        v += act * (4 + 2)                        # attention context f32 + bf16
        v += bt * Np * hidden * (4 + 2)           # MLP hidden f32 + bf16
        return v

    best = 1
    for bt in range(1, B + 1):
        if B % bt == 0 and live(bt) <= budget:
            best = bt
    # keep >= 2 grid steps along batch so both v7x TensorCores get work
    if B >= 2 and B // best < 2:
        best = max(d for d in range(1, B // 2 + 1) if B % d == 0)
    return best


def fused_stage(x, sp, num_heads, n_valid, residual_scaling):
    """x: (B, Np, D) bf16 (Np padded to mult. of 8) -> (B, Np, D) bf16."""
    B, Np, D = x.shape
    L = sp['wqkv'].shape[0]
    hidden = sp['w1'].shape[2]
    # per-layer bf16 weights, double-buffered across the layer grid axis
    weight_bytes = 2 * 2 * (D * 3 * D + D * D + 2 * D * hidden)
    Bt = _pick_batch_tile(B, Np, D, hidden, num_heads, weight_bytes)

    wmap = lambda b, l: (l, 0, 0)

    def wspec(arr):
        return pl.BlockSpec((None,) + arr.shape[1:], wmap)

    kern = partial(_stage_kernel, num_heads, n_valid, residual_scaling)
    return pl.pallas_call(
        kern,
        out_shape=jax.ShapeDtypeStruct((B, Np, D), jnp.bfloat16),
        grid=(B // Bt, L),
        in_specs=[
            pl.BlockSpec((Bt, Np, D), lambda b, l: (b, 0, 0)),
            wspec(sp['ln1_g']), wspec(sp['ln1_b']),
            wspec(sp['wqkv']), wspec(sp['bqkv']),
            wspec(sp['wo']), wspec(sp['bo']),
            wspec(sp['ln2_g']), wspec(sp['ln2_b']),
            wspec(sp['w1']), wspec(sp['b1']),
            wspec(sp['w2']), wspec(sp['b2']),
        ],
        out_specs=pl.BlockSpec((Bt, Np, D), lambda b, l: (b, 0, 0)),
        scratch_shapes=[pltpu.VMEM((Bt, Np, D), jnp.float32)],
        compiler_params=pltpu.CompilerParams(
            dimension_semantics=("parallel", "arbitrary"),
            vmem_limit_bytes=VMEM_LIMIT),
    )(x.astype(jnp.bfloat16),
      sp['ln1_g'], sp['ln1_b'], sp['wqkv'], sp['bqkv'], sp['wo'], sp['bo'],
      sp['ln2_g'], sp['ln2_b'], sp['w1'], sp['b1'], sp['w2'], sp['b2'])


# ---------------------------------------------------------------------------
# Kernel 3: final LayerNorm + distilled dual head (single fused matmul)
# ---------------------------------------------------------------------------
def _head_kernel(B, C, t_ref, g_ref, b_ref, w_ref, bb_ref, o_ref):
    t = t_ref[...].astype(jnp.float32)                       # (2B, D)
    mu = jnp.mean(t, axis=-1, keepdims=True)
    var = jnp.mean(jnp.square(t - mu), axis=-1, keepdims=True)
    tn = (t - mu) * jax.lax.rsqrt(var + EPS) * g_ref[...] + b_ref[...]
    y = jnp.dot(tn.astype(jnp.bfloat16), w_ref[...],
                preferred_element_type=jnp.float32) + bb_ref[...]   # (2B, 2C)
    o_ref[...] = (0.5 * (y[:B, :C] + y[B:, C:])).astype(o_ref.dtype)


def distilled_head(cls_tokens, hp):
    B, _, D = cls_tokens.shape
    C = hp['w'].shape[1] // 2
    t_stack = jnp.concatenate([cls_tokens[:, 0], cls_tokens[:, 1]], axis=0)  # (2B, D)
    return pl.pallas_call(
        partial(_head_kernel, B, C),
        out_shape=jax.ShapeDtypeStruct((B, C), jnp.float32),
        compiler_params=pltpu.CompilerParams(vmem_limit_bytes=VMEM_LIMIT),
    )(t_stack, hp['norm_g'], hp['norm_b'], hp['w'], hp['b'])


# ---------------------------------------------------------------------------
# Conv layers (im2col / tap extraction in JAX glue, compute in Pallas matmul)
# ---------------------------------------------------------------------------
def patch_embed(x, w_mat, bias, patch, stride):
    """conv_embedding: kernel=patch, stride=stride, padding=0.

    x: (B, C, H, W) image.  Returns channels-last tokens (B, Ho*Wo, D) bf16.
    """
    B, C, H, W = x.shape
    D = w_mat.shape[1]
    Ho = (H - patch) // stride + 1
    Wo = (W - patch) // stride + 1
    x = x.astype(jnp.bfloat16)
    if stride == patch:                                      # non-overlapping
        cols = x.reshape(B, C, Ho, patch, Wo, patch)
        cols = cols.transpose(0, 2, 4, 1, 3, 5).reshape(B * Ho * Wo,
                                                        C * patch * patch)
    else:                                                    # overlapping
        taps = []
        for ki in range(patch):
            for kj in range(patch):
                taps.append(x[:, :, ki:ki + stride * Ho:stride,
                              kj:kj + stride * Wo:stride])
        cols = jnp.stack(taps, axis=2)                       # (B, C, p*p, Ho, Wo)
        cols = cols.transpose(0, 3, 4, 1, 2).reshape(B * Ho * Wo,
                                                     C * patch * patch)
    y = matmul_bias(cols, w_mat, bias, out_dtype=jnp.bfloat16)
    return y.reshape(B, Ho * Wo, D)


def pool_conv(tokens, H, W, w_dense, bias, stride=2):
    """conv_head_pooling conv (groups=C_in, kernel=stride+1, pad=stride//2).

    tokens: (B, H*W, C) channels-last.  The grouped conv is expressed as a
    matmul against a zero-expanded (k*k*C, O) weight (built once at prepare
    time) so the channel replication never goes through HBM.
    Returns ((B, Ho*Wo, O) bf16, Ho, Wo).
    """
    B, HW, C = tokens.shape
    O = w_dense.shape[1]
    k = stride + 1
    pad = stride // 2
    Ho = (H + 2 * pad - k) // stride + 1
    Wo = (W + 2 * pad - k) // stride + 1
    x = tokens.reshape(B, H, W, C).astype(jnp.bfloat16)
    xp = jnp.pad(x, ((0, 0), (pad, pad), (pad, pad), (0, 0)))
    taps = []
    for ki in range(k):
        for kj in range(k):
            taps.append(xp[:, ki:ki + stride * Ho:stride,
                           kj:kj + stride * Wo:stride, :])   # (B, Ho, Wo, C)
    cols = jnp.stack(taps, axis=3)                           # (B, Ho, Wo, kk, C)
    cols = cols.reshape(B * Ho * Wo, k * k * C)
    y = matmul_bias(cols, w_dense, bias, out_dtype=jnp.bfloat16)
    return y.reshape(B, Ho * Wo, O), Ho, Wo


def transformer_stage(tokens, cls, stage_params, num_heads, residual_scaling):
    B, HW, D = tokens.shape
    T = cls.shape[1]
    n_valid = T + HW
    seq = jnp.concatenate([cls.astype(jnp.bfloat16),
                           tokens.astype(jnp.bfloat16)], axis=1)
    n_pad = _round_up(n_valid, 8)                            # 8-sublane padding
    if n_pad != n_valid:
        seq = jnp.pad(seq, ((0, 0), (0, n_pad - n_valid), (0, 0)))
    seq = fused_stage(seq, stage_params, num_heads, n_valid, residual_scaling)
    return seq[:, T:n_valid], seq[:, :T]


# ---------------------------------------------------------------------------
# Full forward (matches DistilledPoolingTransformer.forward at inference)
# ---------------------------------------------------------------------------
def forward(params, x, cfg):
    rs = cfg.get('residual_scaling', 1.0)
    psz, stride = cfg['patch_size'], cfg['stride']
    B = x.shape[0]
    H = (cfg['img_size'][0] - psz) // stride + 1
    W = (cfg['img_size'][1] - psz) // stride + 1

    tokens = patch_embed(x, params['pe_w'], params['pe_b'], psz, stride)
    tokens = tokens + params['pos_embed']                    # pos_drop p=0 -> identity
    cls = jnp.broadcast_to(params['cls_token'],
                           (B,) + params['cls_token'].shape[1:])

    n_stages = len(cfg['depth'])
    for s in range(n_stages - 1):
        tokens, cls = transformer_stage(tokens, cls, params['stages'][s],
                                        cfg['heads'][s], rs)
        pool = params['pools'][s]
        tokens, H, W = pool_conv(tokens, H, W, pool['w_dense'], pool['conv_b'],
                                 stride=2)
        T, Din = cls.shape[1], cls.shape[2]
        cls = matmul_bias(cls.reshape(B * T, Din), pool['fc_w'], pool['fc_b'],
                          out_dtype=jnp.bfloat16).reshape(B, T, -1)
    tokens, cls = transformer_stage(tokens, cls, params['stages'][-1],
                                    cfg['heads'][-1], rs)
    return distilled_head(cls, params['head'])               # (head + head_dist)/2


# ---------------------------------------------------------------------------
# Deterministic parameter init (synthetic, PyTorch-like layouts) + packing
# ---------------------------------------------------------------------------
def _dense(key, shape, scale=0.02):
    return scale * jax.random.normal(key, shape, dtype=jnp.float32)


def init_block(key, dim, num_heads, mlp_ratio):
    hidden = dim * mlp_ratio
    ks = jax.random.split(key, 4)
    return dict(
        ln1_g=jnp.ones((dim,), jnp.float32), ln1_b=jnp.zeros((dim,), jnp.float32),
        wqkv=_dense(ks[0], (dim, 3 * dim)), bqkv=jnp.zeros((3 * dim,), jnp.float32),
        wo=_dense(ks[1], (dim, dim)), bo=jnp.zeros((dim,), jnp.float32),
        ln2_g=jnp.ones((dim,), jnp.float32), ln2_b=jnp.zeros((dim,), jnp.float32),
        w1=_dense(ks[2], (dim, hidden)), b1=jnp.zeros((hidden,), jnp.float32),
        w2=_dense(ks[3], (hidden, dim)), b2=jnp.zeros((dim,), jnp.float32),
    )


def init_params(key, cfg):
    base_dims, heads, depth = cfg['base_dims'], cfg['heads'], cfg['depth']
    dims = [b * h for b, h in zip(base_dims, heads)]
    p, stride = cfg['patch_size'], cfg['stride']
    H = (cfg['img_size'][0] - p) // stride + 1
    W = (cfg['img_size'][1] - p) // stride + 1
    keys = jax.random.split(key, 32)
    params = dict(
        pe_w=_dense(keys[0], (dims[0], cfg['in_chans'], p, p)),
        pe_b=jnp.zeros((dims[0],), jnp.float32),
        pos_embed=_dense(keys[1], (1, dims[0], H, W)),
        cls_token=_dense(keys[2], (1, 2, dims[0])),          # distilled: 2 tokens
        stages=[], pools=[],
    )
    kidx = 3
    for s in range(len(depth)):
        blocks = [init_block(jax.random.fold_in(keys[kidx], d),
                             dims[s], heads[s], cfg['mlp_ratio'])
                  for d in range(depth[s])]
        params['stages'].append(blocks)
        kidx += 1
        if s < len(depth) - 1:
            kp1, kp2 = jax.random.split(keys[kidx]); kidx += 1
            params['pools'].append(dict(
                conv_w=_dense(kp1, (dims[s + 1], 1, 3, 3)),  # groups = dims[s]
                conv_b=jnp.zeros((dims[s + 1],), jnp.float32),
                fc_w=_dense(kp2, (dims[s], dims[s + 1])),
                fc_b=jnp.zeros((dims[s + 1],), jnp.float32)))
    params['norm_g'] = jnp.ones((dims[-1],), jnp.float32)
    params['norm_b'] = jnp.zeros((dims[-1],), jnp.float32)
    kh1, kh2 = jax.random.split(keys[kidx])
    params['head_w'] = _dense(kh1, (dims[-1], cfg['num_classes']))
    params['head_b'] = jnp.zeros((cfg['num_classes'],), jnp.float32)
    params['dist_w'] = _dense(kh2, (dims[-1], cfg['num_classes']))
    params['dist_b'] = jnp.zeros((cfg['num_classes'],), jnp.float32)
    return params


def _prepare_stage(blocks):
    def stack(key):
        return jnp.stack([blk[key] for blk in blocks], axis=0)

    def row(key):
        return stack(key)[:, None, :].astype(jnp.float32)    # (L, 1, X)

    return dict(
        ln1_g=row('ln1_g'), ln1_b=row('ln1_b'),
        wqkv=stack('wqkv').astype(jnp.bfloat16), bqkv=row('bqkv'),
        wo=stack('wo').astype(jnp.bfloat16), bo=row('bo'),
        ln2_g=row('ln2_g'), ln2_b=row('ln2_b'),
        w1=stack('w1').astype(jnp.bfloat16), b1=row('b1'),
        w2=stack('w2').astype(jnp.bfloat16), b2=row('b2'))


def _pool_dense_weight(conv_w, in_feature):
    """Grouped (groups=C_in) conv weight -> zero-expanded (k*k*C, O) matmul weight."""
    O, _, k, _ = conv_w.shape
    C = in_feature
    group_out = O // C
    w_taps = conv_w[:, 0].reshape(O, k * k).T                # (kk, O)
    sel = (jnp.arange(O)[None, :] // group_out ==
           jnp.arange(C)[:, None]).astype(w_taps.dtype)      # (C, O)
    w_dense = w_taps[:, None, :] * sel[None, :, :]           # (kk, C, O)
    return w_dense.reshape(k * k * C, O)


def prepare_params(params, cfg):
    """One-time weight packing: bf16 casts, conv->matmul reshapes, stacking."""
    p = cfg['patch_size']
    dims = [b * h for b, h in zip(cfg['base_dims'], cfg['heads'])]
    D0, C = params['pe_w'].shape[0], params['pe_w'].shape[1]
    prep = dict(
        pe_w=params['pe_w'].reshape(D0, C * p * p).T.astype(jnp.bfloat16),
        pe_b=params['pe_b'].astype(jnp.float32),
        pos_embed=params['pos_embed'].reshape(1, D0, -1)
                  .transpose(0, 2, 1).astype(jnp.bfloat16),  # (1, HW, D0)
        cls_token=params['cls_token'].astype(jnp.float32),
        stages=[_prepare_stage(blks) for blks in params['stages']],
        pools=[],
        head=dict(
            norm_g=params['norm_g'].reshape(1, -1).astype(jnp.float32),
            norm_b=params['norm_b'].reshape(1, -1).astype(jnp.float32),
            w=jnp.concatenate([params['head_w'], params['dist_w']],
                              axis=1).astype(jnp.bfloat16),
            b=jnp.concatenate([params['head_b'], params['dist_b']])
              .reshape(1, -1).astype(jnp.float32)))
    for s, pool in enumerate(params['pools']):
        prep['pools'].append(dict(
            w_dense=_pool_dense_weight(pool['conv_w'], dims[s]).astype(jnp.bfloat16),
            conv_b=pool['conv_b'].astype(jnp.float32),
            fc_w=pool['fc_w'].astype(jnp.bfloat16),
            fc_b=pool['fc_b'].astype(jnp.float32)))
    return prep


if __name__ == "__main__":
    cfg = dict(img_size=(16, 16), patch_size=4, stride=4,
               base_dims=(16, 16), depth=(1, 1), heads=(2, 4),
               mlp_ratio=2, num_classes=8, in_chans=3, residual_scaling=1.0)
    key = jax.random.PRNGKey(0)
    kx, kp = jax.random.split(key)
    x = jax.random.normal(kx, (2, cfg['in_chans'],
                               cfg['img_size'][0], cfg['img_size'][1]),
                          dtype=jnp.float32)
    params = prepare_params(init_params(kp, cfg), cfg)

    out = jax.jit(lambda xx: forward(params, xx, cfg))(x)
    out = jax.block_until_ready(out)
    assert out.shape == (2, cfg['num_classes'])
    assert bool(jnp.all(jnp.isfinite(out)))
    print("KERNEL_OK")
</pallas_src>

<mosaic_0001>
module attributes {stable_mosaic.version = 11 : i64} {
  func.func @_matmul_bias_kernel(%arg0: i32, %arg1: i32, %arg2: i32, %arg3: memref<32x128xbf16, #tpu.memory_space<vmem>>, %arg4: memref<128x128xbf16, #tpu.memory_space<vmem>>, %arg5: memref<1x128xf32, #tpu.memory_space<vmem>>, %arg6: memref<32x128xbf16, #tpu.memory_space<vmem>>, %arg7: memref<32x128xf32, #tpu.memory_space<vmem>>) attributes {dimension_semantics = [#tpu.dimension_semantics<parallel>, #tpu.dimension_semantics<parallel>, #tpu.dimension_semantics<arbitrary>], iteration_bounds = array<i64: 1, 1, 1>, scalar_prefetch = 0 : i64, scratch_operands = 1 : i64, tpu.core_type = #tpu.core_type<tc>, window_params = [{transform_indices = @transform_0, window_bounds = array<i64: 32, 128>}, {transform_indices = @transform_1, window_bounds = array<i64: 128, 128>}, {transform_indices = @transform_2, window_bounds = array<i64: 1, 128>}, {transform_indices = @transform_3, window_bounds = array<i64: 32, 128>}]} {
    %c0_i32 = arith.constant 0 : i32
    %0 = arith.cmpi eq, %arg2, %c0_i32 : i32
    %1 = arith.extui %0 : i1 to i32
    %c0_i32_0 = arith.constant 0 : i32
    %2 = arith.cmpi ne, %1, %c0_i32_0 : i32
    scf.if %2 {
      %cst_10 = arith.constant 0.000000e+00 : f32
      %12 = vector.broadcast %cst_10 : f32 to vector<32x128xf32>
      %c0_11 = arith.constant 0 : index
      %c0_12 = arith.constant 0 : index
      %13 = vector.load %arg7[%c0_11, %c0_12] : memref<32x128xf32, #tpu.memory_space<vmem>>, vector<32x128xf32>
      tpu.vector_store %arg7[%c0_11, %c0_12], %12 {strides = array<i32>} : memref<32x128xf32, #tpu.memory_space<vmem>>, vector<32x128xf32>,
    } else {
    }
    %c0 = arith.constant 0 : index
    %c0_1 = arith.constant 0 : index
    %3 = vector.load %arg7[%c0, %c0_1] : memref<32x128xf32, #tpu.memory_space<vmem>>, vector<32x128xf32>
    %c0_2 = arith.constant 0 : index
    %c0_3 = arith.constant 0 : index
    %4 = vector.load %arg3[%c0_2, %c0_3] : memref<32x128xbf16, #tpu.memory_space<vmem>>, vector<32x128xbf16>
    %c0_4 = arith.constant 0 : index
    %c0_5 = arith.constant 0 : index
    %5 = vector.load %arg4[%c0_4, %c0_5] : memref<128x128xbf16, #tpu.memory_space<vmem>>, vector<128x128xbf16>
    %cst = arith.constant dense<0.000000e+00> : vector<32x128xf32>
    %6 = tpu.matmul %4, %5, %cst {dimension_numbers = #tpu.dot_dimension_numbers<[1], [0], [0], [1], [0, 0, 1, 1], [], []>} : vector<32x128xbf16>, vector<128x128xbf16>, vector<32x128xf32> -> vector<32x128xf32>
    %7 = arith.addf %3, %6 : vector<32x128xf32>
    %c0_6 = arith.constant 0 : index
    %c0_7 = arith.constant 0 : index
    %8 = vector.load %arg7[%c0_6, %c0_7] : memref<32x128xf32, #tpu.memory_space<vmem>>, vector<32x128xf32>
    tpu.vector_store %arg7[%c0_6, %c0_7], %7 {strides = array<i32>} : memref<32x128xf32, #tpu.memory_space<vmem>>, vector<32x128xf32>,
    %c0_i32_8 = arith.constant 0 : i32
    %9 = arith.cmpi eq, %arg2, %c0_i32_8 : i32
    %10 = arith.extui %9 : i1 to i32
    %c0_i32_9 = arith.constant 0 : i32
    %11 = arith.cmpi ne, %10, %c0_i32_9 : i32
    scf.if %11 {
      %c0_10 = arith.constant 0 : index
      %c0_11 = arith.constant 0 : index
      %12 = vector.load %arg7[%c0_10, %c0_11] : memref<32x128xf32, #tpu.memory_space<vmem>>, vector<32x128xf32>
      %c0_12 = arith.constant 0 : index
      %c0_13 = arith.constant 0 : index
      %13 = vector.load %arg5[%c0_12, %c0_13] : memref<1x128xf32, #tpu.memory_space<vmem>>, vector<1x128xf32>
      %14 = vector.broadcast %13 : vector<1x128xf32> to vector<32x128xf32>
      %15 = arith.addf %12, %14 : vector<32x128xf32>
      %16 = arith.truncf %15 : vector<32x128xf32> to vector<32x128xbf16>
      %c0_14 = arith.constant 0 : index
      %c0_15 = arith.constant 0 : index
      %17 = vector.load %arg6[%c0_14, %c0_15] : memref<32x128xbf16, #tpu.memory_space<vmem>>, vector<32x128xbf16>
      tpu.vector_store %arg6[%c0_14, %c0_15], %16 {strides = array<i32>} : memref<32x128xbf16, #tpu.memory_space<vmem>>, vector<32x128xbf16>,
    } else {
    }
    return
  }
  func.func @transform_0(%arg0: i32, %arg1: i32, %arg2: i32) -> (i32, i32) {
    %c0_i32 = arith.constant 0 : i32
    return %arg0, %arg2 : i32, i32
  }
  func.func @transform_1(%arg0: i32, %arg1: i32, %arg2: i32) -> (i32, i32) {
    %c0_i32 = arith.constant 0 : i32
    return %arg2, %arg1 : i32, i32
  }
  func.func @transform_2(%arg0: i32, %arg1: i32, %arg2: i32) -> (i32, i32) {
    %c0_i32 = arith.constant 0 : i32
    %c0_i32_0 = arith.constant 0 : i32
    return %c0_i32, %arg1 : i32, i32
  }
  func.func @transform_3(%arg0: i32, %arg1: i32, %arg2: i32) -> (i32, i32) {
    %c0_i32 = arith.constant 0 : i32
    return %arg0, %arg1 : i32, i32
  }
}

module attributes {stable_mosaic.version = 11 : i64} {
  func.func @_stage_kernel(%arg0: i32, %arg1: i32, %arg2: memref<1x24x32xbf16, #tpu.memory_space<vmem>>, %arg3: memref<1x1x32xf32, #tpu.memory_space<vmem>>, %arg4: memref<1x1x32xf32, #tpu.memory_space<vmem>>, %arg5: memref<1x32x96xbf16, #tpu.memory_space<vmem>>, %arg6: memref<1x1x96xf32, #tpu.memory_space<vmem>>, %arg7: memref<1x32x32xbf16, #tpu.memory_space<vmem>>, %arg8: memref<1x1x32xf32, #tpu.memory_space<vmem>>, %arg9: memref<1x1x32xf32, #tpu.memory_space<vmem>>, %arg10: memref<1x1x32xf32, #tpu.memory_space<vmem>>, %arg11: memref<1x32x64xbf16, #tpu.memory_space<vmem>>, %arg12: memref<1x1x64xf32, #tpu.memory_space<vmem>>, %arg13: memref<1x64x32xbf16, #tpu.memory_space<vmem>>, %arg14: memref<1x1x32xf32, #tpu.memory_space<vmem>>, %arg15: memref<1x24x32xbf16, #tpu.memory_space<vmem>>, %arg16: memref<1x24x32xf32, #tpu.memory_space<vmem>>) attributes {dimension_semantics = [#tpu.dimension_semantics<parallel>, #tpu.dimension_semantics<arbitrary>], iteration_bounds = array<i64: 2, 1>, scalar_prefetch = 0 : i64, scratch_operands = 1 : i64, tpu.core_type = #tpu.core_type<tc>, window_params = [{transform_indices = @transform_0, window_bounds = array<i64: 1, 24, 32>}, {transform_indices = @transform_1, window_bounds = array<i64: 1, 1, 32>}, {transform_indices = @transform_2, window_bounds = array<i64: 1, 1, 32>}, {transform_indices = @transform_3, window_bounds = array<i64: 1, 32, 96>}, {transform_indices = @transform_4, window_bounds = array<i64: 1, 1, 96>}, {transform_indices = @transform_5, window_bounds = array<i64: 1, 32, 32>}, {transform_indices = @transform_6, window_bounds = array<i64: 1, 1, 32>}, {transform_indices = @transform_7, window_bounds = array<i64: 1, 1, 32>}, {transform_indices = @transform_8, window_bounds = array<i64: 1, 1, 32>}, {transform_indices = @transform_9, window_bounds = array<i64: 1, 32, 64>}, {transform_indices = @transform_10, window_bounds = array<i64: 1, 1, 64>}, {transform_indices = @transform_11, window_bounds = array<i64: 1, 64, 32>}, {transform_indices = @transform_12, window_bounds = array<i64: 1, 1, 32>}, {transform_indices = @transform_13, window_bounds = array<i64: 1, 24, 32>}]} {
    %c0_i32 = arith.constant 0 : i32
    %0 = arith.cmpi eq, %arg1, %c0_i32 : i32
    %1 = arith.extui %0 : i1 to i32
    %c0_i32_0 = arith.constant 0 : i32
    %2 = arith.cmpi ne, %1, %c0_i32_0 : i32
    scf.if %2 {
      %c0_69 = arith.constant 0 : index
      %c0_70 = arith.constant 0 : index
      %c0_71 = arith.constant 0 : index
      %159 = vector.load %arg2[%c0_69, %c0_70, %c0_71] : memref<1x24x32xbf16, #tpu.memory_space<vmem>>, vector<1x24x32xbf16>
      %160 = arith.extf %159 : vector<1x24x32xbf16> to vector<1x24x32xf32>
      %c0_72 = arith.constant 0 : index
      %c0_73 = arith.constant 0 : index
      %c0_74 = arith.constant 0 : index
      %161 = vector.load %arg16[%c0_72, %c0_73, %c0_74] : memref<1x24x32xf32, #tpu.memory_space<vmem>>, vector<1x24x32xf32>
      tpu.vector_store %arg16[%c0_72, %c0_73, %c0_74], %160 {strides = array<i32>} : memref<1x24x32xf32, #tpu.memory_space<vmem>>, vector<1x24x32xf32>,
    } else {
    }
    %c0 = arith.constant 0 : index
    %c0_1 = arith.constant 0 : index
    %c0_2 = arith.constant 0 : index
    %3 = vector.load %arg16[%c0, %c0_1, %c0_2] : memref<1x24x32xf32, #tpu.memory_space<vmem>>, vector<1x24x32xf32>
    %cst = arith.constant dense<0.000000e+00> : vector<1x24xf32>
    %4 = vector.multi_reduction <add>, %3, %cst [2] : vector<1x24x32xf32> to vector<1x24xf32>
    %5 = vector.shape_cast %4 : vector<1x24xf32> to vector<1x24x1xf32>
    %cst_3 = arith.constant 3.200000e+01 : f32
    %6 = vector.broadcast %cst_3 : f32 to vector<1x24x1xf32>
    %7 = arith.divf %5, %6 : vector<1x24x1xf32>
    %8 = vector.broadcast %7 : vector<1x24x1xf32> to vector<1x24x32xf32>
    %9 = arith.subf %3, %8 : vector<1x24x32xf32>
    %10 = arith.mulf %9, %9 : vector<1x24x32xf32>
    %cst_4 = arith.constant dense<0.000000e+00> : vector<1x24xf32>
    %11 = vector.multi_reduction <add>, %10, %cst_4 [2] : vector<1x24x32xf32> to vector<1x24xf32>
    %12 = vector.shape_cast %11 : vector<1x24xf32> to vector<1x24x1xf32>
    %cst_5 = arith.constant 3.200000e+01 : f32
    %13 = vector.broadcast %cst_5 : f32 to vector<1x24x1xf32>
    %14 = arith.divf %12, %13 : vector<1x24x1xf32>
    %15 = vector.broadcast %7 : vector<1x24x1xf32> to vector<1x24x32xf32>
    %16 = arith.subf %3, %15 : vector<1x24x32xf32>
    %cst_6 = arith.constant 9.99999997E-7 : f32
    %17 = vector.broadcast %cst_6 : f32 to vector<1x24x1xf32>
    %18 = arith.addf %14, %17 : vector<1x24x1xf32>
    %19 = math.rsqrt %18 : vector<1x24x1xf32>
    %20 = vector.broadcast %19 : vector<1x24x1xf32> to vector<1x24x32xf32>
    %21 = arith.mulf %16, %20 : vector<1x24x32xf32>
    %c0_7 = arith.constant 0 : index
    %c0_8 = arith.constant 0 : index
    %c0_9 = arith.constant 0 : index
    %22 = vector.load %arg3[%c0_7, %c0_8, %c0_9] : memref<1x1x32xf32, #tpu.memory_space<vmem>>, vector<1x1x32xf32>
    %23 = vector.shape_cast %22 : vector<1x1x32xf32> to vector<1x32xf32>
    %24 = vector.shape_cast %23 : vector<1x32xf32> to vector<1x1x32xf32>
    %25 = vector.broadcast %24 : vector<1x1x32xf32> to vector<1x24x32xf32>
    %26 = arith.mulf %21, %25 : vector<1x24x32xf32>
    %c0_10 = arith.constant 0 : index
    %c0_11 = arith.constant 0 : index
    %c0_12 = arith.constant 0 : index
    %27 = vector.load %arg4[%c0_10, %c0_11, %c0_12] : memref<1x1x32xf32, #tpu.memory_space<vmem>>, vector<1x1x32xf32>
    %28 = vector.shape_cast %27 : vector<1x1x32xf32> to vector<1x32xf32>
    %29 = vector.shape_cast %28 : vector<1x32xf32> to vector<1x1x32xf32>
    %30 = vector.broadcast %29 : vector<1x1x32xf32> to vector<1x24x32xf32>
    %31 = arith.addf %26, %30 : vector<1x24x32xf32>
    %32 = arith.truncf %31 : vector<1x24x32xf32> to vector<1x24x32xbf16>
    %33 = vector.shape_cast %32 : vector<1x24x32xbf16> to vector<24x32xbf16>
    %c0_13 = arith.constant 0 : index
    %c0_14 = arith.constant 0 : index
    %c0_15 = arith.constant 0 : index
    %34 = vector.load %arg5[%c0_13, %c0_14, %c0_15] : memref<1x32x96xbf16, #tpu.memory_space<vmem>>, vector<1x32x96xbf16>
    %35 = vector.shape_cast %34 : vector<1x32x96xbf16> to vector<32x96xbf16>
    %cst_16 = arith.constant dense<0.000000e+00> : vector<24x96xf32>
    %36 = tpu.matmul %33, %35, %cst_16 {dimension_numbers = #tpu.dot_dimension_numbers<[1], [0], [0], [1], [0, 0, 1, 1], [], []>} : vector<24x32xbf16>, vector<32x96xbf16>, vector<24x96xf32> -> vector<24x96xf32>
    %c0_17 = arith.constant 0 : index
    %c0_18 = arith.constant 0 : index
    %c0_19 = arith.constant 0 : index
    %37 = vector.load %arg6[%c0_17, %c0_18, %c0_19] : memref<1x1x96xf32, #tpu.memory_space<vmem>>, vector<1x1x96xf32>
    %38 = vector.shape_cast %37 : vector<1x1x96xf32> to vector<1x96xf32>
    %39 = vector.broadcast %38 : vector<1x96xf32> to vector<24x96xf32>
    %40 = arith.addf %36, %39 : vector<24x96xf32>
    %41 = arith.truncf %40 : vector<24x96xf32> to vector<24x96xbf16>
    %42 = vector.shape_cast %41 : vector<24x96xbf16> to vector<1x24x96xbf16>
    %43 = vector.extract_strided_slice %42 {offsets = [0, 0, 0], sizes = [1, 24, 32], strides = [1, 1, 1]} : vector<1x24x96xbf16> to vector<1x24x32xbf16>
    %44 = vector.extract_strided_slice %43 {offsets = [0, 0, 0], sizes = [1, 24, 16], strides = [1, 1, 1]} : vector<1x24x32xbf16> to vector<1x24x16xbf16>
    %45 = vector.extract_strided_slice %43 {offsets = [0, 0, 16], sizes = [1, 24, 16], strides = [1, 1, 1]} : vector<1x24x32xbf16> to vector<1x24x16xbf16>
    %46 = tpu.concatenate %44, %45 in 0 : vector<1x24x16xbf16>, vector<1x24x16xbf16> -> vector<2x24x16xbf16>
    %47 = vector.extract_strided_slice %42 {offsets = [0, 0, 32], sizes = [1, 24, 32], strides = [1, 1, 1]} : vector<1x24x96xbf16> to vector<1x24x32xbf16>
    %48 = vector.extract_strided_slice %47 {offsets = [0, 0, 0], sizes = [1, 24, 16], strides = [1, 1, 1]} : vector<1x24x32xbf16> to vector<1x24x16xbf16>
    %49 = vector.extract_strided_slice %47 {offsets = [0, 0, 16], sizes = [1, 24, 16], strides = [1, 1, 1]} : vector<1x24x32xbf16> to vector<1x24x16xbf16>
    %50 = tpu.concatenate %48, %49 in 0 : vector<1x24x16xbf16>, vector<1x24x16xbf16> -> vector<2x24x16xbf16>
    %51 = vector.extract_strided_slice %42 {offsets = [0, 0, 64], sizes = [1, 24, 32], strides = [1, 1, 1]} : vector<1x24x96xbf16> to vector<1x24x32xbf16>
    %52 = vector.extract_strided_slice %51 {offsets = [0, 0, 0], sizes = [1, 24, 16], strides = [1, 1, 1]} : vector<1x24x32xbf16> to vector<1x24x16xbf16>
    %53 = vector.extract_strided_slice %51 {offsets = [0, 0, 16], sizes = [1, 24, 16], strides = [1, 1, 1]} : vector<1x24x32xbf16> to vector<1x24x16xbf16>
    %54 = tpu.concatenate %52, %53 in 0 : vector<1x24x16xbf16>, vector<1x24x16xbf16> -> vector<2x24x16xbf16>
    %55 = tpu.iota {dimensions = array<i32: 2>} : vector<1x1x24xi32>
    %c18_i32 = arith.constant 18 : i32
    %56 = vector.broadcast %c18_i32 : i32 to vector<1x1x24xi32>
    %57 = arith.cmpi slt, %55, %56 : vector<1x1x24xi32>
    "tpu.trace_start"() <{level = 10 : i32, message = "znd,zmd->znm"}> : () -> ()
    %cst_20 = arith.constant dense<0.000000e+00> : vector<2x24x24xf32>
    %58 = tpu.matmul %46, %50, %cst_20 {dimension_numbers = #tpu.dot_dimension_numbers<[2], [2], [1], [1], [0, 0, 0, 1, 1, 1], [0], [0]>} : vector<2x24x16xbf16>, vector<2x24x16xbf16>, vector<2x24x24xf32> -> vector<2x24x24xf32>
    "tpu.trace_stop"() : () -> ()
    %cst_21 = arith.constant 2.500000e-01 : f32
    %59 = vector.broadcast %cst_21 : f32 to vector<2x24x24xf32>
    %60 = arith.mulf %58, %59 : vector<2x24x24xf32>
    %cst_22 = arith.constant -1.000000e+30 : f32
    %61 = vector.shape_cast %57 : vector<1x1x24xi1> to vector<1x1x24xi1>
    %62 = vector.broadcast %61 : vector<1x1x24xi1> to vector<2x24x24xi1>
    %63 = vector.broadcast %cst_22 : f32 to vector<2x24x24xf32>
    %64 = arith.select %62, %60, %63 : vector<2x24x24xi1>, vector<2x24x24xf32>
    %cst_23 = arith.constant dense<0xFF800000> : vector<2x24xf32>
    %65 = vector.multi_reduction <maximumf>, %64, %cst_23 [2] : vector<2x24x24xf32> to vector<2x24xf32>
    %66 = vector.shape_cast %65 : vector<2x24xf32> to vector<2x24x1xf32>
    %67 = vector.broadcast %66 : vector<2x24x1xf32> to vector<2x24x24xf32>
    %68 = arith.subf %64, %67 : vector<2x24x24xf32>
    %69 = math.exp %68 : vector<2x24x24xf32>
    %cst_24 = arith.constant dense<0.000000e+00> : vector<2x24xf32>
    %70 = vector.multi_reduction <add>, %69, %cst_24 [2] : vector<2x24x24xf32> to vector<2x24xf32>
    %71 = vector.shape_cast %70 : vector<2x24xf32> to vector<2x24x1xf32>
    %72 = tpu.reciprocal %71 : vector<2x24x1xf32> -> vector<2x24x1xf32>
    %73 = vector.broadcast %72 : vector<2x24x1xf32> to vector<2x24x24xf32>
    %74 = arith.mulf %69, %73 : vector<2x24x24xf32>
    %75 = arith.truncf %74 : vector<2x24x24xf32> to vector<2x24x24xbf16>
    "tpu.trace_start"() <{level = 10 : i32, message = "znm,zmd->znd"}> : () -> ()
    %cst_25 = arith.constant dense<0.000000e+00> : vector<2x24x16xf32>
    %76 = tpu.matmul %75, %54, %cst_25 {dimension_numbers = #tpu.dot_dimension_numbers<[2], [1], [1], [2], [0, 0, 0, 1, 1, 2], [0], [0]>} : vector<2x24x24xbf16>, vector<2x24x16xbf16>, vector<2x24x16xf32> -> vector<2x24x16xf32>
    "tpu.trace_stop"() : () -> ()
    %77 = vector.extract_strided_slice %76 {offsets = [0, 0, 0], sizes = [1, 24, 16], strides = [1, 1, 1]} : vector<2x24x16xf32> to vector<1x24x16xf32>
    %78 = vector.extract_strided_slice %76 {offsets = [1, 0, 0], sizes = [1, 24, 16], strides = [1, 1, 1]} : vector<2x24x16xf32> to vector<1x24x16xf32>
    %79 = tpu.concatenate %77, %78 in 2 : vector<1x24x16xf32>, vector<1x24x16xf32> -> vector<1x24x32xf32>
    %80 = arith.truncf %79 : vector<1x24x32xf32> to vector<1x24x32xbf16>
    %81 = vector.shape_cast %80 : vector<1x24x32xbf16> to vector<24x32xbf16>
    %c0_26 = arith.constant 0 : index
    %c0_27 = arith.constant 0 : index
    %c0_28 = arith.constant 0 : index
    %82 = vector.load %arg7[%c0_26, %c0_27, %c0_28] : memref<1x32x32xbf16, #tpu.memory_space<vmem>>, vector<1x32x32xbf16>
    %83 = vector.shape_cast %82 : vector<1x32x32xbf16> to vector<32x32xbf16>
    %cst_29 = arith.constant dense<0.000000e+00> : vector<24x32xf32>
    %84 = tpu.matmul %81, %83, %cst_29 {dimension_numbers = #tpu.dot_dimension_numbers<[1], [0], [0], [1], [0, 0, 1, 1], [], []>} : vector<24x32xbf16>, vector<32x32xbf16>, vector<24x32xf32> -> vector<24x32xf32>
    %c0_30 = arith.constant 0 : index
    %c0_31 = arith.constant 0 : index
    %c0_32 = arith.constant 0 : index
    %85 = vector.load %arg8[%c0_30, %c0_31, %c0_32] : memref<1x1x32xf32, #tpu.memory_space<vmem>>, vector<1x1x32xf32>
    %86 = vector.shape_cast %85 : vector<1x1x32xf32> to vector<1x32xf32>
    %87 = vector.broadcast %86 : vector<1x32xf32> to vector<24x32xf32>
    %88 = arith.addf %84, %87 : vector<24x32xf32>
    %89 = vector.shape_cast %88 : vector<24x32xf32> to vector<1x24x32xf32>
    %cst_33 = arith.constant 1.000000e+00 : f32
    %90 = vector.broadcast %cst_33 : f32 to vector<1x24x32xf32>
    %91 = arith.mulf %90, %89 : vector<1x24x32xf32>
    %92 = arith.addf %3, %91 : vector<1x24x32xf32>
    %cst_34 = arith.constant dense<0.000000e+00> : vector<1x24xf32>
    %93 = vector.multi_reduction <add>, %92, %cst_34 [2] : vector<1x24x32xf32> to vector<1x24xf32>
    %94 = vector.shape_cast %93 : vector<1x24xf32> to vector<1x24x1xf32>
    %cst_35 = arith.constant 3.200000e+01 : f32
    %95 = vector.broadcast %cst_35 : f32 to vector<1x24x1xf32>
    %96 = arith.divf %94, %95 : vector<1x24x1xf32>
    %97 = vector.broadcast %96 : vector<1x24x1xf32> to vector<1x24x32xf32>
    %98 = arith.subf %92, %97 : vector<1x24x32xf32>
    %99 = arith.mulf %98, %98 : vector<1x24x32xf32>
    %cst_36 = arith.constant dense<0.000000e+00> : vector<1x24xf32>
    %100 = vector.multi_reduction <add>, %99, %cst_36 [2] : vector<1x24x32xf32> to vector<1x24xf32>
    %101 = vector.shape_cast %100 : vector<1x24xf32> to vector<1x24x1xf32>
    %cst_37 = arith.constant 3.200000e+01 : f32
    %102 = vector.broadcast %cst_37 : f32 to vector<1x24x1xf32>
    %103 = arith.divf %101, %102 : vector<1x24x1xf32>
    %104 = vector.broadcast %96 : vector<1x24x1xf32> to vector<1x24x32xf32>
    %105 = arith.subf %92, %104 : vector<1x24x32xf32>
    %cst_38 = arith.constant 9.99999997E-7 : f32
    %106 = vector.broadcast %cst_38 : f32 to vector<1x24x1xf32>
    %107 = arith.addf %103, %106 : vector<1x24x1xf32>
    %108 = math.rsqrt %107 : vector<1x24x1xf32>
    %109 = vector.broadcast %108 : vector<1x24x1xf32> to vector<1x24x32xf32>
    %110 = arith.mulf %105, %109 : vector<1x24x32xf32>
    %c0_39 = arith.constant 0 : index
    %c0_40 = arith.constant 0 : index
    %c0_41 = arith.constant 0 : index
    %111 = vector.load %arg9[%c0_39, %c0_40, %c0_41] : memref<1x1x32xf32, #tpu.memory_space<vmem>>, vector<1x1x32xf32>
    %112 = vector.shape_cast %111 : vector<1x1x32xf32> to vector<1x32xf32>
    %113 = vector.shape_cast %112 : vector<1x32xf32> to vector<1x1x32xf32>
    %114 = vector.broadcast %113 : vector<1x1x32xf32> to vector<1x24x32xf32>
    %115 = arith.mulf %110, %114 : vector<1x24x32xf32>
    %c0_42 = arith.constant 0 : index
    %c0_43 = arith.constant 0 : index
    %c0_44 = arith.constant 0 : index
    %116 = vector.load %arg10[%c0_42, %c0_43, %c0_44] : memref<1x1x32xf32, #tpu.memory_space<vmem>>, vector<1x1x32xf32>
    %117 = vector.shape_cast %116 : vector<1x1x32xf32> to vector<1x32xf32>
    %118 = vector.shape_cast %117 : vector<1x32xf32> to vector<1x1x32xf32>
    %119 = vector.broadcast %118 : vector<1x1x32xf32> to vector<1x24x32xf32>
    %120 = arith.addf %115, %119 : vector<1x24x32xf32>
    %121 = arith.truncf %120 : vector<1x24x32xf32> to vector<1x24x32xbf16>
    %122 = vector.shape_cast %121 : vector<1x24x32xbf16> to vector<24x32xbf16>
    %c0_45 = arith.constant 0 : index
    %c0_46 = arith.constant 0 : index
    %c0_47 = arith.constant 0 : index
    %123 = vector.load %arg11[%c0_45, %c0_46, %c0_47] : memref<1x32x64xbf16, #tpu.memory_space<vmem>>, vector<1x32x64xbf16>
    %124 = vector.shape_cast %123 : vector<1x32x64xbf16> to vector<32x64xbf16>
    %cst_48 = arith.constant dense<0.000000e+00> : vector<24x64xf32>
    %125 = tpu.matmul %122, %124, %cst_48 {dimension_numbers = #tpu.dot_dimension_numbers<[1], [0], [0], [1], [0, 0, 1, 1], [], []>} : vector<24x32xbf16>, vector<32x64xbf16>, vector<24x64xf32> -> vector<24x64xf32>
    %c0_49 = arith.constant 0 : index
    %c0_50 = arith.constant 0 : index
    %c0_51 = arith.constant 0 : index
    %126 = vector.load %arg12[%c0_49, %c0_50, %c0_51] : memref<1x1x64xf32, #tpu.memory_space<vmem>>, vector<1x1x64xf32>
    %127 = vector.shape_cast %126 : vector<1x1x64xf32> to vector<1x64xf32>
    %128 = vector.broadcast %127 : vector<1x64xf32> to vector<24x64xf32>
    %129 = arith.addf %125, %128 : vector<24x64xf32>
    %130 = arith.mulf %129, %129 : vector<24x64xf32>
    %131 = arith.mulf %129, %130 : vector<24x64xf32>
    %cst_52 = arith.constant 4.471500e-02 : f32
    %132 = vector.broadcast %cst_52 : f32 to vector<24x64xf32>
    %133 = arith.mulf %132, %131 : vector<24x64xf32>
    %134 = arith.addf %129, %133 : vector<24x64xf32>
    %cst_53 = arith.constant 0.797884583 : f32
    %135 = vector.broadcast %cst_53 : f32 to vector<24x64xf32>
    %136 = arith.mulf %135, %134 : vector<24x64xf32>
    %137 = math.tanh %136 : vector<24x64xf32>
    %cst_54 = arith.constant 1.000000e+00 : f32
    %138 = vector.broadcast %cst_54 : f32 to vector<24x64xf32>
    %139 = arith.addf %138, %137 : vector<24x64xf32>
    %cst_55 = arith.constant 5.000000e-01 : f32
    %140 = vector.broadcast %cst_55 : f32 to vector<24x64xf32>
    %141 = arith.mulf %140, %139 : vector<24x64xf32>
    %142 = arith.mulf %129, %141 : vector<24x64xf32>
    %143 = arith.truncf %142 : vector<24x64xf32> to vector<24x64xbf16>
    %c0_56 = arith.constant 0 : index
    %c0_57 = arith.constant 0 : index
    %c0_58 = arith.constant 0 : index
    %144 = vector.load %arg13[%c0_56, %c0_57, %c0_58] : memref<1x64x32xbf16, #tpu.memory_space<vmem>>, vector<1x64x32xbf16>
    %145 = vector.shape_cast %144 : vector<1x64x32xbf16> to vector<64x32xbf16>
    %cst_59 = arith.constant dense<0.000000e+00> : vector<24x32xf32>
    %146 = tpu.matmul %143, %145, %cst_59 {dimension_numbers = #tpu.dot_dimension_numbers<[1], [0], [0], [1], [0, 0, 1, 1], [], []>} : vector<24x64xbf16>, vector<64x32xbf16>, vector<24x32xf32> -> vector<24x32xf32>
    %c0_60 = arith.constant 0 : index
    %c0_61 = arith.constant 0 : index
    %c0_62 = arith.constant 0 : index
    %147 = vector.load %arg14[%c0_60, %c0_61, %c0_62] : memref<1x1x32xf32, #tpu.memory_space<vmem>>, vector<1x1x32xf32>
    %148 = vector.shape_cast %147 : vector<1x1x32xf32> to vector<1x32xf32>
    %149 = vector.broadcast %148 : vector<1x32xf32> to vector<24x32xf32>
    %150 = arith.addf %146, %149 : vector<24x32xf32>
    %151 = vector.shape_cast %150 : vector<24x32xf32> to vector<1x24x32xf32>
    %cst_63 = arith.constant 1.000000e+00 : f32
    %152 = vector.broadcast %cst_63 : f32 to vector<1x24x32xf32>
    %153 = arith.mulf %152, %151 : vector<1x24x32xf32>
    %154 = arith.addf %92, %153 : vector<1x24x32xf32>
    %c0_64 = arith.constant 0 : index
    %c0_65 = arith.constant 0 : index
    %c0_66 = arith.constant 0 : index
    %155 = vector.load %arg16[%c0_64, %c0_65, %c0_66] : memref<1x24x32xf32, #tpu.memory_space<vmem>>, vector<1x24x32xf32>
    tpu.vector_store %arg16[%c0_64, %c0_65, %c0_66], %154 {strides = array<i32>} : memref<1x24x32xf32, #tpu.memory_space<vmem>>, vector<1x24x32xf32>,
    %c0_i32_67 = arith.constant 0 : i32
    %156 = arith.cmpi eq, %arg1, %c0_i32_67 : i32
    %157 = arith.extui %156 : i1 to i32
    %c0_i32_68 = arith.constant 0 : i32
    %158 = arith.cmpi ne, %157, %c0_i32_68 : i32
    scf.if %158 {
      %159 = arith.truncf %154 : vector<1x24x32xf32> to vector<1x24x32xbf16>
      %c0_69 = arith.constant 0 : index
      %c0_70 = arith.constant 0 : index
      %c0_71 = arith.constant 0 : index
      %160 = vector.load %arg15[%c0_69, %c0_70, %c0_71] : memref<1x24x32xbf16, #tpu.memory_space<vmem>>, vector<1x24x32xbf16>
      tpu.vector_store %arg15[%c0_69, %c0_70, %c0_71], %159 {strides = array<i32>} : memref<1x24x32xbf16, #tpu.memory_space<vmem>>, vector<1x24x32xbf16>,
    } else {
    }
    return
  }
  func.func @transform_0(%arg0: i32, %arg1: i32) -> (i32, i32, i32) {
    %c0_i32 = arith.constant 0 : i32
    %c0_i32_0 = arith.constant 0 : i32
    %c0_i32_1 = arith.constant 0 : i32
    return %arg0, %c0_i32, %c0_i32_0 : i32, i32, i32
  }
  func.func @transform_1(%arg0: i32, %arg1: i32) -> (i32, i32, i32) {
    %c0_i32 = arith.constant 0 : i32
    %c0_i32_0 = arith.constant 0 : i32
    %c0_i32_1 = arith.constant 0 : i32
    return %arg1, %c0_i32, %c0_i32_0 : i32, i32, i32
  }
  func.func @transform_2(%arg0: i32, %arg1: i32) -> (i32, i32, i32) {
    %c0_i32 = arith.constant 0 : i32
    %c0_i32_0 = arith.constant 0 : i32
    %c0_i32_1 = arith.constant 0 : i32
    return %arg1, %c0_i32, %c0_i32_0 : i32, i32, i32
  }
  func.func @transform_3(%arg0: i32, %arg1: i32) -> (i32, i32, i32) {
    %c0_i32 = arith.constant 0 : i32
    %c0_i32_0 = arith.constant 0 : i32
    %c0_i32_1 = arith.constant 0 : i32
    return %arg1, %c0_i32, %c0_i32_0 : i32, i32, i32
  }
  func.func @transform_4(%arg0: i32, %arg1: i32) -> (i32, i32, i32) {
    %c0_i32 = arith.constant 0 : i32
    %c0_i32_0 = arith.constant 0 : i32
    %c0_i32_1 = arith.constant 0 : i32
    return %arg1, %c0_i32, %c0_i32_0 : i32, i32, i32
  }
  func.func @transform_5(%arg0: i32, %arg1: i32) -> (i32, i32, i32) {
    %c0_i32 = arith.constant 0 : i32
    %c0_i32_0 = arith.constant 0 : i32
    %c0_i32_1 = arith.constant 0 : i32
    return %arg1, %c0_i32, %c0_i32_0 : i32, i32, i32
  }
  func.func @transform_6(%arg0: i32, %arg1: i32) -> (i32, i32, i32) {
    %c0_i32 = arith.constant 0 : i32
    %c0_i32_0 = arith.constant 0 : i32
    %c0_i32_1 = arith.constant 0 : i32
    return %arg1, %c0_i32, %c0_i32_0 : i32, i32, i32
  }
  func.func @transform_7(%arg0: i32, %arg1: i32) -> (i32, i32, i32) {
    %c0_i32 = arith.constant 0 : i32
    %c0_i32_0 = arith.constant 0 : i32
    %c0_i32_1 = arith.constant 0 : i32
    return %arg1, %c0_i32, %c0_i32_0 : i32, i32, i32
  }
  func.func @transform_8(%arg0: i32, %arg1: i32) -> (i32, i32, i32) {
    %c0_i32 = arith.constant 0 : i32
    %c0_i32_0 = arith.constant 0 : i32
    %c0_i32_1 = arith.constant 0 : i32
    return %arg1, %c0_i32, %c0_i32_0 : i32, i32, i32
  }
  func.func @transform_9(%arg0: i32, %arg1: i32) -> (i32, i32, i32) {
    %c0_i32 = arith.constant 0 : i32
    %c0_i32_0 = arith.constant 0 : i32
    %c0_i32_1 = arith.constant 0 : i32
    return %arg1, %c0_i32, %c0_i32_0 : i32, i32, i32
  }
  func.func @transform_10(%arg0: i32, %arg1: i32) -> (i32, i32, i32) {
    %c0_i32 = arith.constant 0 : i32
    %c0_i32_0 = arith.constant 0 : i32
    %c0_i32_1 = arith.constant 0 : i32
    return %arg1, %c0_i32, %c0_i32_0 : i32, i32, i32
  }
  func.func @transform_11(%arg0: i32, %arg1: i32) -> (i32, i32, i32) {
    %c0_i32 = arith.constant 0 : i32
    %c0_i32_0 = arith.constant 0 : i32
    %c0_i32_1 = arith.constant 0 : i32
    return %arg1, %c0_i32, %c0_i32_0 : i32, i32, i32
  }
  func.func @transform_12(%arg0: i32, %arg1: i32) -> (i32, i32, i32) {
    %c0_i32 = arith.constant 0 : i32
    %c0_i32_0 = arith.constant 0 : i32
    %c0_i32_1 = arith.constant 0 : i32
    return %arg1, %c0_i32, %c0_i32_0 : i32, i32, i32
  }
  func.func @transform_13(%arg0: i32, %arg1: i32) -> (i32, i32, i32) {
    %c0_i32 = arith.constant 0 : i32
    %c0_i32_0 = arith.constant 0 : i32
    %c0_i32_1 = arith.constant 0 : i32
    return %arg0, %c0_i32, %c0_i32_0 : i32, i32, i32
  }
}

module attributes {stable_mosaic.version = 11 : i64} {
  func.func @_matmul_bias_kernel(%arg0: i32, %arg1: i32, %arg2: i32, %arg3: memref<8x384xbf16, #tpu.memory_space<vmem>>, %arg4: memref<384x128xbf16, #tpu.memory_space<vmem>>, %arg5: memref<1x128xf32, #tpu.memory_space<vmem>>, %arg6: memref<8x128xbf16, #tpu.memory_space<vmem>>, %arg7: memref<8x128xf32, #tpu.memory_space<vmem>>) attributes {dimension_semantics = [#tpu.dimension_semantics<parallel>, #tpu.dimension_semantics<parallel>, #tpu.dimension_semantics<arbitrary>], iteration_bounds = array<i64: 1, 1, 1>, scalar_prefetch = 0 : i64, scratch_operands = 1 : i64, tpu.core_type = #tpu.core_type<tc>, window_params = [{transform_indices = @transform_0, window_bounds = array<i64: 8, 384>}, {transform_indices = @transform_1, window_bounds = array<i64: 384, 128>}, {transform_indices = @transform_2, window_bounds = array<i64: 1, 128>}, {transform_indices = @transform_3, window_bounds = array<i64: 8, 128>}]} {
    %c0_i32 = arith.constant 0 : i32
    %0 = arith.cmpi eq, %arg2, %c0_i32 : i32
    %1 = arith.extui %0 : i1 to i32
    %c0_i32_0 = arith.constant 0 : i32
    %2 = arith.cmpi ne, %1, %c0_i32_0 : i32
    scf.if %2 {
      %cst_10 = arith.constant 0.000000e+00 : f32
      %12 = vector.broadcast %cst_10 : f32 to vector<8x128xf32>
      %c0_11 = arith.constant 0 : index
      %c0_12 = arith.constant 0 : index
      %13 = vector.load %arg7[%c0_11, %c0_12] : memref<8x128xf32, #tpu.memory_space<vmem>>, vector<8x128xf32>
      tpu.vector_store %arg7[%c0_11, %c0_12], %12 {strides = array<i32>} : memref<8x128xf32, #tpu.memory_space<vmem>>, vector<8x128xf32>,
    } else {
    }
    %c0 = arith.constant 0 : index
    %c0_1 = arith.constant 0 : index
    %3 = vector.load %arg7[%c0, %c0_1] : memref<8x128xf32, #tpu.memory_space<vmem>>, vector<8x128xf32>
    %c0_2 = arith.constant 0 : index
    %c0_3 = arith.constant 0 : index
    %4 = vector.load %arg3[%c0_2, %c0_3] : memref<8x384xbf16, #tpu.memory_space<vmem>>, vector<8x384xbf16>
    %c0_4 = arith.constant 0 : index
    %c0_5 = arith.constant 0 : index
    %5 = vector.load %arg4[%c0_4, %c0_5] : memref<384x128xbf16, #tpu.memory_space<vmem>>, vector<384x128xbf16>
    %cst = arith.constant dense<0.000000e+00> : vector<8x128xf32>
    %6 = tpu.matmul %4, %5, %cst {dimension_numbers = #tpu.dot_dimension_numbers<[1], [0], [0], [1], [0, 0, 1, 1], [], []>} : vector<8x384xbf16>, vector<384x128xbf16>, vector<8x128xf32> -> vector<8x128xf32>
    %7 = arith.addf %3, %6 : vector<8x128xf32>
    %c0_6 = arith.constant 0 : index
    %c0_7 = arith.constant 0 : index
    %8 = vector.load %arg7[%c0_6, %c0_7] : memref<8x128xf32, #tpu.memory_space<vmem>>, vector<8x128xf32>
    tpu.vector_store %arg7[%c0_6, %c0_7], %7 {strides = array<i32>} : memref<8x128xf32, #tpu.memory_space<vmem>>, vector<8x128xf32>,
    %c0_i32_8 = arith.constant 0 : i32
    %9 = arith.cmpi eq, %arg2, %c0_i32_8 : i32
    %10 = arith.extui %9 : i1 to i32
    %c0_i32_9 = arith.constant 0 : i32
    %11 = arith.cmpi ne, %10, %c0_i32_9 : i32
    scf.if %11 {
      %c0_10 = arith.constant 0 : index
      %c0_11 = arith.constant 0 : index
      %12 = vector.load %arg7[%c0_10, %c0_11] : memref<8x128xf32, #tpu.memory_space<vmem>>, vector<8x128xf32>
      %c0_12 = arith.constant 0 : index
      %c0_13 = arith.constant 0 : index
      %13 = vector.load %arg5[%c0_12, %c0_13] : memref<1x128xf32, #tpu.memory_space<vmem>>, vector<1x128xf32>
      %14 = vector.broadcast %13 : vector<1x128xf32> to vector<8x128xf32>
      %15 = arith.addf %12, %14 : vector<8x128xf32>
      %16 = arith.truncf %15 : vector<8x128xf32> to vector<8x128xbf16>
      %c0_14 = arith.constant 0 : index
      %c0_15 = arith.constant 0 : index
      %17 = vector.load %arg6[%c0_14, %c0_15] : memref<8x128xbf16, #tpu.memory_space<vmem>>, vector<8x128xbf16>
      tpu.vector_store %arg6[%c0_14, %c0_15], %16 {strides = array<i32>} : memref<8x128xbf16, #tpu.memory_space<vmem>>, vector<8x128xbf16>,
    } else {
    }
    return
  }
  func.func @transform_0(%arg0: i32, %arg1: i32, %arg2: i32) -> (i32, i32) {
    %c0_i32 = arith.constant 0 : i32
    return %arg0, %arg2 : i32, i32
  }
  func.func @transform_1(%arg0: i32, %arg1: i32, %arg2: i32) -> (i32, i32) {
    %c0_i32 = arith.constant 0 : i32
    return %arg2, %arg1 : i32, i32
  }
  func.func @transform_2(%arg0: i32, %arg1: i32, %arg2: i32) -> (i32, i32) {
    %c0_i32 = arith.constant 0 : i32
    %c0_i32_0 = arith.constant 0 : i32
    return %c0_i32, %arg1 : i32, i32
  }
  func.func @transform_3(%arg0: i32, %arg1: i32, %arg2: i32) -> (i32, i32) {
    %c0_i32 = arith.constant 0 : i32
    return %arg0, %arg1 : i32, i32
  }
}

module attributes {stable_mosaic.version = 11 : i64} {
  func.func @_matmul_bias_kernel(%arg0: i32, %arg1: i32, %arg2: i32, %arg3: memref<8x128xbf16, #tpu.memory_space<vmem>>, %arg4: memref<128x128xbf16, #tpu.memory_space<vmem>>, %arg5: memref<1x128xf32, #tpu.memory_space<vmem>>, %arg6: memref<8x128xbf16, #tpu.memory_space<vmem>>, %arg7: memref<8x128xf32, #tpu.memory_space<vmem>>) attributes {dimension_semantics = [#tpu.dimension_semantics<parallel>, #tpu.dimension_semantics<parallel>, #tpu.dimension_semantics<arbitrary>], iteration_bounds = array<i64: 1, 1, 1>, scalar_prefetch = 0 : i64, scratch_operands = 1 : i64, tpu.core_type = #tpu.core_type<tc>, window_params = [{transform_indices = @transform_0, window_bounds = array<i64: 8, 128>}, {transform_indices = @transform_1, window_bounds = array<i64: 128, 128>}, {transform_indices = @transform_2, window_bounds = array<i64: 1, 128>}, {transform_indices = @transform_3, window_bounds = array<i64: 8, 128>}]} {
    %c0_i32 = arith.constant 0 : i32
    %0 = arith.cmpi eq, %arg2, %c0_i32 : i32
    %1 = arith.extui %0 : i1 to i32
    %c0_i32_0 = arith.constant 0 : i32
    %2 = arith.cmpi ne, %1, %c0_i32_0 : i32
    scf.if %2 {
      %cst_10 = arith.constant 0.000000e+00 : f32
      %12 = vector.broadcast %cst_10 : f32 to vector<8x128xf32>
      %c0_11 = arith.constant 0 : index
      %c0_12 = arith.constant 0 : index
      %13 = vector.load %arg7[%c0_11, %c0_12] : memref<8x128xf32, #tpu.memory_space<vmem>>, vector<8x128xf32>
      tpu.vector_store %arg7[%c0_11, %c0_12], %12 {strides = array<i32>} : memref<8x128xf32, #tpu.memory_space<vmem>>, vector<8x128xf32>,
    } else {
    }
    %c0 = arith.constant 0 : index
    %c0_1 = arith.constant 0 : index
    %3 = vector.load %arg7[%c0, %c0_1] : memref<8x128xf32, #tpu.memory_space<vmem>>, vector<8x128xf32>
    %c0_2 = arith.constant 0 : index
    %c0_3 = arith.constant 0 : index
    %4 = vector.load %arg3[%c0_2, %c0_3] : memref<8x128xbf16, #tpu.memory_space<vmem>>, vector<8x128xbf16>
    %c0_4 = arith.constant 0 : index
    %c0_5 = arith.constant 0 : index
    %5 = vector.load %arg4[%c0_4, %c0_5] : memref<128x128xbf16, #tpu.memory_space<vmem>>, vector<128x128xbf16>
    %cst = arith.constant dense<0.000000e+00> : vector<8x128xf32>
    %6 = tpu.matmul %4, %5, %cst {dimension_numbers = #tpu.dot_dimension_numbers<[1], [0], [0], [1], [0, 0, 1, 1], [], []>} : vector<8x128xbf16>, vector<128x128xbf16>, vector<8x128xf32> -> vector<8x128xf32>
    %7 = arith.addf %3, %6 : vector<8x128xf32>
    %c0_6 = arith.constant 0 : index
    %c0_7 = arith.constant 0 : index
    %8 = vector.load %arg7[%c0_6, %c0_7] : memref<8x128xf32, #tpu.memory_space<vmem>>, vector<8x128xf32>
    tpu.vector_store %arg7[%c0_6, %c0_7], %7 {strides = array<i32>} : memref<8x128xf32, #tpu.memory_space<vmem>>, vector<8x128xf32>,
    %c0_i32_8 = arith.constant 0 : i32
    %9 = arith.cmpi eq, %arg2, %c0_i32_8 : i32
    %10 = arith.extui %9 : i1 to i32
    %c0_i32_9 = arith.constant 0 : i32
    %11 = arith.cmpi ne, %10, %c0_i32_9 : i32
    scf.if %11 {
      %c0_10 = arith.constant 0 : index
      %c0_11 = arith.constant 0 : index
      %12 = vector.load %arg7[%c0_10, %c0_11] : memref<8x128xf32, #tpu.memory_space<vmem>>, vector<8x128xf32>
      %c0_12 = arith.constant 0 : index
      %c0_13 = arith.constant 0 : index
      %13 = vector.load %arg5[%c0_12, %c0_13] : memref<1x128xf32, #tpu.memory_space<vmem>>, vector<1x128xf32>
      %14 = vector.broadcast %13 : vector<1x128xf32> to vector<8x128xf32>
      %15 = arith.addf %12, %14 : vector<8x128xf32>
      %16 = arith.truncf %15 : vector<8x128xf32> to vector<8x128xbf16>
      %c0_14 = arith.constant 0 : index
      %c0_15 = arith.constant 0 : index
      %17 = vector.load %arg6[%c0_14, %c0_15] : memref<8x128xbf16, #tpu.memory_space<vmem>>, vector<8x128xbf16>
      tpu.vector_store %arg6[%c0_14, %c0_15], %16 {strides = array<i32>} : memref<8x128xbf16, #tpu.memory_space<vmem>>, vector<8x128xbf16>,
    } else {
    }
    return
  }
  func.func @transform_0(%arg0: i32, %arg1: i32, %arg2: i32) -> (i32, i32) {
    %c0_i32 = arith.constant 0 : i32
    return %arg0, %arg2 : i32, i32
  }
  func.func @transform_1(%arg0: i32, %arg1: i32, %arg2: i32) -> (i32, i32) {
    %c0_i32 = arith.constant 0 : i32
    return %arg2, %arg1 : i32, i32
  }
  func.func @transform_2(%arg0: i32, %arg1: i32, %arg2: i32) -> (i32, i32) {
    %c0_i32 = arith.constant 0 : i32
    %c0_i32_0 = arith.constant 0 : i32
    return %c0_i32, %arg1 : i32, i32
  }
  func.func @transform_3(%arg0: i32, %arg1: i32, %arg2: i32) -> (i32, i32) {
    %c0_i32 = arith.constant 0 : i32
    return %arg0, %arg1 : i32, i32
  }
}

module attributes {stable_mosaic.version = 11 : i64} {
  func.func @_head_kernel(%arg0: memref<4x64xbf16, #tpu.memory_space<vmem>>, %arg1: memref<1x64xf32, #tpu.memory_space<vmem>>, %arg2: memref<1x64xf32, #tpu.memory_space<vmem>>, %arg3: memref<64x16xbf16, #tpu.memory_space<vmem>>, %arg4: memref<1x16xf32, #tpu.memory_space<vmem>>, %arg5: memref<2x8xf32, #tpu.memory_space<vmem>>) attributes {dimension_semantics = [], scalar_prefetch = 0 : i64, scratch_operands = 0 : i64, tpu.core_type = #tpu.core_type<tc>} {
    %c0 = arith.constant 0 : index
    %c0_0 = arith.constant 0 : index
    %0 = vector.load %arg0[%c0, %c0_0] : memref<4x64xbf16, #tpu.memory_space<vmem>>, vector<4x64xbf16>
    %1 = arith.extf %0 : vector<4x64xbf16> to vector<4x64xf32>
    %cst = arith.constant dense<0.000000e+00> : vector<4xf32>
    %2 = vector.multi_reduction <add>, %1, %cst [1] : vector<4x64xf32> to vector<4xf32>
    %3 = vector.shape_cast %2 : vector<4xf32> to vector<4x1xf32>
    %cst_1 = arith.constant 6.400000e+01 : f32
    %4 = vector.broadcast %cst_1 : f32 to vector<4x1xf32>
    %5 = arith.divf %3, %4 : vector<4x1xf32>
    %6 = vector.broadcast %5 : vector<4x1xf32> to vector<4x64xf32>
    %7 = arith.subf %1, %6 : vector<4x64xf32>
    %8 = arith.mulf %7, %7 : vector<4x64xf32>
    %cst_2 = arith.constant dense<0.000000e+00> : vector<4xf32>
    %9 = vector.multi_reduction <add>, %8, %cst_2 [1] : vector<4x64xf32> to vector<4xf32>
    %10 = vector.shape_cast %9 : vector<4xf32> to vector<4x1xf32>
    %cst_3 = arith.constant 6.400000e+01 : f32
    %11 = vector.broadcast %cst_3 : f32 to vector<4x1xf32>
    %12 = arith.divf %10, %11 : vector<4x1xf32>
    %13 = vector.broadcast %5 : vector<4x1xf32> to vector<4x64xf32>
    %14 = arith.subf %1, %13 : vector<4x64xf32>
    %cst_4 = arith.constant 9.99999997E-7 : f32
    %15 = vector.broadcast %cst_4 : f32 to vector<4x1xf32>
    %16 = arith.addf %12, %15 : vector<4x1xf32>
    %17 = math.rsqrt %16 : vector<4x1xf32>
    %18 = vector.broadcast %17 : vector<4x1xf32> to vector<4x64xf32>
    %19 = arith.mulf %14, %18 : vector<4x64xf32>
    %c0_5 = arith.constant 0 : index
    %c0_6 = arith.constant 0 : index
    %20 = vector.load %arg1[%c0_5, %c0_6] : memref<1x64xf32, #tpu.memory_space<vmem>>, vector<1x64xf32>
    %21 = vector.broadcast %20 : vector<1x64xf32> to vector<4x64xf32>
    %22 = arith.mulf %19, %21 : vector<4x64xf32>
    %c0_7 = arith.constant 0 : index
    %c0_8 = arith.constant 0 : index
    %23 = vector.load %arg2[%c0_7, %c0_8] : memref<1x64xf32, #tpu.memory_space<vmem>>, vector<1x64xf32>
    %24 = vector.broadcast %23 : vector<1x64xf32> to vector<4x64xf32>
    %25 = arith.addf %22, %24 : vector<4x64xf32>
    %26 = arith.truncf %25 : vector<4x64xf32> to vector<4x64xbf16>
    %c0_9 = arith.constant 0 : index
    %c0_10 = arith.constant 0 : index
    %27 = vector.load %arg3[%c0_9, %c0_10] : memref<64x16xbf16, #tpu.memory_space<vmem>>, vector<64x16xbf16>
    %cst_11 = arith.constant dense<0.000000e+00> : vector<4x16xf32>
    %28 = tpu.matmul %26, %27, %cst_11 {dimension_numbers = #tpu.dot_dimension_numbers<[1], [0], [0], [1], [0, 0, 1, 1], [], []>} : vector<4x64xbf16>, vector<64x16xbf16>, vector<4x16xf32> -> vector<4x16xf32>
    %c0_12 = arith.constant 0 : index
    %c0_13 = arith.constant 0 : index
    %29 = vector.load %arg4[%c0_12, %c0_13] : memref<1x16xf32, #tpu.memory_space<vmem>>, vector<1x16xf32>
    %30 = vector.broadcast %29 : vector<1x16xf32> to vector<4x16xf32>
    %31 = arith.addf %28, %30 : vector<4x16xf32>
    %32 = vector.extract_strided_slice %31 {offsets = [0, 0], sizes = [2, 8], strides = [1, 1]} : vector<4x16xf32> to vector<2x8xf32>
    %33 = vector.extract_strided_slice %31 {offsets = [2, 8], sizes = [2, 8], strides = [1, 1]} : vector<4x16xf32> to vector<2x8xf32>
    %34 = arith.addf %32, %33 : vector<2x8xf32>
    %cst_14 = arith.constant 5.000000e-01 : f32
    %35 = vector.broadcast %cst_14 : f32 to vector<2x8xf32>
    %36 = arith.mulf %35, %34 : vector<2x8xf32>
    %c0_15 = arith.constant 0 : index
    %c0_16 = arith.constant 0 : index
    %37 = vector.load %arg5[%c0_15, %c0_16] : memref<2x8xf32, #tpu.memory_space<vmem>>, vector<2x8xf32>
    tpu.vector_store %arg5[%c0_15, %c0_16], %36 {strides = array<i32>} : memref<2x8xf32, #tpu.memory_space<vmem>>, vector<2x8xf32>,
    return
  }
}

module attributes {stable_mosaic.version = 11 : i64} {
  func.func @_stage_kernel(%arg0: i32, %arg1: i32, %arg2: memref<1x8x64xbf16, #tpu.memory_space<vmem>>, %arg3: memref<1x1x64xf32, #tpu.memory_space<vmem>>, %arg4: memref<1x1x64xf32, #tpu.memory_space<vmem>>, %arg5: memref<1x64x192xbf16, #tpu.memory_space<vmem>>, %arg6: memref<1x1x192xf32, #tpu.memory_space<vmem>>, %arg7: memref<1x64x64xbf16, #tpu.memory_space<vmem>>, %arg8: memref<1x1x64xf32, #tpu.memory_space<vmem>>, %arg9: memref<1x1x64xf32, #tpu.memory_space<vmem>>, %arg10: memref<1x1x64xf32, #tpu.memory_space<vmem>>, %arg11: memref<1x64x128xbf16, #tpu.memory_space<vmem>>, %arg12: memref<1x1x128xf32, #tpu.memory_space<vmem>>, %arg13: memref<1x128x64xbf16, #tpu.memory_space<vmem>>, %arg14: memref<1x1x64xf32, #tpu.memory_space<vmem>>, %arg15: memref<1x8x64xbf16, #tpu.memory_space<vmem>>, %arg16: memref<1x8x64xf32, #tpu.memory_space<vmem>>) attributes {dimension_semantics = [#tpu.dimension_semantics<parallel>, #tpu.dimension_semantics<arbitrary>], iteration_bounds = array<i64: 2, 1>, scalar_prefetch = 0 : i64, scratch_operands = 1 : i64, tpu.core_type = #tpu.core_type<tc>, window_params = [{transform_indices = @transform_0, window_bounds = array<i64: 1, 8, 64>}, {transform_indices = @transform_1, window_bounds = array<i64: 1, 1, 64>}, {transform_indices = @transform_2, window_bounds = array<i64: 1, 1, 64>}, {transform_indices = @transform_3, window_bounds = array<i64: 1, 64, 192>}, {transform_indices = @transform_4, window_bounds = array<i64: 1, 1, 192>}, {transform_indices = @transform_5, window_bounds = array<i64: 1, 64, 64>}, {transform_indices = @transform_6, window_bounds = array<i64: 1, 1, 64>}, {transform_indices = @transform_7, window_bounds = array<i64: 1, 1, 64>}, {transform_indices = @transform_8, window_bounds = array<i64: 1, 1, 64>}, {transform_indices = @transform_9, window_bounds = array<i64: 1, 64, 128>}, {transform_indices = @transform_10, window_bounds = array<i64: 1, 1, 128>}, {transform_indices = @transform_11, window_bounds = array<i64: 1, 128, 64>}, {transform_indices = @transform_12, window_bounds = array<i64: 1, 1, 64>}, {transform_indices = @transform_13, window_bounds = array<i64: 1, 8, 64>}]} {
    %c0_i32 = arith.constant 0 : i32
    %0 = arith.cmpi eq, %arg1, %c0_i32 : i32
    %1 = arith.extui %0 : i1 to i32
    %c0_i32_0 = arith.constant 0 : i32
    %2 = arith.cmpi ne, %1, %c0_i32_0 : i32
    scf.if %2 {
      %c0_69 = arith.constant 0 : index
      %c0_70 = arith.constant 0 : index
      %c0_71 = arith.constant 0 : index
      %167 = vector.load %arg2[%c0_69, %c0_70, %c0_71] : memref<1x8x64xbf16, #tpu.memory_space<vmem>>, vector<1x8x64xbf16>
      %168 = arith.extf %167 : vector<1x8x64xbf16> to vector<1x8x64xf32>
      %c0_72 = arith.constant 0 : index
      %c0_73 = arith.constant 0 : index
      %c0_74 = arith.constant 0 : index
      %169 = vector.load %arg16[%c0_72, %c0_73, %c0_74] : memref<1x8x64xf32, #tpu.memory_space<vmem>>, vector<1x8x64xf32>
      tpu.vector_store %arg16[%c0_72, %c0_73, %c0_74], %168 {strides = array<i32>} : memref<1x8x64xf32, #tpu.memory_space<vmem>>, vector<1x8x64xf32>,
    } else {
    }
    %c0 = arith.constant 0 : index
    %c0_1 = arith.constant 0 : index
    %c0_2 = arith.constant 0 : index
    %3 = vector.load %arg16[%c0, %c0_1, %c0_2] : memref<1x8x64xf32, #tpu.memory_space<vmem>>, vector<1x8x64xf32>
    %cst = arith.constant dense<0.000000e+00> : vector<1x8xf32>
    %4 = vector.multi_reduction <add>, %3, %cst [2] : vector<1x8x64xf32> to vector<1x8xf32>
    %5 = vector.shape_cast %4 : vector<1x8xf32> to vector<1x8x1xf32>
    %cst_3 = arith.constant 6.400000e+01 : f32
    %6 = vector.broadcast %cst_3 : f32 to vector<1x8x1xf32>
    %7 = arith.divf %5, %6 : vector<1x8x1xf32>
    %8 = vector.broadcast %7 : vector<1x8x1xf32> to vector<1x8x64xf32>
    %9 = arith.subf %3, %8 : vector<1x8x64xf32>
    %10 = arith.mulf %9, %9 : vector<1x8x64xf32>
    %cst_4 = arith.constant dense<0.000000e+00> : vector<1x8xf32>
    %11 = vector.multi_reduction <add>, %10, %cst_4 [2] : vector<1x8x64xf32> to vector<1x8xf32>
    %12 = vector.shape_cast %11 : vector<1x8xf32> to vector<1x8x1xf32>
    %cst_5 = arith.constant 6.400000e+01 : f32
    %13 = vector.broadcast %cst_5 : f32 to vector<1x8x1xf32>
    %14 = arith.divf %12, %13 : vector<1x8x1xf32>
    %15 = vector.broadcast %7 : vector<1x8x1xf32> to vector<1x8x64xf32>
    %16 = arith.subf %3, %15 : vector<1x8x64xf32>
    %cst_6 = arith.constant 9.99999997E-7 : f32
    %17 = vector.broadcast %cst_6 : f32 to vector<1x8x1xf32>
    %18 = arith.addf %14, %17 : vector<1x8x1xf32>
    %19 = math.rsqrt %18 : vector<1x8x1xf32>
    %20 = vector.broadcast %19 : vector<1x8x1xf32> to vector<1x8x64xf32>
    %21 = arith.mulf %16, %20 : vector<1x8x64xf32>
    %c0_7 = arith.constant 0 : index
    %c0_8 = arith.constant 0 : index
    %c0_9 = arith.constant 0 : index
    %22 = vector.load %arg3[%c0_7, %c0_8, %c0_9] : memref<1x1x64xf32, #tpu.memory_space<vmem>>, vector<1x1x64xf32>
    %23 = vector.shape_cast %22 : vector<1x1x64xf32> to vector<1x64xf32>
    %24 = vector.shape_cast %23 : vector<1x64xf32> to vector<1x1x64xf32>
    %25 = vector.broadcast %24 : vector<1x1x64xf32> to vector<1x8x64xf32>
    %26 = arith.mulf %21, %25 : vector<1x8x64xf32>
    %c0_10 = arith.constant 0 : index
    %c0_11 = arith.constant 0 : index
    %c0_12 = arith.constant 0 : index
    %27 = vector.load %arg4[%c0_10, %c0_11, %c0_12] : memref<1x1x64xf32, #tpu.memory_space<vmem>>, vector<1x1x64xf32>
    %28 = vector.shape_cast %27 : vector<1x1x64xf32> to vector<1x64xf32>
    %29 = vector.shape_cast %28 : vector<1x64xf32> to vector<1x1x64xf32>
    %30 = vector.broadcast %29 : vector<1x1x64xf32> to vector<1x8x64xf32>
    %31 = arith.addf %26, %30 : vector<1x8x64xf32>
    %32 = arith.truncf %31 : vector<1x8x64xf32> to vector<1x8x64xbf16>
    %33 = vector.shape_cast %32 : vector<1x8x64xbf16> to vector<8x64xbf16>
    %c0_13 = arith.constant 0 : index
    %c0_14 = arith.constant 0 : index
    %c0_15 = arith.constant 0 : index
    %34 = vector.load %arg5[%c0_13, %c0_14, %c0_15] : memref<1x64x192xbf16, #tpu.memory_space<vmem>>, vector<1x64x192xbf16>
    %35 = vector.shape_cast %34 : vector<1x64x192xbf16> to vector<64x192xbf16>
    %cst_16 = arith.constant dense<0.000000e+00> : vector<8x192xf32>
    %36 = tpu.matmul %33, %35, %cst_16 {dimension_numbers = #tpu.dot_dimension_numbers<[1], [0], [0], [1], [0, 0, 1, 1], [], []>} : vector<8x64xbf16>, vector<64x192xbf16>, vector<8x192xf32> -> vector<8x192xf32>
    %c0_17 = arith.constant 0 : index
    %c0_18 = arith.constant 0 : index
    %c0_19 = arith.constant 0 : index
    %37 = vector.load %arg6[%c0_17, %c0_18, %c0_19] : memref<1x1x192xf32, #tpu.memory_space<vmem>>, vector<1x1x192xf32>
    %38 = vector.shape_cast %37 : vector<1x1x192xf32> to vector<1x192xf32>
    %39 = vector.broadcast %38 : vector<1x192xf32> to vector<8x192xf32>
    %40 = arith.addf %36, %39 : vector<8x192xf32>
    %41 = arith.truncf %40 : vector<8x192xf32> to vector<8x192xbf16>
    %42 = vector.shape_cast %41 : vector<8x192xbf16> to vector<1x8x192xbf16>
    %43 = vector.extract_strided_slice %42 {offsets = [0, 0, 0], sizes = [1, 8, 64], strides = [1, 1, 1]} : vector<1x8x192xbf16> to vector<1x8x64xbf16>
    %44 = vector.extract_strided_slice %43 {offsets = [0, 0, 0], sizes = [1, 8, 16], strides = [1, 1, 1]} : vector<1x8x64xbf16> to vector<1x8x16xbf16>
    %45 = vector.extract_strided_slice %43 {offsets = [0, 0, 16], sizes = [1, 8, 16], strides = [1, 1, 1]} : vector<1x8x64xbf16> to vector<1x8x16xbf16>
    %46 = vector.extract_strided_slice %43 {offsets = [0, 0, 32], sizes = [1, 8, 16], strides = [1, 1, 1]} : vector<1x8x64xbf16> to vector<1x8x16xbf16>
    %47 = vector.extract_strided_slice %43 {offsets = [0, 0, 48], sizes = [1, 8, 16], strides = [1, 1, 1]} : vector<1x8x64xbf16> to vector<1x8x16xbf16>
    %48 = tpu.concatenate %44, %45, %46, %47 in 0 : vector<1x8x16xbf16>, vector<1x8x16xbf16>, vector<1x8x16xbf16>, vector<1x8x16xbf16> -> vector<4x8x16xbf16>
    %49 = vector.extract_strided_slice %42 {offsets = [0, 0, 64], sizes = [1, 8, 64], strides = [1, 1, 1]} : vector<1x8x192xbf16> to vector<1x8x64xbf16>
    %50 = vector.extract_strided_slice %49 {offsets = [0, 0, 0], sizes = [1, 8, 16], strides = [1, 1, 1]} : vector<1x8x64xbf16> to vector<1x8x16xbf16>
    %51 = vector.extract_strided_slice %49 {offsets = [0, 0, 16], sizes = [1, 8, 16], strides = [1, 1, 1]} : vector<1x8x64xbf16> to vector<1x8x16xbf16>
    %52 = vector.extract_strided_slice %49 {offsets = [0, 0, 32], sizes = [1, 8, 16], strides = [1, 1, 1]} : vector<1x8x64xbf16> to vector<1x8x16xbf16>
    %53 = vector.extract_strided_slice %49 {offsets = [0, 0, 48], sizes = [1, 8, 16], strides = [1, 1, 1]} : vector<1x8x64xbf16> to vector<1x8x16xbf16>
    %54 = tpu.concatenate %50, %51, %52, %53 in 0 : vector<1x8x16xbf16>, vector<1x8x16xbf16>, vector<1x8x16xbf16>, vector<1x8x16xbf16> -> vector<4x8x16xbf16>
    %55 = vector.extract_strided_slice %42 {offsets = [0, 0, 128], sizes = [1, 8, 64], strides = [1, 1, 1]} : vector<1x8x192xbf16> to vector<1x8x64xbf16>
    %56 = vector.extract_strided_slice %55 {offsets = [0, 0, 0], sizes = [1, 8, 16], strides = [1, 1, 1]} : vector<1x8x64xbf16> to vector<1x8x16xbf16>
    %57 = vector.extract_strided_slice %55 {offsets = [0, 0, 16], sizes = [1, 8, 16], strides = [1, 1, 1]} : vector<1x8x64xbf16> to vector<1x8x16xbf16>
    %58 = vector.extract_strided_slice %55 {offsets = [0, 0, 32], sizes = [1, 8, 16], strides = [1, 1, 1]} : vector<1x8x64xbf16> to vector<1x8x16xbf16>
    %59 = vector.extract_strided_slice %55 {offsets = [0, 0, 48], sizes = [1, 8, 16], strides = [1, 1, 1]} : vector<1x8x64xbf16> to vector<1x8x16xbf16>
    %60 = tpu.concatenate %56, %57, %58, %59 in 0 : vector<1x8x16xbf16>, vector<1x8x16xbf16>, vector<1x8x16xbf16>, vector<1x8x16xbf16> -> vector<4x8x16xbf16>
    %61 = tpu.iota {dimensions = array<i32: 2>} : vector<1x1x8xi32>
    %c6_i32 = arith.constant 6 : i32
    %62 = vector.broadcast %c6_i32 : i32 to vector<1x1x8xi32>
    %63 = arith.cmpi slt, %61, %62 : vector<1x1x8xi32>
    "tpu.trace_start"() <{level = 10 : i32, message = "znd,zmd->znm"}> : () -> ()
    %cst_20 = arith.constant dense<0.000000e+00> : vector<4x8x8xf32>
    %64 = tpu.matmul %48, %54, %cst_20 {dimension_numbers = #tpu.dot_dimension_numbers<[2], [2], [1], [1], [0, 0, 0, 1, 1, 1], [0], [0]>} : vector<4x8x16xbf16>, vector<4x8x16xbf16>, vector<4x8x8xf32> -> vector<4x8x8xf32>
    "tpu.trace_stop"() : () -> ()
    %cst_21 = arith.constant 2.500000e-01 : f32
    %65 = vector.broadcast %cst_21 : f32 to vector<4x8x8xf32>
    %66 = arith.mulf %64, %65 : vector<4x8x8xf32>
    %cst_22 = arith.constant -1.000000e+30 : f32
    %67 = vector.shape_cast %63 : vector<1x1x8xi1> to vector<1x1x8xi1>
    %68 = vector.broadcast %67 : vector<1x1x8xi1> to vector<4x8x8xi1>
    %69 = vector.broadcast %cst_22 : f32 to vector<4x8x8xf32>
    %70 = arith.select %68, %66, %69 : vector<4x8x8xi1>, vector<4x8x8xf32>
    %cst_23 = arith.constant dense<0xFF800000> : vector<4x8xf32>
    %71 = vector.multi_reduction <maximumf>, %70, %cst_23 [2] : vector<4x8x8xf32> to vector<4x8xf32>
    %72 = vector.shape_cast %71 : vector<4x8xf32> to vector<4x8x1xf32>
    %73 = vector.broadcast %72 : vector<4x8x1xf32> to vector<4x8x8xf32>
    %74 = arith.subf %70, %73 : vector<4x8x8xf32>
    %75 = math.exp %74 : vector<4x8x8xf32>
    %cst_24 = arith.constant dense<0.000000e+00> : vector<4x8xf32>
    %76 = vector.multi_reduction <add>, %75, %cst_24 [2] : vector<4x8x8xf32> to vector<4x8xf32>
    %77 = vector.shape_cast %76 : vector<4x8xf32> to vector<4x8x1xf32>
    %78 = tpu.reciprocal %77 : vector<4x8x1xf32> -> vector<4x8x1xf32>
    %79 = vector.broadcast %78 : vector<4x8x1xf32> to vector<4x8x8xf32>
    %80 = arith.mulf %75, %79 : vector<4x8x8xf32>
    %81 = arith.truncf %80 : vector<4x8x8xf32> to vector<4x8x8xbf16>
    "tpu.trace_start"() <{level = 10 : i32, message = "znm,zmd->znd"}> : () -> ()
    %cst_25 = arith.constant dense<0.000000e+00> : vector<4x8x16xf32>
    %82 = tpu.matmul %81, %60, %cst_25 {dimension_numbers = #tpu.dot_dimension_numbers<[2], [1], [1], [2], [0, 0, 0, 1, 1, 2], [0], [0]>} : vector<4x8x8xbf16>, vector<4x8x16xbf16>, vector<4x8x16xf32> -> vector<4x8x16xf32>
    "tpu.trace_stop"() : () -> ()
    %83 = vector.extract_strided_slice %82 {offsets = [0, 0, 0], sizes = [1, 8, 16], strides = [1, 1, 1]} : vector<4x8x16xf32> to vector<1x8x16xf32>
    %84 = vector.extract_strided_slice %82 {offsets = [1, 0, 0], sizes = [1, 8, 16], strides = [1, 1, 1]} : vector<4x8x16xf32> to vector<1x8x16xf32>
    %85 = vector.extract_strided_slice %82 {offsets = [2, 0, 0], sizes = [1, 8, 16], strides = [1, 1, 1]} : vector<4x8x16xf32> to vector<1x8x16xf32>
    %86 = vector.extract_strided_slice %82 {offsets = [3, 0, 0], sizes = [1, 8, 16], strides = [1, 1, 1]} : vector<4x8x16xf32> to vector<1x8x16xf32>
    %87 = tpu.concatenate %83, %84, %85, %86 in 2 : vector<1x8x16xf32>, vector<1x8x16xf32>, vector<1x8x16xf32>, vector<1x8x16xf32> -> vector<1x8x64xf32>
    %88 = arith.truncf %87 : vector<1x8x64xf32> to vector<1x8x64xbf16>
    %89 = vector.shape_cast %88 : vector<1x8x64xbf16> to vector<8x64xbf16>
    %c0_26 = arith.constant 0 : index
    %c0_27 = arith.constant 0 : index
    %c0_28 = arith.constant 0 : index
    %90 = vector.load %arg7[%c0_26, %c0_27, %c0_28] : memref<1x64x64xbf16, #tpu.memory_space<vmem>>, vector<1x64x64xbf16>
    %91 = vector.shape_cast %90 : vector<1x64x64xbf16> to vector<64x64xbf16>
    %cst_29 = arith.constant dense<0.000000e+00> : vector<8x64xf32>
    %92 = tpu.matmul %89, %91, %cst_29 {dimension_numbers = #tpu.dot_dimension_numbers<[1], [0], [0], [1], [0, 0, 1, 1], [], []>} : vector<8x64xbf16>, vector<64x64xbf16>, vector<8x64xf32> -> vector<8x64xf32>
    %c0_30 = arith.constant 0 : index
    %c0_31 = arith.constant 0 : index
    %c0_32 = arith.constant 0 : index
    %93 = vector.load %arg8[%c0_30, %c0_31, %c0_32] : memref<1x1x64xf32, #tpu.memory_space<vmem>>, vector<1x1x64xf32>
    %94 = vector.shape_cast %93 : vector<1x1x64xf32> to vector<1x64xf32>
    %95 = vector.broadcast %94 : vector<1x64xf32> to vector<8x64xf32>
    %96 = arith.addf %92, %95 : vector<8x64xf32>
    %97 = vector.shape_cast %96 : vector<8x64xf32> to vector<1x8x64xf32>
    %cst_33 = arith.constant 1.000000e+00 : f32
    %98 = vector.broadcast %cst_33 : f32 to vector<1x8x64xf32>
    %99 = arith.mulf %98, %97 : vector<1x8x64xf32>
    %100 = arith.addf %3, %99 : vector<1x8x64xf32>
    %cst_34 = arith.constant dense<0.000000e+00> : vector<1x8xf32>
    %101 = vector.multi_reduction <add>, %100, %cst_34 [2] : vector<1x8x64xf32> to vector<1x8xf32>
    %102 = vector.shape_cast %101 : vector<1x8xf32> to vector<1x8x1xf32>
    %cst_35 = arith.constant 6.400000e+01 : f32
    %103 = vector.broadcast %cst_35 : f32 to vector<1x8x1xf32>
    %104 = arith.divf %102, %103 : vector<1x8x1xf32>
    %105 = vector.broadcast %104 : vector<1x8x1xf32> to vector<1x8x64xf32>
    %106 = arith.subf %100, %105 : vector<1x8x64xf32>
    %107 = arith.mulf %106, %106 : vector<1x8x64xf32>
    %cst_36 = arith.constant dense<0.000000e+00> : vector<1x8xf32>
    %108 = vector.multi_reduction <add>, %107, %cst_36 [2] : vector<1x8x64xf32> to vector<1x8xf32>
    %109 = vector.shape_cast %108 : vector<1x8xf32> to vector<1x8x1xf32>
    %cst_37 = arith.constant 6.400000e+01 : f32
    %110 = vector.broadcast %cst_37 : f32 to vector<1x8x1xf32>
    %111 = arith.divf %109, %110 : vector<1x8x1xf32>
    %112 = vector.broadcast %104 : vector<1x8x1xf32> to vector<1x8x64xf32>
    %113 = arith.subf %100, %112 : vector<1x8x64xf32>
    %cst_38 = arith.constant 9.99999997E-7 : f32
    %114 = vector.broadcast %cst_38 : f32 to vector<1x8x1xf32>
    %115 = arith.addf %111, %114 : vector<1x8x1xf32>
    %116 = math.rsqrt %115 : vector<1x8x1xf32>
    %117 = vector.broadcast %116 : vector<1x8x1xf32> to vector<1x8x64xf32>
    %118 = arith.mulf %113, %117 : vector<1x8x64xf32>
    %c0_39 = arith.constant 0 : index
    %c0_40 = arith.constant 0 : index
    %c0_41 = arith.constant 0 : index
    %119 = vector.load %arg9[%c0_39, %c0_40, %c0_41] : memref<1x1x64xf32, #tpu.memory_space<vmem>>, vector<1x1x64xf32>
    %120 = vector.shape_cast %119 : vector<1x1x64xf32> to vector<1x64xf32>
    %121 = vector.shape_cast %120 : vector<1x64xf32> to vector<1x1x64xf32>
    %122 = vector.broadcast %121 : vector<1x1x64xf32> to vector<1x8x64xf32>
    %123 = arith.mulf %118, %122 : vector<1x8x64xf32>
    %c0_42 = arith.constant 0 : index
    %c0_43 = arith.constant 0 : index
    %c0_44 = arith.constant 0 : index
    %124 = vector.load %arg10[%c0_42, %c0_43, %c0_44] : memref<1x1x64xf32, #tpu.memory_space<vmem>>, vector<1x1x64xf32>
    %125 = vector.shape_cast %124 : vector<1x1x64xf32> to vector<1x64xf32>
    %126 = vector.shape_cast %125 : vector<1x64xf32> to vector<1x1x64xf32>
    %127 = vector.broadcast %126 : vector<1x1x64xf32> to vector<1x8x64xf32>
    %128 = arith.addf %123, %127 : vector<1x8x64xf32>
    %129 = arith.truncf %128 : vector<1x8x64xf32> to vector<1x8x64xbf16>
    %130 = vector.shape_cast %129 : vector<1x8x64xbf16> to vector<8x64xbf16>
    %c0_45 = arith.constant 0 : index
    %c0_46 = arith.constant 0 : index
    %c0_47 = arith.constant 0 : index
    %131 = vector.load %arg11[%c0_45, %c0_46, %c0_47] : memref<1x64x128xbf16, #tpu.memory_space<vmem>>, vector<1x64x128xbf16>
    %132 = vector.shape_cast %131 : vector<1x64x128xbf16> to vector<64x128xbf16>
    %cst_48 = arith.constant dense<0.000000e+00> : vector<8x128xf32>
    %133 = tpu.matmul %130, %132, %cst_48 {dimension_numbers = #tpu.dot_dimension_numbers<[1], [0], [0], [1], [0, 0, 1, 1], [], []>} : vector<8x64xbf16>, vector<64x128xbf16>, vector<8x128xf32> -> vector<8x128xf32>
    %c0_49 = arith.constant 0 : index
    %c0_50 = arith.constant 0 : index
    %c0_51 = arith.constant 0 : index
    %134 = vector.load %arg12[%c0_49, %c0_50, %c0_51] : memref<1x1x128xf32, #tpu.memory_space<vmem>>, vector<1x1x128xf32>
    %135 = vector.shape_cast %134 : vector<1x1x128xf32> to vector<1x128xf32>
    %136 = vector.broadcast %135 : vector<1x128xf32> to vector<8x128xf32>
    %137 = arith.addf %133, %136 : vector<8x128xf32>
    %138 = arith.mulf %137, %137 : vector<8x128xf32>
    %139 = arith.mulf %137, %138 : vector<8x128xf32>
    %cst_52 = arith.constant 4.471500e-02 : f32
    %140 = vector.broadcast %cst_52 : f32 to vector<8x128xf32>
    %141 = arith.mulf %140, %139 : vector<8x128xf32>
    %142 = arith.addf %137, %141 : vector<8x128xf32>
    %cst_53 = arith.constant 0.797884583 : f32
    %143 = vector.broadcast %cst_53 : f32 to vector<8x128xf32>
    %144 = arith.mulf %143, %142 : vector<8x128xf32>
    %145 = math.tanh %144 : vector<8x128xf32>
    %cst_54 = arith.constant 1.000000e+00 : f32
    %146 = vector.broadcast %cst_54 : f32 to vector<8x128xf32>
    %147 = arith.addf %146, %145 : vector<8x128xf32>
    %cst_55 = arith.constant 5.000000e-01 : f32
    %148 = vector.broadcast %cst_55 : f32 to vector<8x128xf32>
    %149 = arith.mulf %148, %147 : vector<8x128xf32>
    %150 = arith.mulf %137, %149 : vector<8x128xf32>
    %151 = arith.truncf %150 : vector<8x128xf32> to vector<8x128xbf16>
    %c0_56 = arith.constant 0 : index
    %c0_57 = arith.constant 0 : index
    %c0_58 = arith.constant 0 : index
    %152 = vector.load %arg13[%c0_56, %c0_57, %c0_58] : memref<1x128x64xbf16, #tpu.memory_space<vmem>>, vector<1x128x64xbf16>
    %153 = vector.shape_cast %152 : vector<1x128x64xbf16> to vector<128x64xbf16>
    %cst_59 = arith.constant dense<0.000000e+00> : vector<8x64xf32>
    %154 = tpu.matmul %151, %153, %cst_59 {dimension_numbers = #tpu.dot_dimension_numbers<[1], [0], [0], [1], [0, 0, 1, 1], [], []>} : vector<8x128xbf16>, vector<128x64xbf16>, vector<8x64xf32> -> vector<8x64xf32>
    %c0_60 = arith.constant 0 : index
    %c0_61 = arith.constant 0 : index
    %c0_62 = arith.constant 0 : index
    %155 = vector.load %arg14[%c0_60, %c0_61, %c0_62] : memref<1x1x64xf32, #tpu.memory_space<vmem>>, vector<1x1x64xf32>
    %156 = vector.shape_cast %155 : vector<1x1x64xf32> to vector<1x64xf32>
    %157 = vector.broadcast %156 : vector<1x64xf32> to vector<8x64xf32>
    %158 = arith.addf %154, %157 : vector<8x64xf32>
    %159 = vector.shape_cast %158 : vector<8x64xf32> to vector<1x8x64xf32>
    %cst_63 = arith.constant 1.000000e+00 : f32
    %160 = vector.broadcast %cst_63 : f32 to vector<1x8x64xf32>
    %161 = arith.mulf %160, %159 : vector<1x8x64xf32>
    %162 = arith.addf %100, %161 : vector<1x8x64xf32>
    %c0_64 = arith.constant 0 : index
    %c0_65 = arith.constant 0 : index
    %c0_66 = arith.constant 0 : index
    %163 = vector.load %arg16[%c0_64, %c0_65, %c0_66] : memref<1x8x64xf32, #tpu.memory_space<vmem>>, vector<1x8x64xf32>
    tpu.vector_store %arg16[%c0_64, %c0_65, %c0_66], %162 {strides = array<i32>} : memref<1x8x64xf32, #tpu.memory_space<vmem>>, vector<1x8x64xf32>,
    %c0_i32_67 = arith.constant 0 : i32
    %164 = arith.cmpi eq, %arg1, %c0_i32_67 : i32
    %165 = arith.extui %164 : i1 to i32
    %c0_i32_68 = arith.constant 0 : i32
    %166 = arith.cmpi ne, %165, %c0_i32_68 : i32
    scf.if %166 {
      %167 = arith.truncf %162 : vector<1x8x64xf32> to vector<1x8x64xbf16>
      %c0_69 = arith.constant 0 : index
      %c0_70 = arith.constant 0 : index
      %c0_71 = arith.constant 0 : index
      %168 = vector.load %arg15[%c0_69, %c0_70, %c0_71] : memref<1x8x64xbf16, #tpu.memory_space<vmem>>, vector<1x8x64xbf16>
      tpu.vector_store %arg15[%c0_69, %c0_70, %c0_71], %167 {strides = array<i32>} : memref<1x8x64xbf16, #tpu.memory_space<vmem>>, vector<1x8x64xbf16>,
    } else {
    }
    return
  }
  func.func @transform_0(%arg0: i32, %arg1: i32) -> (i32, i32, i32) {
    %c0_i32 = arith.constant 0 : i32
    %c0_i32_0 = arith.constant 0 : i32
    %c0_i32_1 = arith.constant 0 : i32
    return %arg0, %c0_i32, %c0_i32_0 : i32, i32, i32
  }
  func.func @transform_1(%arg0: i32, %arg1: i32) -> (i32, i32, i32) {
    %c0_i32 = arith.constant 0 : i32
    %c0_i32_0 = arith.constant 0 : i32
    %c0_i32_1 = arith.constant 0 : i32
    return %arg1, %c0_i32, %c0_i32_0 : i32, i32, i32
  }
  func.func @transform_2(%arg0: i32, %arg1: i32) -> (i32, i32, i32) {
    %c0_i32 = arith.constant 0 : i32
    %c0_i32_0 = arith.constant 0 : i32
    %c0_i32_1 = arith.constant 0 : i32
    return %arg1, %c0_i32, %c0_i32_0 : i32, i32, i32
  }
  func.func @transform_3(%arg0: i32, %arg1: i32) -> (i32, i32, i32) {
    %c0_i32 = arith.constant 0 : i32
    %c0_i32_0 = arith.constant 0 : i32
    %c0_i32_1 = arith.constant 0 : i32
    return %arg1, %c0_i32, %c0_i32_0 : i32, i32, i32
  }
  func.func @transform_4(%arg0: i32, %arg1: i32) -> (i32, i32, i32) {
    %c0_i32 = arith.constant 0 : i32
    %c0_i32_0 = arith.constant 0 : i32
    %c0_i32_1 = arith.constant 0 : i32
    return %arg1, %c0_i32, %c0_i32_0 : i32, i32, i32
  }
  func.func @transform_5(%arg0: i32, %arg1: i32) -> (i32, i32, i32) {
    %c0_i32 = arith.constant 0 : i32
    %c0_i32_0 = arith.constant 0 : i32
    %c0_i32_1 = arith.constant 0 : i32
    return %arg1, %c0_i32, %c0_i32_0 : i32, i32, i32
  }
  func.func @transform_6(%arg0: i32, %arg1: i32) -> (i32, i32, i32) {
    %c0_i32 = arith.constant 0 : i32
    %c0_i32_0 = arith.constant 0 : i32
    %c0_i32_1 = arith.constant 0 : i32
    return %arg1, %c0_i32, %c0_i32_0 : i32, i32, i32
  }
  func.func @transform_7(%arg0: i32, %arg1: i32) -> (i32, i32, i32) {
    %c0_i32 = arith.constant 0 : i32
    %c0_i32_0 = arith.constant 0 : i32
    %c0_i32_1 = arith.constant 0 : i32
    return %arg1, %c0_i32, %c0_i32_0 : i32, i32, i32
  }
  func.func @transform_8(%arg0: i32, %arg1: i32) -> (i32, i32, i32) {
    %c0_i32 = arith.constant 0 : i32
    %c0_i32_0 = arith.constant 0 : i32
    %c0_i32_1 = arith.constant 0 : i32
    return %arg1, %c0_i32, %c0_i32_0 : i32, i32, i32
  }
  func.func @transform_9(%arg0: i32, %arg1: i32) -> (i32, i32, i32) {
    %c0_i32 = arith.constant 0 : i32
    %c0_i32_0 = arith.constant 0 : i32
    %c0_i32_1 = arith.constant 0 : i32
    return %arg1, %c0_i32, %c0_i32_0 : i32, i32, i32
  }
  func.func @transform_10(%arg0: i32, %arg1: i32) -> (i32, i32, i32) {
    %c0_i32 = arith.constant 0 : i32
    %c0_i32_0 = arith.constant 0 : i32
    %c0_i32_1 = arith.constant 0 : i32
    return %arg1, %c0_i32, %c0_i32_0 : i32, i32, i32
  }
  func.func @transform_11(%arg0: i32, %arg1: i32) -> (i32, i32, i32) {
    %c0_i32 = arith.constant 0 : i32
    %c0_i32_0 = arith.constant 0 : i32
    %c0_i32_1 = arith.constant 0 : i32
    return %arg1, %c0_i32, %c0_i32_0 : i32, i32, i32
  }
  func.func @transform_12(%arg0: i32, %arg1: i32) -> (i32, i32, i32) {
    %c0_i32 = arith.constant 0 : i32
    %c0_i32_0 = arith.constant 0 : i32
    %c0_i32_1 = arith.constant 0 : i32
    return %arg1, %c0_i32, %c0_i32_0 : i32, i32, i32
  }
  func.func @transform_13(%arg0: i32, %arg1: i32) -> (i32, i32, i32) {
    %c0_i32 = arith.constant 0 : i32
    %c0_i32_0 = arith.constant 0 : i32
    %c0_i32_1 = arith.constant 0 : i32
    return %arg0, %c0_i32, %c0_i32_0 : i32, i32, i32
  }
}

</mosaic_0001>

<bundles_post_ra>
// kernel: _lambda_.6
= control target key start
LH: loop header
LB: loop body
LE: loop exit
PB: predicated region body
PF: predicated region fallthrough
CT: control target
= control target key end

     0   :  { %s335_s1 = inlined_call_operand.vmem [shape: bf16[128,128], index: 1, kind: input, shape index: {}]   ;;  %s336_s0 = inlined_call_operand.vmem [shape: bf16[32,128], index: 0, kind: input, shape index: {}]   ;;  %s337_s2 = inlined_call_operand.vmem [shape: f32[1,128], index: 2, kind: input, shape index: {}]   ;;  %s338_s3 = inlined_call_operand.vmem [shape: bf16[32,128], index: 3, kind: output, shape index: {}]  }
   0x1   :  { %v266_v0 = vld [vmem:[%s335_s1] sm:$0xff]   ;;  %v267_v1 = vld [vmem:[%s335_s1 + $0x8] sm:$0xff]   ;;  %v268_v2 = vld [vmem:[%s335_s1 + $0x10] sm:$0xff]  }
   0x2   :  { %246 = vmatprep.subr.bf16.mxu0 %v266_v0  ;;  %v269_v3 = vld [vmem:[%s335_s1 + $0x18] sm:$0xff]   ;;  %v274_v4 = vld [vmem:[%s336_s0] sm:$0xff]   ;;  %v271_v6 = vld [vmem:[%s335_s1 + $0x28] sm:$0xff]  }
   0x3   :  { %247 = vmatpush3.bf16.msra.mxu0 %v266_v0  ;;  %262 = vmatprep.mubr.bf16.mxu0 %v274_v4  ;;  %v270_v5 = vld [vmem:[%s335_s1 + $0x20] sm:$0xff]   ;;  %v272_v7 = vld [vmem:[%s335_s1 + $0x30] sm:$0xff]   ;;  %v273_v8 = vld [vmem:[%s335_s1 + $0x38] sm:$0xff]  }
   0x4   :  { %248 = vmatprep.subr.bf16.mxu0 %v267_v1  ;;  %v275_v9 = vld [vmem:[%s336_s0 + $0x8] sm:$0xff]   ;;  %v216_v11 = vld [vmem:[%s337_s2] ss:$0 sm:$0xff] }
   0x7   :  { %249 = vmatpush3.bf16.msra.mxu0 %v267_v1 }
   0x8   :  { %250 = vmatprep.subr.bf16.mxu0 %v268_v2 }
   0xb   :  { %251 = vmatpush3.bf16.msra.mxu0 %v268_v2 }
   0xc   :  { %252 = vmatprep.subr.bf16.mxu0 %v269_v3 }
   0xf   :  { %253 = vmatpush3.bf16.msra.mxu0 %v269_v3 }
  0x10   :  { %254 = vmatprep.subr.bf16.mxu0 %v270_v5 }
  0x13   :  { %255 = vmatpush3.bf16.msra.mxu0 %v270_v5 }
  0x14   :  { %256 = vmatprep.subr.bf16.mxu0 %v271_v6 }
  0x17   :  { %257 = vmatpush3.bf16.msra.mxu0 %v271_v6 }
  0x18   :  { %258 = vmatprep.subr.bf16.mxu0 %v272_v7 }
  0x1b   :  { %259 = vmatpush3.bf16.msra.mxu0 %v272_v7 }
  0x1c   :  { %260 = vmatprep.subr.bf16.mxu0 %v273_v8 }
  0x1f   :  { %261 = vmatpush3.bf16.msra.mxu0 %v273_v8 }
  0x22   :  { %263 = vmatmul.mubr.bf16.vlgmr.msra.gmra.mrb[0].mxu0 %v275_v9 }
  0xf5   :  { %v264_v10 = vpop.f32.mrb[0].mxu0 }
  0xf6   :  { %v141_v12 = vpop.f32.mrb[1].mxu0  ;;  %v180_v14 = vadd.f32 %v264_v10, %v216_v11 }
  0xf7   :  { %v265_v13 = vpop.f32.mrb[2].mxu0  ;;  %v178_v17 = vadd.f32 %v216_v11, %v141_v12 }
  0xf8   :  { %v181_v15 = vadd.f32 %v265_v13, %v216_v11  ;;  %v144_v16 = vpop.f32.mrb[3].mxu0 }
  0xf9   :  { %v179_v18 = vadd.f32 %v216_v11, %v144_v16 }
  0xfa   :  { %v233_v19 = vpack.c.bf16 %v181_v15, %v180_v14 }
  0xfb   :  { %v228_v20 = vpack.c.bf16 %v179_v18, %v178_v17 }
  0xfc   :  { %235 = vst [vmem:[%s338_s3 + $0x8] sm:$0xff] %v233_v19  }
  0xfd   :  { %229 = vst [vmem:[%s338_s3] sm:$0xff] %v228_v20  }

// kernel: _lambda_.8
= control target key start
LH: loop header
LB: loop body
LE: loop exit
PB: predicated region body
PF: predicated region fallthrough
CT: control target
= control target key end

     0   :  { %v434_v1 = vmov 0.0   ;;  %vm435_vm0 = vmmov 0   ;;  %s540_s1 = inlined_call_operand.vmem [shape: bf16[384,128], index: 1, kind: input, shape index: {}]   ;;  %s541_s0 = inlined_call_operand.vmem [shape: bf16[8,384], index: 0, kind: input, shape index: {}]   ;;  %s542_s2 = inlined_call_operand.vmem [shape: f32[1,128], index: 2, kind: input, shape index: {}]   ;;  %s543_s3 = inlined_call_operand.vmem [shape: bf16[8,128], index: 3, kind: output, shape index: {}]  }
   0x1   :  { %v407_v0 = vld [vmem:[%s540_s1 + $0x40] sm:$0xff]   ;;  %385 = vmatprep.subr.bf16.mxu1 %v434_v1  ;;  %401 = vmatprep.mubr.msk.bf16.mxu1 %vm435_vm0, %v434_v1  ;;  %v410_v4 = vld [vmem:[%s540_s1 + $0x48] sm:$0xff]   ;;  %v413_v7 = vld [vmem:[%s540_s1 + $0x50] sm:$0xff]  }
   0x2   :  { %v408_v2 = vld [vmem:[%s540_s1] sm:$0xff]   ;;  %354 = vmatprep.subr.bf16.mxu0 %v407_v0  ;;  %v411_v5 = vld [vmem:[%s540_s1 + $0x8] sm:$0xff]   ;;  %v414_v8 = vld [vmem:[%s540_s1 + $0x10] sm:$0xff]  }
   0x3   :  { %v409_v3 = vld [vmem:[%s540_s1 + $0x80] sm:$0xff]   ;;  %355 = vmatpush3.bf16.msra.mxu0 %v408_v2  ;;  %v412_v6 = vld [vmem:[%s540_s1 + $0x88] sm:$0xff]   ;;  %v415_v9 = vld [vmem:[%s540_s1 + $0x90] sm:$0xff]  }
   0x4   :  { %386 = vmatpush3.bf16.msra.mxu1 %v409_v3  ;;  %356 = vmatprep.subr.bf16.mxu0 %v410_v4  ;;  %v416_v10 = vld [vmem:[%s540_s1 + $0x58] sm:$0xff]   ;;  %v419_v13 = vld [vmem:[%s540_s1 + $0x60] sm:$0xff]   ;;  %v422_v16 = vld [vmem:[%s540_s1 + $0x68] sm:$0xff]  }
   0x5   :  { %387 = vmatprep.subr.bf16.mxu1 %v434_v1  ;;  %v417_v11 = vld [vmem:[%s540_s1 + $0x18] sm:$0xff]   ;;  %v420_v14 = vld [vmem:[%s540_s1 + $0x20] sm:$0xff]   ;;  %v423_v17 = vld [vmem:[%s540_s1 + $0x28] sm:$0xff]  }
   0x6   :  { %v418_v12 = vld [vmem:[%s540_s1 + $0x98] sm:$0xff]   ;;  %v421_v15 = vld [vmem:[%s540_s1 + $0xa0] sm:$0xff]   ;;  %v424_v18 = vld [vmem:[%s540_s1 + $0xa8] sm:$0xff]  }
   0x7   :  { %357 = vmatpush3.bf16.msra.mxu0 %v411_v5  ;;  %v425_v19 = vld [vmem:[%s540_s1 + $0x70] sm:$0xff]   ;;  %v428_v22 = vld [vmem:[%s540_s1 + $0x78] sm:$0xff]   ;;  %v21_v23 = vld [vmem:[%s541_s0] sm:$0xff] }
   0x8   :  { %388 = vmatpush3.bf16.msra.mxu1 %v412_v6  ;;  %358 = vmatprep.subr.bf16.mxu0 %v413_v7  ;;  %v426_v20 = vld [vmem:[%s540_s1 + $0x30] sm:$0xff]   ;;  %v327_v24 = vcombine.high %v21_v23, %v21_v23  ;;  %v429_v25 = vld [vmem:[%s540_s1 + $0x38] sm:$0xff]   ;;  %v326_v27 = vcombine.low %v21_v23, %v21_v23  ;;  %v433_v28 = vld [vmem:[%s541_s0 + $0x8] ss:$0 sps:$4 sm:$0xff]  }
   0x9   :  { %389 = vmatprep.subr.bf16.mxu1 %v434_v1  ;;  %v427_v21 = vld [vmem:[%s540_s1 + $0xb0] sm:$0xff]   ;;  %v430_v26 = vld [vmem:[%s540_s1 + $0xb8] sm:$0xff]   ;;  %v353_v35 = vld [vmem:[%s542_s2] ss:$0 sm:$0xff] }
   0xa   :  { %258 = vmatprep.mubr.bf16.mxu0 %v327_v24 }
   0xb   :  { %359 = vmatpush3.bf16.msra.mxu0 %v414_v8 }
   0xc   :  { %390 = vmatpush3.bf16.msra.mxu1 %v415_v9  ;;  %360 = vmatprep.subr.bf16.mxu0 %v416_v10 }
   0xd   :  { %391 = vmatprep.subr.bf16.mxu1 %v434_v1 }
   0xf   :  { %361 = vmatpush3.bf16.msra.mxu0 %v417_v11 }
  0x10   :  { %392 = vmatpush3.bf16.msra.mxu1 %v418_v12  ;;  %362 = vmatprep.subr.bf16.mxu0 %v419_v13 }
  0x11   :  { %393 = vmatprep.subr.bf16.mxu1 %v434_v1 }
  0x13   :  { %363 = vmatpush3.bf16.msra.mxu0 %v420_v14 }
  0x14   :  { %394 = vmatpush3.bf16.msra.mxu1 %v421_v15  ;;  %364 = vmatprep.subr.bf16.mxu0 %v422_v16 }
  0x15   :  { %395 = vmatprep.subr.bf16.mxu1 %v434_v1 }
  0x17   :  { %365 = vmatpush3.bf16.msra.mxu0 %v423_v17 }
  0x18   :  { %396 = vmatpush3.bf16.msra.mxu1 %v424_v18  ;;  %366 = vmatprep.subr.bf16.mxu0 %v425_v19 }
  0x19   :  { %397 = vmatprep.subr.bf16.mxu1 %v434_v1 }
  0x1b   :  { %367 = vmatpush3.bf16.msra.mxu0 %v426_v20 }
  0x1c   :  { %398 = vmatpush3.bf16.msra.mxu1 %v427_v21  ;;  %368 = vmatprep.subr.bf16.mxu0 %v428_v22 }
  0x1d   :  { %399 = vmatprep.subr.bf16.mxu1 %v434_v1 }
  0x1f   :  { %369 = vmatpush3.bf16.msra.mxu0 %v429_v25 }
  0x20   :  { %400 = vmatpush3.bf16.msra.mxu1 %v430_v26 }
  0x22   :  { %259 = vmatmul.mubr.bf16.vlgmr.msra.gmra.mrb[0].mxu0 %v326_v27 }
  0x23   :  { %402 = vmatmul.mubr.bf16.vlgmr.msra.gmra.mrb[0].mxu1 %v433_v28 }
  0xf5   :  { %v370_v29 = vpop.f32.mrb[0].mxu0 }
  0xf6   :  { %v300_v30 = vpop.f32.mrb[0].mxu1  ;;  %v371_v31 = vpop.f32.mrb[1].mxu0 }
  0xf7   :  { %v372_v32 = vadd.f32 %v371_v31, %v370_v29  ;;  %v403_v33 = vpop.f32.mrb[1].mxu1  ;;  %v373_v34 = vpop.f32.mrb[2].mxu0 }
  0xf8   :  { %v303_v36 = vpop.f32.mrb[2].mxu1  ;;  %v374_v37 = vpop.f32.mrb[3].mxu0 }
  0xf9   :  { %v301_v38 = vadd.f32 %v372_v32, %v300_v30  ;;  %v404_v39 = vpop.f32.mrb[3].mxu1 }
  0xfb   :  { %v319_v40 = vadd.f32 %v353_v35, %v301_v38 }
  0xfd   :  { %v320_v41 = vpack.c.bf16 %v319_v40, %v319_v40 }
  0xff   :  { %321 = vst [vmem:[%s543_s3] sm:$0xf] %v320_v41 }

// kernel: _lambda_.7
= control target key start
LH: loop header
LB: loop body
LE: loop exit
PB: predicated region body
PF: predicated region fallthrough
CT: control target
= control target key end

     0   :  { %s2114_s25 = smov 0   ;;  %s2116_s26 = smov 0   ;;  %s2325_s0 = inlined_call_operand.vmem [shape: bf16[2,24,32], index: 0, kind: input, shape index: {}]   ;;  %s2326_s1 = inlined_call_operand.vmem [shape: f32[1,1,32], index: 1, kind: input, shape index: {}, may-alias: {1,7}]   ;;  %s2327_s2 = inlined_call_operand.vmem [shape: f32[1,1,32], index: 2, kind: input, shape index: {}, may-alias: {2,6,8,12}]   ;;  %s2328_s3 = inlined_call_operand.vmem [shape: bf16[1,32,96], index: 3, kind: input, shape index: {}]   ;;  %s2329_s4 = inlined_call_operand.vmem [shape: f32[1,1,96], index: 4, kind: input, shape index: {}]   ;;  %s2330_s5 = inlined_call_operand.vmem [shape: bf16[1,32,32], index: 5, kind: input, shape index: {}]   ;;  %s2331_s6 = inlined_call_operand.vmem [shape: f32[1,1,32], index: 6, kind: input, shape index: {}, may-alias: {2,6,8,12}]   ;;  %s2332_s7 = inlined_call_operand.vmem [shape: f32[1,1,32], index: 7, kind: input, shape index: {}, may-alias: {1,7}]   ;;  %s2333_s8 = inlined_call_operand.vmem [shape: f32[1,1,32], index: 8, kind: input, shape index: {}, may-alias: {2,6,8,12}]   ;;  %s2334_s9 = inlined_call_operand.vmem [shape: bf16[1,32,64], index: 9, kind: input, shape index: {}]   ;;  %s2335_s10 = inlined_call_operand.vmem [shape: f32[1,1,64], index: 10, kind: input, shape index: {}]   ;;  %s2336_s11 = inlined_call_operand.vmem [shape: bf16[1,64,32], index: 11, kind: input, shape index: {}]   ;;  %s2337_s12 = inlined_call_operand.vmem [shape: f32[1,1,32], index: 12, kind: input, shape index: {}, may-alias: {2,6,8,12}]   ;;  %s2338_s13 = inlined_call_operand.vmem [shape: bf16[2,24,32], index: 13, kind: output, shape index: {}]  }
   0x1   :  { %s2118_s27 = smov 0  }
   0x2 LB: > { %s35_s28 = sadd.s32 1, %s2034_s26  ;;  %p1773_p0 = scmp.ge.s32.totalorder %s2038_s27, 1  ;;  %s2038_s27 = sphi %s2118_s27, %s23_s27   ;;  %s2034_s26 = sphi %s2116_s26, %s2340_s26   ;;  %s2030_s25 = sphi %s2114_s25, %s2339_s25  }
   0x3   : > { %p37_p1 = scmp.ge.s32.totalorder %s35_s28, 2  ;;  %p503_p2 = scmp.lt.s32.totalorder %s2038_s27, 3 }
   0x5   : > { %s2342_s28 = smov (%p37_p1, %s35_s28), 0  ;;  %p504_p3 = pnand %p1773_p0, %p503_p2 }
   0x6   : > { %p591_p4 = scmp.lt.s32.totalorder (!%p504_p3), %s2030_s25, 1  ;;  %vm656_vm0 = vcmask (!%p504_p3), 261120   ;;  %v1964_v26 = vld [vmem:[%s2328_s3] sm:$0xff] (!%p504_p3)   ;;  %v1965_v27 = vld [vmem:[%s2328_s3 + $0x8] sm:$0xff] (!%p504_p3)   ;;  %s2040_s14 = smov (!%p504_p3), 112   ;;  %vm818_vm1 = vcmask (!%p504_p3), 130048  }
   0x7   : > { %507 = sbr.rel (%p504_p3) target bundleno = 2702 (0xa8e), region = 72  ;;  %1856 = vmatprep.subr.bf16.mxu0 (!%p504_p3), %v1964_v26  ;;  %v1776_v39 = vld [vmem:[%s2326_s1] ss:$0 sm:$0xff] (!%p504_p3)  ;;  %vm957_vm3 = vcmask (!%p504_p3), 195584   ;;  %s2042_s16 = smov (!%p504_p3), 64   ;;  %vm1039_vm4 = vcmask (!%p504_p3), 1043456  }
   0x8   : > { %1857 = vmatpush3.bf16.msra.mxu0 (!%p504_p3), %v1964_v26  ;;  %v1777_v45 = vld [vmem:[%s2327_s2] ss:$0 sm:$0xff] (!%p504_p3)  ;;  %s2043_s21 = smov (!%p504_p3), 16   ;;  %vm1456_vm5 = vcmask (!%p504_p3), 523264   ;;  %vm1533_vm6 = vcmask (!%p504_p3), 257024  }
   0x9   : > { %1858 = vmatprep.subr.bf16.mxu0 (!%p504_p3), %v1965_v27  ;;  %v1778_v53 = vld [vmem:[%s2329_s4] ss:$0 sm:$0xff] (!%p504_p3) }
   0xc   : > { %1859 = vmatpush3.bf16.msra.mxu0 (!%p504_p3), %v1965_v27 }
   0xe   : > { %s2344_s25 = smov (!%p591_p4, %s2030_s25), 1 }
   0xf   : > { %s1930_s29 = smul.u32 12, %s2344_s25 }
  0x11   : > { %s595_s15 = scalar_lea.vmem %s2325_s0, %s1930_s29  ;;  %s644_s22 = scalar_lea.vmem %s2338_s13, %s1930_s29 }
  0x12   : > { %v1819_v0 = vld [vmem:[%s595_s15] sm:$0xff]   ;;  %v652_v1 = vld [vmem:[%s595_s15 + $0x8] sm:$0xf]  ;;  %s2041_s15 = smov 96  }
  0x13   : > { %v1820_v2 = vunpack.c.l.bf16 %v1819_v0  ;;  %v655_v3 = vunpack.c.l.bf16 %v652_v1  ;;  %v1821_v4 = vunpack.c.h.bf16 %v1819_v0 }
  0x15   : > { %657 = vst.msk [vmem:[#allocation2] sm:$0xff] %vm656_vm0, %v1820_v2  ;;  %659 = vst.msk [vmem:[#allocation2 + $0x10] sm:$0xff] %vm656_vm0, %v655_v3 }
  0x16   : > { %658 = vst.msk [vmem:[#allocation2 + $0x8] sm:$0xff] %vm656_vm0, %v1821_v4 }
  0x1c   : > { %v2143_v5 = vld [vmem:[#allocation2] sm:$0xff]  ;;  %v2145_v6 = vld [vmem:[#allocation2 + $0x10] sm:$0xff] }
  0x1d   : > { %v2147_v7 = vld [vmem:[#allocation2 + $0x8] sm:$0xff]  ;;  %v664_v8 = vsel %vm656_vm0, %v2143_v5, 0.0  ;;  %v670_v9 = vsel %vm656_vm0, %v2145_v6, 0.0 }
  0x1e   : > { %665 = vadd.xlane.f32.xlu0 %v664_v8  ;;  %671 = vadd.xlane.f32.xlu1 %v670_v9  ;;  %v667_v10 = vsel %vm656_vm0, %v2147_v7, 0.0 }
  0x22   : > { %668 = vadd.xlane.f32.xlu0 %v667_v10 }
  0xab   : > { %v666_v11 = vpop.xlane.xlu0 %665  ;;  %v672_v12 = vpop.xlane.xlu1 %671 }
  0xac   : > { %v674_v13 = vmul.f32 0.03125, %v666_v11  ;;  %v676_v14 = vmul.f32 0.03125, %v672_v12  ;;  %v811_v12 = vlaneseq }
  0xae   : > { %v677_v15 = vsub.f32 %v2143_v5, %v674_v13  ;;  %v679_v16 = vsub.f32 %v2145_v6, %v676_v14  ;;  %v812_v13 = vand.u32 127, %v811_v12 }
  0xaf   : > { %v669_v17 = vpop.xlane.xlu0 %668 }
  0xb0   : > { %v675_v18 = vmul.f32 0.03125, %v669_v17  ;;  %v680_v19 = vmul.f32 %v677_v15, %v677_v15  ;;  %v682_v20 = vmul.f32 %v679_v16, %v679_v16  ;;  %vm813_vm2 = vcmp.lt.s32.totalorder %v812_v13, 18 }
  0xb2   : > { %v678_v21 = vsub.f32 %v2147_v7, %v675_v18  ;;  %v683_v22 = vsel %vm656_vm0, %v680_v19, 0.0  ;;  %v689_v23 = vsel %vm656_vm0, %v682_v20, 0.0 }
  0xb3   : > { %684 = vadd.xlane.f32.xlu1 %v683_v22 }
  0xb4   : > { %v681_v24 = vmul.f32 %v678_v21, %v678_v21 }
  0xb6   : > { %v686_v25 = vsel %vm656_vm0, %v681_v24, 0.0 }
  0xb7   : > { %690 = vadd.xlane.f32.xlu1 %v689_v23  ;;  %687 = vadd.xlane.f32.xlu0 %v686_v25 }
 0x140   : > { %v685_v28 = vpop.xlane.xlu1 %684 }
 0x141   : > { %v692_v29 = vmul.f32 0.03125, %v685_v28 }
 0x143   : > { %v695_v30 = vadd.f32 1e-06, %v692_v29 }
 0x144   : > { %v691_v31 = vpop.xlane.xlu1 %690  ;;  %v688_v32 = vpop.xlane.xlu0 %687 }
 0x145   : > { %1974 = vrsqrt.f32 %v695_v30  ;;  %v694_v33 = vmul.f32 0.03125, %v691_v31  ;;  %v693_v34 = vmul.f32 0.03125, %v688_v32 }
 0x147   : > { %v697_v35 = vadd.f32 1e-06, %v694_v33  ;;  %v696_v36 = vadd.f32 1e-06, %v693_v34 }
 0x149   : > { %1976 = vrsqrt.f32 %v697_v35 }
 0x14a   : > { %1978 = vrsqrt.f32 %v696_v36 }
 0x14f   : > { %v1975_v37 = vpop.eup %1974 }
 0x150   : > { %v701_v38 = vmul.f32 %v1975_v37, %v677_v15 }
 0x152   : > { %v711_v44 = vmul.f32 %v1776_v39, %v701_v38 }
 0x153   : > { %v1977_v40 = vpop.eup %1976 }
 0x154   : > { %v1979_v41 = vpop.eup %1978  ;;  %v703_v42 = vmul.f32 %v1977_v40, %v679_v16  ;;  %v721_v49 = vadd.f32 %v1777_v45, %v711_v44 }
 0x155   : > { %v702_v43 = vmul.f32 %v1979_v41, %v678_v21 }
 0x156   : > { %v713_v46 = vmul.f32 %v1776_v39, %v703_v42 }
 0x157   : > { %v712_v47 = vmul.f32 %v1776_v39, %v702_v43 }
 0x158   : > { %v723_v48 = vadd.f32 %v1777_v45, %v713_v46 }
 0x159   : > { %v722_v50 = vadd.f32 %v1777_v45, %v712_v47 }
 0x15a   : > { %v725_v51 = vpack.c.bf16 %v723_v48, %v723_v48 }
 0x15b   : > { %v724_v52 = vpack.c.bf16 %v722_v50, %v721_v49 }
 0x15d   : > { %1860 = vmatprep.mubr.msk.bf16.mxu0 %vm656_vm0, %v724_v52 }
 0x15e   : > { %1861 = vmatmul.mubr.msk.bf16.vlgmr.msra.gmra.mrb[0].mxu0 %vm656_vm0, %v725_v51 }
 0x231   : > { %v1862_v54 = vpop.f32.mrb[0].mxu0 }
 0x232   : > { %v798_v55 = vadd.f32 %v1862_v54, %v1778_v53  ;;  %v789_v56 = vpop.f32.mrb[1].mxu0 }
 0x233   : > { %v1863_v57 = vpop.f32.mrb[2].mxu0  ;;  %v790_v60 = vadd.f32 %v1778_v53, %v789_v56 }
 0x234   : > { %v2178_v58 = vpack.c.bf16 %v798_v55, %v798_v55  ;;  %v792_v59 = vpop.f32.mrb[3].mxu0 }
 0x235   : > { %v793_v61 = vadd.f32 %v1778_v53, %v792_v59 }
 0x236   : > { %809 = vrot.lane.b32.xlu1 %v2178_v58, %s2040_s14 }
 0x237   : > { %v2181_v62 = vpack.c.bf16 %v793_v61, %v790_v60 }
 0x239   : > { %807 = vrot.lane.b32.xlu0 %v2181_v62, %s2040_s14  ;;  %1868 = vmatprep.mubr.msk.bf16.mxu1 %vm818_vm1, %v2181_v62 }
 0x23d   : > { %814 = vrot.lane.b32.xlu0 %v2181_v62, %s2041_s15 }
 0x2a8   : > { %v2192_v0 = vpop.permute.xlu1 %809 }
 0x2ab   : > { %v2187_v63 = vpop.permute.xlu0 %807 }
 0x2ac   : > { %1876 = vmatprep.mubr.msk.bf16.mxu0 %vm818_vm1, %v2187_v63  ;;  %879 = vrot.lane.b32.xlu1 %v2187_v63, %s2041_s15 }
 0x2af   : > { %v815_v1 = vpop.permute.xlu0 %814 }
 0x2b0   : > { %1924 = vmatprep.subr.msk.bf16.mxu1 %vm818_vm1, %v815_v1  ;;  %881 = vrot.lane.b32.xlu1 %v2192_v0, %s2041_s15  ;;  %v826_v2 = vsel %vm818_vm1, %v815_v1, 0 }
 0x2b1   : > { %1865 = vmatpush3.bf16.xpose.msra.mxu1 %v826_v2 }
 0x2b4   : > { %816 = vrot.lane.b32.xlu1 %v2178_v58, %s2041_s15 }
 0x31e   : > { %v880_v3 = vpop.permute.xlu1 %879 }
 0x31f   : > { %v890_v4 = vsel %vm818_vm1, %v880_v3, 0  ;;  %1926 = vmatprep.subr.msk.bf16.mxu0 %vm818_vm1, %v880_v3 }
 0x320   : > { %1873 = vmatpush3.bf16.xpose.msra.mxu0 %v890_v4 }
 0x322   : > { %v882_v8 = vpop.permute.xlu1 %881 }
 0x323   : > { %1927 = vmatprep.subr.msk.bf16.mxu0 %vm818_vm1, %v882_v8  ;;  %v893_v10 = vsel %vm818_vm1, %v882_v8, 0 }
 0x326   : > { %v817_v9 = vpop.permute.xlu1 %816 }
 0x327   : > { %1925 = vmatprep.subr.msk.bf16.mxu1 %vm818_vm1, %v817_v9  ;;  %v829_v11 = vsel %vm818_vm1, %v817_v9, 0 }
 0x328   : > { %1867 = vmatpush3.bf16.xpose.msra.mxu1 %v829_v11  ;;  %1875 = vmatpush3.bf16.xpose.msra.mxu0 %v893_v10 }
 0x32f   : > { %1869 = vmatmul.mubr.msk.bf16.vlgmr.msra.gmra.mrb[0].mxu1 %vm818_vm1, %v2178_v58  ;;  %1877 = vmatmul.mubr.msk.bf16.vlgmr.msra.gmra.mrb[4].mxu0 %vm818_vm1, %v2192_v0 }
 0x402   : > { %v1870_v14 = vpop.f32.mrb[0].mxu1  ;;  %v1878_v15 = vpop.f32.mrb[4].mxu0 }
 0x403   : > { %v865_v16 = vpop.f32.mrb[1].mxu1  ;;  %v929_v17 = vpop.f32.mrb[5].mxu0  ;;  %v948_v18 = vmul.f32 0.25, %v1878_v15  ;;  %v945_v24 = vmul.f32 0.25, %v1870_v14 }
 0x404   : > { %v946_v19 = vmul.f32 0.25, %v929_v17  ;;  %v1871_v20 = vpop.f32.mrb[2].mxu1  ;;  %v1879_v21 = vpop.f32.mrb[6].mxu0  ;;  %v943_v28 = vmul.f32 0.25, %v865_v16 }
 0x405   : > { %v868_v22 = vpop.f32.mrb[3].mxu1  ;;  %v932_v23 = vpop.f32.mrb[7].mxu0  ;;  %v956_v30 = vsel %vm813_vm2, %v948_v18, -1e+30  ;;  %v953_v32 = vsel %vm813_vm2, %v945_v24, -1e+30 }
 0x406   : > { %v947_v25 = vmul.f32 0.25, %v932_v23  ;;  %v954_v26 = vsel %vm813_vm2, %v946_v19, -1e+30  ;;  %v973_v33 = vsel %vm957_vm3, %v956_v30, -inf  ;;  %v944_v34 = vmul.f32 0.25, %v868_v22 }
 0x407   : > { %v967_v27 = vsel %vm957_vm3, %v954_v26, -inf  ;;  %v951_v35 = vsel %vm813_vm2, %v943_v28, -1e+30  ;;  %v964_v36 = vsel %vm957_vm3, %v953_v32, -inf }
 0x408   : > { %968 = vmax.xlane.f32.xlu0 %v967_v27  ;;  %v955_v29 = vsel %vm813_vm2, %v947_v25, -1e+30  ;;  %v958_v37 = vsel %vm957_vm3, %v951_v35, -inf  ;;  %v952_v38 = vsel %vm813_vm2, %v944_v34, -1e+30 }
 0x409   : > { %v970_v31 = vsel %vm957_vm3, %v955_v29, -inf  ;;  %v961_v39 = vsel %vm957_vm3, %v952_v38, -inf }
 0x40a   : > { %971 = vmax.xlane.f32.xlu1 %v970_v31 }
 0x40c   : > { %974 = vmax.xlane.f32.xlu0 %v973_v33 }
 0x40e   : > { %965 = vmax.xlane.f32.xlu1 %v964_v36 }
 0x410   : > { %959 = vmax.xlane.f32.xlu0 %v958_v37  ;;  %v1966_v37 = vld [vmem:[%s2330_s5] sm:$0xff]  }
 0x414   : > { %962 = vmax.xlane.f32.xlu0 %v961_v39 }
 0x495   : > { %v969_v40 = vpop.xlane.xlu0 %968 }
 0x496   : > { %v979_v42 = vsub.f32 %v954_v26, %v969_v40 }
 0x497   : > { %v972_v41 = vpop.xlane.xlu1 %971 }
 0x498   : > { %v980_v43 = vsub.f32 %v955_v29, %v972_v41  ;;  %v988_v47 = vmul.f32 1.442695, %v979_v42 }
 0x499   : > { %v975_v44 = vpop.xlane.xlu0 %974 }
 0x49a   : > { %v990_v45 = vmul.f32 1.442695, %v980_v43  ;;  %v981_v46 = vsub.f32 %v956_v30, %v975_v44 }
 0x49b   : > { %v966_v57 = vpop.xlane.xlu1 %965 }
 0x49c   : > { %1980 = vpow2.f32 %v990_v45  ;;  %v992_v48 = vmul.f32 1.442695, %v981_v46  ;;  %v978_v60 = vsub.f32 %v953_v32, %v966_v57  ;;  %v1791_v57 = vld [vmem:[%s2331_s6] ss:$0 sm:$0xff] }
 0x49d   : > { %v960_v55 = vpop.xlane.xlu0 %959 }
 0x49e   : > { %1982 = vpow2.f32 %v992_v48  ;;  %v976_v56 = vsub.f32 %v951_v35, %v960_v55  ;;  %v986_v2 = vmul.f32 1.442695, %v978_v60 }
 0x49f   : > { %1984 = vpow2.f32 %v988_v47 }
 0x4a0   : > { %v982_v61 = vmul.f32 1.442695, %v976_v56 }
 0x4a1   : > { %v963_v59 = vpop.xlane.xlu0 %962 }
 0x4a2   : > { %v977_v1 = vsub.f32 %v952_v38, %v963_v59  ;;  %1986 = vpow2.f32 %v982_v61  ;;  %v1967_v38 = vld [vmem:[%s2330_s5 + $0x8] sm:$0xff]  }
 0x4a3   : > { %1988 = vpow2.f32 %v986_v2 }
 0x4a4   : > { %v984_v3 = vmul.f32 1.442695, %v977_v1 }
 0x4a6   : > { %v1981_v49 = vpop.eup %1980  ;;  %1990 = vpow2.f32 %v984_v3 }
 0x4a7   : > { %v1006_v50 = vsel %vm957_vm3, %v1981_v49, 0.0 }
 0x4a8   : > { %v1983_v51 = vpop.eup %1982  ;;  %1007 = vadd.xlane.f32.xlu1 %v1006_v50 }
 0x4a9   : > { %v1009_v52 = vsel %vm957_vm3, %v1983_v51, 0.0  ;;  %v1985_v53 = vpop.eup %1984 }
 0x4aa   : > { %1010 = vadd.xlane.f32.xlu0 %v1009_v52  ;;  %v1003_v54 = vsel %vm957_vm3, %v1985_v53, 0.0 }
 0x4ac   : > { %v1987_v4 = vpop.eup %1986 }
 0x4ad   : > { %v994_v8 = vsel %vm957_vm3, %v1987_v4, 0.0  ;;  %v1989_v9 = vpop.eup %1988 }
 0x4ae   : > { %1004 = vadd.xlane.f32.xlu0 %v1003_v54  ;;  %v1000_v10 = vsel %vm957_vm3, %v1989_v9, 0.0 }
 0x4b9   : > { %1091 = vrot.lane.b32.xlu1 %v2187_v63, %s2042_s16  ;;  %v1991_v63 = vpop.eup %1990 }
 0x4c4   : > { %1093 = vrot.lane.b32.xlu0 %v2192_v0, %s2042_s16  ;;  %v997_v0 = vsel %vm957_vm3, %v1991_v63, 0.0 }
 0x4dd   : > { %995 = vadd.xlane.f32.xlu1 %v994_v8 }
 0x4e1   : > { %1001 = vadd.xlane.f32.xlu1 %v1000_v10 }
 0x4e3   : > { %998 = vadd.xlane.f32.xlu0 %v997_v0 }
 0x4f2   : > { %1030 = vrot.lane.b32.xlu1 %v2178_v58, %s2042_s16 }
 0x4f9   : > { %1028 = vrot.lane.b32.xlu0 %v2181_v62, %s2042_s16 }
 0x535   : > { %v1008_v11 = vpop.xlane.xlu1 %1007 }
 0x537   : > { %v1011_v12 = vpop.xlane.xlu0 %1010 }
 0x538   : > { %1992 = vrcp.f32 %v1011_v12 }
 0x539   : > { %v1092_v13 = vpop.permute.xlu1 %1091  ;;  %1994 = vrcp.f32 %v1008_v11 }
 0x53a   : > { %1888 = vmatprep.subr.bf16.mxu0 %v1092_v13 }
 0x53b   : > { %1889 = vmatpush3.bf16.msra.mxu0 %v1092_v13  ;;  %v1005_v14 = vpop.xlane.xlu0 %1004 }
 0x53c   : > { %1996 = vrcp.f32 %v1005_v14 }
 0x53f   : > { %v1094_v15 = vpop.permute.xlu0 %1093 }
 0x540   : > { %v1103_v16 = vsel %vm1039_vm4, %v1094_v15, 0  ;;  %1929 = vmatprep.subr.msk.bf16.mxu0 %vm1039_vm4, %v1094_v15 }
 0x541   : > { %1891 = vmatpush3.bf16.msra.mxu0 %v1103_v16 }
 0x542   : > { %v1993_v17 = vpop.eup %1992 }
 0x543   : > { %v1995_v58 = vpop.eup %1994  ;;  %v1023_v62 = vmul.f32 %v1993_v17, %v1983_v51 }
 0x544   : > { %v1022_v20 = vmul.f32 %v1995_v58, %v1981_v49 }
 0x545   : > { %v1027_v22 = vpack.c.bf16 %v1023_v62, %v1023_v62 }
 0x546   : > { %v1997_v18 = vpop.eup %1996 }
 0x547   : > { %v1021_v19 = vmul.f32 %v1997_v18, %v1985_v53 }
 0x549   : > { %v1026_v21 = vpack.c.bf16 %v1022_v20, %v1021_v19 }
 0x54b   : > { %1892 = vmatprep.mubr.msk.bf16.mxu0 %vm957_vm3, %v1026_v21 }
 0x54c   : > { %1893 = vmatmul.mubr.msk.bf16.vlgmr.msra.gmra.mrb[8].mxu0 %vm957_vm3, %v1027_v22  ;;  %v1968_v22 = vld [vmem:[%s2334_s9] sm:$0xff]  }
 0x54d   : > { %1904 = vmatprep.subr.bf16.mxu0 %v1968_v22 }
 0x54e   : > { %1905 = vmatpush3.bf16.msra.mxu0 %v1968_v22 }
 0x56a   : > { %v996_v23 = vpop.xlane.xlu1 %995 }
 0x56b   : > { %1998 = vrcp.f32 %v996_v23  ;;  %v1969_v23 = vld [vmem:[%s2334_s9 + $0x8] sm:$0xff]  }
 0x56c   : > { %1906 = vmatprep.subr.bf16.mxu0 %v1969_v23 }
 0x56d   : > { %1907 = vmatpush3.bf16.msra.mxu0 %v1969_v23 }
 0x56e   : > { %v1002_v24 = vpop.xlane.xlu1 %1001 }
 0x56f   : > { %2000 = vrcp.f32 %v1002_v24 }
 0x570   : > { %v999_v25 = vpop.xlane.xlu0 %998 }
 0x571   : > { %2002 = vrcp.f32 %v999_v25 }
 0x572   : > { %v1031_v27 = vpop.permute.xlu1 %1030 }
 0x573   : > { %v1041_v30 = vsel %vm1039_vm4, %v1031_v27, 0 }
 0x574   : > { %v1029_v26 = vpop.permute.xlu0 %1028 }
 0x575   : > { %1880 = vmatprep.subr.bf16.mxu1 %v1029_v26  ;;  %v1999_v28 = vpop.eup %1998 }
 0x576   : > { %1881 = vmatpush3.bf16.msra.mxu1 %v1029_v26  ;;  %v1018_v33 = vmul.f32 %v1999_v28, %v1987_v4 }
 0x577   : > { %1928 = vmatprep.subr.msk.bf16.mxu1 %vm1039_vm4, %v1031_v27 }
 0x579   : > { %v2001_v29 = vpop.eup %2000 }
 0x57a   : > { %1883 = vmatpush3.bf16.msra.mxu1 %v1041_v30  ;;  %v1020_v32 = vmul.f32 %v2001_v29, %v1989_v9 }
 0x57b   : > { %v2003_v31 = vpop.eup %2002  ;;  %1896 = vmatprep.subr.bf16.mxu1 %v1966_v37 }
 0x57c   : > { %v1019_v34 = vmul.f32 %v2003_v31, %v1991_v63  ;;  %v1025_v36 = vpack.c.bf16 %v1020_v32, %v1020_v32 }
 0x57e   : > { %v1024_v35 = vpack.c.bf16 %v1019_v34, %v1018_v33 }
 0x580   : > { %1884 = vmatprep.mubr.msk.bf16.mxu1 %vm957_vm3, %v1024_v35  ;;  %v1796_v35 = vld [vmem:[%s2332_s7] ss:$0 sm:$0xff] }
 0x581   : > { %1885 = vmatmul.mubr.msk.bf16.vlgmr.msra.gmra.mrb[4].mxu1 %vm957_vm3, %v1025_v36 }
 0x582   : > { %1897 = vmatpush3.bf16.msra.mxu1 %v1966_v37 }
 0x583   : > { %1898 = vmatprep.subr.bf16.mxu1 %v1967_v38 }
 0x586   : > { %1899 = vmatpush3.bf16.msra.mxu1 %v1967_v38 }
 0x61f   : > { %v1894_v39 = vpop.f32.mrb[8].mxu0 }
 0x620   : > { %v1139_v40 = vpop.f32.mrb[9].mxu0 }
 0x621   : > { %v1895_v41 = vpop.f32.mrb[10].mxu0 }
 0x622   : > { %v1142_v42 = vpop.f32.mrb[11].mxu0 }
 0x623   : > { %v1959_v43 = vpack.i.bf16 %v1142_v42, %v1139_v40  ;;  %v1797_v42 = vld [vmem:[%s2333_s8] ss:$0 sm:$0xff] }
 0x625   : > { %1960 = vrot.lane.b32.xlu1 %v1959_v43, %s2043_s21 }
 0x629   : > { %1160 = vrot.lane.b32.xlu1 %v1894_v39, %s2043_s21 }
 0x654   : > { %v1886_v44 = vpop.f32.mrb[4].mxu1 }
 0x655   : > { %v1077_v45 = vpop.f32.mrb[5].mxu1 }
 0x656   : > { %v1887_v46 = vpop.f32.mrb[6].mxu1 }
 0x657   : > { %v1080_v47 = vpop.f32.mrb[7].mxu1 }
 0x697   : > { %v1961_v48 = vpop.permute.xlu1 %1960 }
 0x698   : > { %v1963_v49 = vunpack.i.h.bf16 %v1961_v48  ;;  %v1962_v50 = vunpack.i.l.bf16 %v1961_v48 }
 0x69a   : > { %v1165_v51 = vsel %vm818_vm1, %v1077_v45, %v1962_v50  ;;  %v1166_v52 = vsel %vm818_vm1, %v1080_v47, %v1963_v49  ;;  %v1970_v49 = vld [vmem:[%s2336_s11] sm:$0xff]   ;;  %v1971_v50 = vld [vmem:[%s2336_s11 + $0x8] sm:$0xff]  }
 0x69b   : > { %v1168_v53 = vpack.c.bf16 %v1166_v52, %v1165_v51  ;;  %v1161_v54 = vpop.permute.xlu1 %1160  ;;  %1912 = vmatprep.subr.bf16.mxu1 %v1970_v49  ;;  %v1972_v51 = vld [vmem:[%s2336_s11 + $0x10] sm:$0xff]   ;;  %v1973_v52 = vld [vmem:[%s2336_s11 + $0x18] sm:$0xff]  }
 0x69c   : > { %v1167_v55 = vsel %vm818_vm1, %v1886_v44, %v1161_v54 }
 0x69d   : > { %v1169_v56 = vpack.c.bf16 %v1167_v55, %v1167_v55  ;;  %1900 = vmatprep.mubr.msk.bf16.mxu1 %vm656_vm0, %v1168_v53  ;;  %v1798_v53 = vld [vmem:[%s2335_s10] ss:$0 sm:$0xff] }
 0x69f   : > { %1901 = vmatmul.mubr.msk.bf16.vlgmr.msra.gmra.mrb[8].mxu1 %vm656_vm0, %v1169_v56 }
 0x6a0   : > { %1913 = vmatpush3.bf16.msra.mxu1 %v1970_v49 }
 0x6a1   : > { %1914 = vmatprep.subr.bf16.mxu1 %v1971_v50 }
 0x6a4   : > { %1915 = vmatpush3.bf16.msra.mxu1 %v1971_v50 }
 0x6a5   : > { %1916 = vmatprep.subr.bf16.mxu1 %v1972_v51 }
 0x6a8   : > { %1917 = vmatpush3.bf16.msra.mxu1 %v1972_v51 }
 0x6a9   : > { %1918 = vmatprep.subr.bf16.mxu1 %v1973_v52 }
 0x6ac   : > { %1919 = vmatpush3.bf16.msra.mxu1 %v1973_v52 }
 0x772   : > { %v1902_v59 = vpop.f32.mrb[8].mxu1 }
 0x773   : > { %v1233_v60 = vpop.f32.mrb[9].mxu1  ;;  %v1242_v61 = vadd.f32 %v1902_v59, %v1791_v57 }
 0x774   : > { %v1234_v1 = vadd.f32 %v1791_v57, %v1233_v60  ;;  %v1903_v2 = vpop.f32.mrb[10].mxu1 }
 0x775   : > { %v1236_v3 = vpop.f32.mrb[11].mxu1  ;;  %v2256_v9 = vadd.f32 %v1242_v61, %v2145_v6 }
 0x776   : > { %v2253_v4 = vadd.f32 %v1234_v1, %v2143_v5  ;;  %v1237_v8 = vadd.f32 %v1791_v57, %v1236_v3 }
 0x777   : > { %v1256_v11 = vsel %vm656_vm0, %v2256_v9, 0.0 }
 0x778   : > { %v2259_v63 = vadd.f32 %v1237_v8, %v2147_v7  ;;  %v1250_v10 = vsel %vm656_vm0, %v2253_v4, 0.0 }
 0x779   : > { %1251 = vadd.xlane.f32.xlu0 %v1250_v10 }
 0x77a   : > { %v1253_v0 = vsel %vm656_vm0, %v2259_v63, 0.0 }
 0x77b   : > { %1254 = vadd.xlane.f32.xlu1 %v1253_v0 }
 0x77d   : > { %1257 = vadd.xlane.f32.xlu0 %v1256_v11 }
 0x806   : > { %v1252_v5 = vpop.xlane.xlu0 %1251 }
 0x807   : > { %v1259_v12 = vmul.f32 0.03125, %v1252_v5 }
 0x808   : > { %v1255_v13 = vpop.xlane.xlu1 %1254 }
 0x809   : > { %v1262_v6 = vsub.f32 %v2253_v4, %v1259_v12  ;;  %v1260_v14 = vmul.f32 0.03125, %v1255_v13 }
 0x80a   : > { %v1258_v7 = vpop.xlane.xlu0 %1257 }
 0x80b   : > { %v1263_v15 = vsub.f32 %v2259_v63, %v1260_v14  ;;  %v1261_v16 = vmul.f32 0.03125, %v1258_v7  ;;  %v1265_v17 = vmul.f32 %v1262_v6, %v1262_v6 }
 0x80d   : > { %v1264_v58 = vsub.f32 %v2256_v9, %v1261_v16  ;;  %v1268_v18 = vsel %vm656_vm0, %v1265_v17, 0.0  ;;  %v1266_v62 = vmul.f32 %v1263_v15, %v1263_v15 }
 0x80e   : > { %1269 = vadd.xlane.f32.xlu0 %v1268_v18 }
 0x80f   : > { %v1267_v19 = vmul.f32 %v1264_v58, %v1264_v58  ;;  %v1271_v20 = vsel %vm656_vm0, %v1266_v62, 0.0 }
 0x811   : > { %v1274_v21 = vsel %vm656_vm0, %v1267_v19, 0.0 }
 0x812   : > { %1272 = vadd.xlane.f32.xlu0 %v1271_v20  ;;  %1275 = vadd.xlane.f32.xlu1 %v1274_v21 }
 0x89b   : > { %v1270_v24 = vpop.xlane.xlu0 %1269 }
 0x89c   : > { %v1277_v25 = vmul.f32 0.03125, %v1270_v24 }
 0x89e   : > { %v1280_v26 = vadd.f32 1e-06, %v1277_v25 }
 0x89f   : > { %v1276_v27 = vpop.xlane.xlu1 %1275  ;;  %v1273_v28 = vpop.xlane.xlu0 %1272 }
 0x8a0   : > { %2004 = vrsqrt.f32 %v1280_v26  ;;  %v1279_v29 = vmul.f32 0.03125, %v1276_v27  ;;  %v1278_v30 = vmul.f32 0.03125, %v1273_v28 }
 0x8a2   : > { %v1282_v31 = vadd.f32 1e-06, %v1279_v29  ;;  %v1281_v32 = vadd.f32 1e-06, %v1278_v30  ;;  %v1803_v29 = vld [vmem:[%s2337_s12] ss:$0 sm:$0xff] }
 0x8a4   : > { %2006 = vrsqrt.f32 %v1282_v31 }
 0x8a5   : > { %2008 = vrsqrt.f32 %v1281_v32 }
 0x8aa   : > { %v2005_v33 = vpop.eup %2004 }
 0x8ab   : > { %v1286_v34 = vmul.f32 %v2005_v33, %v1262_v6 }
 0x8ad   : > { %v1296_v40 = vmul.f32 %v1796_v35, %v1286_v34 }
 0x8ae   : > { %v2007_v36 = vpop.eup %2006 }
 0x8af   : > { %v2009_v37 = vpop.eup %2008  ;;  %v1288_v38 = vmul.f32 %v2007_v36, %v1264_v58  ;;  %v1306_v45 = vadd.f32 %v1797_v42, %v1296_v40 }
 0x8b0   : > { %v1287_v39 = vmul.f32 %v2009_v37, %v1263_v15 }
 0x8b1   : > { %v1298_v41 = vmul.f32 %v1796_v35, %v1288_v38 }
 0x8b2   : > { %v1297_v43 = vmul.f32 %v1796_v35, %v1287_v39 }
 0x8b3   : > { %v1308_v44 = vadd.f32 %v1797_v42, %v1298_v41 }
 0x8b4   : > { %v1307_v46 = vadd.f32 %v1797_v42, %v1297_v43 }
 0x8b5   : > { %v1310_v47 = vpack.c.bf16 %v1308_v44, %v1308_v44 }
 0x8b6   : > { %v1309_v48 = vpack.c.bf16 %v1307_v46, %v1306_v45 }
 0x8b8   : > { %1908 = vmatprep.mubr.msk.bf16.mxu0 %vm656_vm0, %v1309_v48 }
 0x8b9   : > { %1909 = vmatmul.mubr.msk.bf16.vlgmr.msra.gmra.mrb[12].mxu0 %vm656_vm0, %v1310_v47 }
 0x98c   : > { %v1910_v54 = vpop.f32.mrb[12].mxu0 }
 0x98d   : > { %v1383_v55 = vadd.f32 %v1910_v54, %v1798_v53  ;;  %v1374_v56 = vpop.f32.mrb[13].mxu0 }
 0x98e   : > { %v1375_v57 = vadd.f32 %v1798_v53, %v1374_v56  ;;  %v1911_v59 = vpop.f32.mrb[14].mxu0 }
 0x98f   : > { %v1390_v60 = vmul.f32 %v1383_v55, %v1383_v55  ;;  %v1377_v61 = vpop.f32.mrb[15].mxu0 }
 0x990   : > { %v1388_v1 = vmul.f32 %v1375_v57, %v1375_v57  ;;  %v1378_v2 = vadd.f32 %v1798_v53, %v1377_v61 }
 0x991   : > { %v1393_v3 = vmul.f32 %v1390_v60, %v1383_v55 }
 0x992   : > { %v1391_v8 = vmul.f32 %v1388_v1, %v1375_v57  ;;  %v1389_v10 = vmul.f32 %v1378_v2, %v1378_v2 }
 0x993   : > { %v1396_v0 = vmul.f32 0.044715, %v1393_v3 }
 0x994   : > { %v1394_v11 = vmul.f32 0.044715, %v1391_v8  ;;  %v1392_v5 = vmul.f32 %v1389_v10, %v1378_v2 }
 0x995   : > { %v1399_v12 = vadd.f32 %v1396_v0, %v1383_v55 }
 0x996   : > { %v1397_v13 = vadd.f32 %v1394_v11, %v1375_v57  ;;  %v1395_v6 = vmul.f32 0.044715, %v1392_v5 }
 0x997   : > { %v1402_v14 = vmul.f32 0.7978846, %v1399_v12 }
 0x998   : > { %v1400_v7 = vmul.f32 0.7978846, %v1397_v13  ;;  %v1398_v15 = vadd.f32 %v1395_v6, %v1378_v2 }
 0x999   : > { %2010 = vtanh.f32 %v1402_v14 }
 0x99a   : > { %2012 = vtanh.f32 %v1400_v7  ;;  %v1401_v16 = vmul.f32 0.7978846, %v1398_v15 }
 0x99c   : > { %2014 = vtanh.f32 %v1401_v16 }
 0x9a3   : > { %v2011_v17 = vpop.eup %2010 }
 0x9a4   : > { %v2013_v58 = vpop.eup %2012  ;;  %v1408_v18 = vadd.f32 1.0, %v2011_v17 }
 0x9a5   : > { %v1406_v62 = vadd.f32 1.0, %v2013_v58 }
 0x9a6   : > { %v2015_v19 = vpop.eup %2014  ;;  %v1411_v20 = vmul.f32 0.5, %v1408_v18 }
 0x9a7   : > { %v1409_v21 = vmul.f32 0.5, %v1406_v62  ;;  %v1407_v22 = vadd.f32 1.0, %v2015_v19 }
 0x9a8   : > { %v1414_v24 = vmul.f32 %v1411_v20, %v1383_v55 }
 0x9a9   : > { %v1410_v23 = vmul.f32 0.5, %v1407_v22  ;;  %v1412_v25 = vmul.f32 %v1409_v21, %v1375_v57 }
 0x9aa   : > { %v1416_v28 = vpack.c.bf16 %v1414_v24, %v1414_v24 }
 0x9ab   : > { %v1413_v26 = vmul.f32 %v1410_v23, %v1378_v2 }
 0x9ad   : > { %v1415_v27 = vpack.c.bf16 %v1413_v26, %v1412_v25 }
 0x9af   : > { %1920 = vmatprep.mubr.msk.bf16.mxu1 %vm1456_vm5, %v1415_v27 }
 0x9b0   : > { %1921 = vmatmul.mubr.msk.bf16.vlgmr.msra.gmra.mrb[12].mxu1 %vm1456_vm5, %v1416_v28 }
 0xa83   : > { %v1922_v30 = vpop.f32.mrb[12].mxu1 }
 0xa84   : > { %v1506_v31 = vadd.f32 %v1922_v30, %v1803_v29  ;;  %v1497_v32 = vpop.f32.mrb[13].mxu1 }
 0xa85   : > { %v1498_v33 = vadd.f32 %v1803_v29, %v1497_v32  ;;  %v1923_v34 = vpop.f32.mrb[14].mxu1 }
 0xa86   : > { %v1513_v35 = vadd.f32 %v1506_v31, %v2256_v9  ;;  %v1500_v36 = vpop.f32.mrb[15].mxu1 }
 0xa87   : > { %v1511_v37 = vadd.f32 %v1498_v33, %v2253_v4  ;;  %v1501_v38 = vadd.f32 %v1803_v29, %v1500_v36 }
 0xa88   : > { %1516 = vst.msk [vmem:[#allocation2 + $0x10] sm:$0xff] %vm656_vm0, %v1513_v35  ;;  %v1817_v39 = vpack.c.bf16 %v1513_v35, %v1513_v35 }
 0xa89   : > { %1514 = vst.msk [vmem:[#allocation2] sm:$0xff] %vm656_vm0, %v1511_v37  ;;  %v1815_v40 = vpack.c.bf16 %v1511_v37, %v1511_v37  ;;  %v1512_v41 = vadd.f32 %v1501_v38, %v2259_v63 }
 0xa8a   : > { %1536 = vst.msk [vmem:[%s644_s22 + $0x8] sm:$0xf] %vm1533_vm6, %v1817_v39 }
 0xa8b   : > { %1534 = vst.msk [vmem:[%s644_s22] sm:$0xf] %vm1533_vm6, %v1815_v40  ;;  %v1816_v9 = vpack.c.bf16 %v1512_v41, %v1512_v41 }
 0xa8c   : > { %1515 = vst.msk [vmem:[#allocation2 + $0x8] sm:$0xff] %vm656_vm0, %v1512_v41 }
 0xa8d   : > { %1535 = vst.msk [vmem:[%s644_s22 + $0x4] sm:$0xf] %vm1533_vm6, %v1816_v9 }
 0xa8e PF: > { %s23_s27 = sadd.s32 1, %s2038_s27   ;;  %s2339_s25 = smov %s2034_s26 }
 0xa8f   : > { %p20_p5 = scmp.ge.s32.totalorder %s23_s27, 4   ;;  %s2340_s26 = smov %s2342_s28 }
 0xa91   :  { %22 = sbr.rel (!%p20_p5) target bundleno = 2 (0x2), region = 146 }

// kernel: _lambda_.9
= control target key start
LH: loop header
LB: loop body
LE: loop exit
PB: predicated region body
PF: predicated region fallthrough
CT: control target
= control target key end

     0   :  { %v194_v0 = vmov 0.0   ;;  %vm195_vm0 = vmmov 0   ;;  %s249_s1 = inlined_call_operand.vmem [shape: bf16[128,128], index: 1, kind: input, shape index: {}]   ;;  %s250_s0 = inlined_call_operand.vmem [shape: bf16[8,128], index: 0, kind: input, shape index: {}]   ;;  %s251_s2 = inlined_call_operand.vmem [shape: f32[1,128], index: 2, kind: input, shape index: {}]   ;;  %s252_s3 = inlined_call_operand.vmem [shape: bf16[8,128], index: 3, kind: output, shape index: {}]  }
   0x1   :  { %164 = vmatprep.subr.bf16.mxu0 %v194_v0  ;;  %v186_v1 = vld [vmem:[%s249_s1] sm:$0xff]   ;;  %180 = vmatprep.mubr.msk.bf16.mxu0 %vm195_vm0, %v194_v0  ;;  %v187_v2 = vld [vmem:[%s249_s1 + $0x8] sm:$0xff]   ;;  %v188_v3 = vld [vmem:[%s249_s1 + $0x10] sm:$0xff]  }
   0x2   :  { %165 = vmatpush3.bf16.msra.mxu0 %v186_v1  ;;  %v189_v4 = vld [vmem:[%s249_s1 + $0x18] sm:$0xff]   ;;  %v190_v5 = vld [vmem:[%s249_s1 + $0x20] sm:$0xff]   ;;  %v191_v6 = vld [vmem:[%s249_s1 + $0x28] sm:$0xff]  }
   0x3   :  { %166 = vmatprep.subr.bf16.mxu0 %v194_v0  ;;  %v192_v7 = vld [vmem:[%s249_s1 + $0x30] sm:$0xff]   ;;  %v193_v8 = vld [vmem:[%s249_s1 + $0x38] sm:$0xff]   ;;  %v21_v9 = vld [vmem:[%s250_s0] sm:$0xf] }
   0x4   :  { %v154_v10 = vld [vmem:[%s251_s2] ss:$0 sm:$0xff] }
   0x6   :  { %167 = vmatpush3.bf16.msra.mxu0 %v187_v2 }
   0x7   :  { %168 = vmatprep.subr.bf16.mxu0 %v194_v0 }
   0xa   :  { %169 = vmatpush3.bf16.msra.mxu0 %v188_v3 }
   0xb   :  { %170 = vmatprep.subr.bf16.mxu0 %v194_v0 }
   0xe   :  { %171 = vmatpush3.bf16.msra.mxu0 %v189_v4 }
   0xf   :  { %172 = vmatprep.subr.bf16.mxu0 %v194_v0 }
  0x12   :  { %173 = vmatpush3.bf16.msra.mxu0 %v190_v5 }
  0x13   :  { %174 = vmatprep.subr.bf16.mxu0 %v194_v0 }
  0x16   :  { %175 = vmatpush3.bf16.msra.mxu0 %v191_v6 }
  0x17   :  { %176 = vmatprep.subr.bf16.mxu0 %v194_v0 }
  0x1a   :  { %177 = vmatpush3.bf16.msra.mxu0 %v192_v7 }
  0x1b   :  { %178 = vmatprep.subr.bf16.mxu0 %v194_v0 }
  0x1e   :  { %179 = vmatpush3.bf16.msra.mxu0 %v193_v8 }
  0x21   :  { %181 = vmatmul.mubr.bf16.vlgmr.msra.gmra.mrb[0].mxu0 %v21_v9 }
  0xf4   :  { %v120_v11 = vpop.f32.mrb[0].mxu0 }
  0xf5   :  { %v139_v12 = vadd.f32 %v154_v10, %v120_v11  ;;  %v182_v13 = vpop.f32.mrb[1].mxu0 }
  0xf6   :  { %v123_v14 = vpop.f32.mrb[2].mxu0 }
  0xf7   :  { %v140_v15 = vpack.c.bf16 %v139_v12, %v139_v12  ;;  %v183_v16 = vpop.f32.mrb[3].mxu0 }
  0xf9   :  { %141 = vst [vmem:[%s252_s3] sm:$0xf] %v140_v15 }

// kernel: _lambda_.11
= control target key start
LH: loop header
LB: loop body
LE: loop exit
PB: predicated region body
PF: predicated region fallthrough
CT: control target
= control target key end

     0   :  { %vm24_vm0 = vcmask 519168   ;;  %s291_s0 = inlined_call_operand.vmem [shape: bf16[4,64], index: 0, kind: input, shape index: {}]   ;;  %s292_s1 = inlined_call_operand.vmem [shape: f32[1,64], index: 1, kind: input, shape index: {}]   ;;  %s293_s2 = inlined_call_operand.vmem [shape: f32[1,64], index: 2, kind: input, shape index: {}]   ;;  %s294_s3 = inlined_call_operand.vmem [shape: bf16[64,16], index: 3, kind: input, shape index: {}]   ;;  %s295_s4 = inlined_call_operand.vmem [shape: f32[1,16], index: 4, kind: input, shape index: {}]   ;;  %s296_s5 = inlined_call_operand.hbm [shape: f32[2,8], index: 5, kind: output, shape index: {}]  }
   0x1   :  { %v22_v0 = vld [vmem:[%s291_s0] sm:$0x3] }
   0x2   :  { %v23_v1 = vunpack.c.l.bf16 %v22_v0 }
   0x4   :  { %v25_v2 = vsel %vm24_vm0, %v23_v1, 0.0 }
   0x5   :  { %10 = vsyncpa [#allocation3], 0  ;;  %26 = vadd.xlane.f32.xlu0 %v25_v2  ;;  %v191_v8 = vld [vmem:[%s294_s3] sm:$0xff]   ;;  %v221_v9 = vmov 0.0   ;;  %v192_v10 = vld [vmem:[%s294_s3 + $0x8] sm:$0xff]   ;;  %vm222_vm1 = vmmov 0  }
   0x6   :  { %175 = vmatprep.subr.bf16.mxu0 %v221_v9  ;;  %v193_v11 = vld [vmem:[%s294_s3 + $0x10] sm:$0xff]   ;;  %v194_v12 = vld [vmem:[%s294_s3 + $0x18] sm:$0xff]   ;;  %183 = vmatprep.mubr.msk.bf16.mxu0 %vm222_vm1, %v221_v9  ;;  %v162_v17 = vld [vmem:[%s292_s1] ss:$0 sm:$0xff]  ;;  %vm95_vm2 = vcmask 523264   ;;  %s223_s1 = smov 120  }
   0x7   :  { %176 = vmatpush3.bf16.msra.mxu0 %v191_v8  ;;  %v163_v19 = vld [vmem:[%s293_s2] ss:$0 sm:$0xff]  ;;  %s224_s7 = smov [#allocation2]   ;;  %vm146_vm3 = vcmask 58368  }
   0x8   :  { %177 = vmatprep.subr.bf16.mxu0 %v221_v9  ;;  %v164_v23 = vld [vmem:[%s295_s4] ss:$0 sm:$0xff]  ;;  %s154_s2 = sshll.u32 %s224_s7, 4  ;;  %s155_s2 = int_to_ptr.vmem [resolvable:$true] %s154_s2 }
   0x9   :  { %s197_s8 = scalar_lea.vmem %s155_s2, 32  ;;  %p202_p1 = scmp.lt.s32.totalorder %s155_s2, %s155_s2 }
   0xa   :  { %p198_p0 = scmp.ne.s32.totalorder %s155_s2, %s197_s8  ;;  %p203_p2 = scmp.lt.s32.totalorder %s197_s8, %s197_s8 }
   0xb   :  { %178 = vmatpush3.bf16.msra.mxu0 %v192_v10 }
   0xc   :  { %179 = vmatprep.subr.bf16.mxu0 %v221_v9  ;;  %p204_p3 = por %p203_p2, %p202_p1 }
   0xe   :  { %p205_p4 = pnand %p204_p3, %p198_p0 }
   0xf   :  { %180 = vmatpush3.bf16.msra.mxu0 %v193_v11 }
  0x10   :  { %181 = vmatprep.subr.bf16.mxu0 %v221_v9 }
  0x13   :  { %182 = vmatpush3.bf16.msra.mxu0 %v194_v12 }
  0x92   :  { %v27_v3 = vpop.xlane.xlu0 %26 }
  0x93   :  { %v29_v4 = vmul.f32 0.015625, %v27_v3 }
  0x95   :  { %v30_v5 = vsub.f32 %v23_v1, %v29_v4 }
  0x97   :  { %v31_v6 = vmul.f32 %v30_v5, %v30_v5 }
  0x99   :  { %v32_v7 = vsel %vm24_vm0, %v31_v6, 0.0 }
  0x9a   :  { %33 = vadd.xlane.f32.xlu0 %v32_v7 }
 0x127   :  { %v34_v13 = vpop.xlane.xlu0 %33 }
 0x128   :  { %v35_v14 = vmul.f32 0.015625, %v34_v13 }
 0x12a   :  { %v36_v15 = vadd.f32 1e-06, %v35_v14 }
 0x12c   :  { %195 = vrsqrt.f32 %v36_v15 }
 0x136   :  { %v196_v16 = vpop.eup %195 }
 0x137   :  { %v38_v18 = vmul.f32 %v196_v16, %v30_v5 }
 0x139   :  { %v46_v20 = vmul.f32 %v162_v17, %v38_v18 }
 0x13b   :  { %v54_v21 = vadd.f32 %v163_v19, %v46_v20 }
 0x13d   :  { %v55_v22 = vpack.c.bf16 %v54_v21, %v54_v21 }
 0x13f   :  { %184 = vmatmul.mubr.msk.bf16.vlgmr.msra.gmra.mrb[0].mxu0 %vm95_vm2, %v55_v22 }
 0x212   :  { %v133_v24 = vpop.f32.mrb[0].mxu0 }
 0x213   :  { %v134_v25 = vadd.f32 %v164_v23, %v133_v24  ;;  %v185_v26 = vpop.f32.mrb[1].mxu0 }
 0x214   :  { %v136_v27 = vpop.f32.mrb[2].mxu0 }
 0x215   :  { %v186_v28 = vpop.f32.mrb[3].mxu0  ;;  %v140_v29 = vrot.slane %v134_v25, 2 }
 0x217   :  { %141 = vrot.lane.b32.xlu1 %v140_v29, %s223_s1 }
 0x289   :  { %v142_v30 = vpop.permute.xlu1 %141 }
 0x28a   :  { %v144_v31 = vadd.f32 %v142_v30, %v134_v25 }
 0x28c   :  { %v145_v32 = vmul.f32 0.5, %v144_v31 }
 0x28e   :  { %147 = vst.msk [vmem:[#allocation2] sm:$0x3] %vm146_vm3, %v145_v32 }
 0x28f   :  { %208 = shalt.err (!%p205_p4)
}
 0x290   :  { %s209_s10 = scalar_lea.hbm %s296_s5, 32 }
 0x291   :  { %p210_p5 = scmp.ne.s32.totalorder %s296_s5, %s209_s10  ;;  %p213_p6 = scmp.lt.u32.totalorder %s209_s10, %s296_s5 }
 0x293   :  { %p215_p7 = pnand %p213_p6, %p210_p5 }
 0x295   :  { %218 = shalt.err (!%p215_p7)
}
 0x296   :  { %157 = dma.vmem_to_hbm [thread:$0]  %s155_s2, 32, %s296_s5, [#allocation3]  }
 0x297   :  { %219 = dma.done.wait [#allocation3], 32  }
 0x298   :  { %220 = vsyncadd [#allocation3], 4294967264 }
 0x299   :  { %161 = vsyncpa [#allocation3], 1 }

// kernel: _lambda_.10
= control target key start
LH: loop header
LB: loop body
LE: loop exit
PB: predicated region body
PF: predicated region fallthrough
CT: control target
= control target key end

     0   :  { %s2186_s25 = smov 0   ;;  %s2188_s26 = smov 0   ;;  %s2430_s0 = inlined_call_operand.vmem [shape: bf16[2,8,64], index: 0, kind: input, shape index: {}]   ;;  %s2431_s1 = inlined_call_operand.vmem [shape: f32[1,1,64], index: 1, kind: input, shape index: {}, may-alias: {1,7}]   ;;  %s2432_s2 = inlined_call_operand.vmem [shape: f32[1,1,64], index: 2, kind: input, shape index: {}, may-alias: {2,6,8,12}]   ;;  %s2433_s3 = inlined_call_operand.vmem [shape: bf16[1,64,192], index: 3, kind: input, shape index: {}]   ;;  %s2434_s4 = inlined_call_operand.vmem [shape: f32[1,1,192], index: 4, kind: input, shape index: {}]   ;;  %s2435_s5 = inlined_call_operand.vmem [shape: bf16[1,64,64], index: 5, kind: input, shape index: {}]   ;;  %s2436_s6 = inlined_call_operand.vmem [shape: f32[1,1,64], index: 6, kind: input, shape index: {}, may-alias: {2,6,8,12}]   ;;  %s2437_s7 = inlined_call_operand.vmem [shape: f32[1,1,64], index: 7, kind: input, shape index: {}, may-alias: {1,7}]   ;;  %s2438_s8 = inlined_call_operand.vmem [shape: f32[1,1,64], index: 8, kind: input, shape index: {}, may-alias: {2,6,8,12}]   ;;  %s2439_s9 = inlined_call_operand.vmem [shape: bf16[1,64,128], index: 9, kind: input, shape index: {}]   ;;  %s2440_s10 = inlined_call_operand.vmem [shape: f32[1,1,128], index: 10, kind: input, shape index: {}]   ;;  %s2441_s11 = inlined_call_operand.vmem [shape: bf16[1,128,64], index: 11, kind: input, shape index: {}]   ;;  %s2442_s12 = inlined_call_operand.vmem [shape: f32[1,1,64], index: 12, kind: input, shape index: {}, may-alias: {2,6,8,12}]   ;;  %s2443_s13 = inlined_call_operand.vmem [shape: bf16[2,8,64], index: 13, kind: output, shape index: {}]  }
   0x1   :  { %s2190_s27 = smov 0  }
   0x2 LB: > { %s35_s28 = sadd.s32 1, %s2100_s26  ;;  %p1824_p0 = scmp.ge.s32.totalorder %s2104_s27, 1  ;;  %s2104_s27 = sphi %s2190_s27, %s23_s27   ;;  %s2100_s26 = sphi %s2188_s26, %s2445_s26   ;;  %s2096_s25 = sphi %s2186_s25, %s2444_s25  }
   0x3   : > { %p37_p1 = scmp.ge.s32.totalorder %s35_s28, 2  ;;  %p503_p2 = scmp.lt.s32.totalorder %s2104_s27, 3 }
   0x5   : > { %s2447_s28 = smov (%p37_p1, %s35_s28), 0  ;;  %p504_p3 = pnand %p1824_p0, %p503_p2 }
   0x6   : > { %p590_p4 = scmp.lt.s32.totalorder (!%p504_p3), %s2096_s25, 1  ;;  %vm650_vm0 = vcmask (!%p504_p3), 523264   ;;  %v2032_v9 = vld [vmem:[%s2433_s3 + $0x4] ss:$8 sps:$4 sm:$0xff] (!%p504_p3)   ;;  %v2034_v10 = vld [vmem:[%s2433_s3] ss:$8 sps:$4 sm:$0xff] (!%p504_p3)   ;;  %v695_v28 = vlaneseq (!%p504_p3) }
   0x7   : > { %507 = sbr.rel (%p504_p3) target bundleno = 2659 (0xa63), region = 72  ;;  %v2035_v11 = vld [vmem:[%s2433_s3 + $0x14] ss:$8 sps:$4 sm:$0xff] (!%p504_p3)   ;;  %748 = vmatprep.subr.bf16.mxu1 (!%p504_p3), %v2032_v9  ;;  %v2037_v12 = vld [vmem:[%s2433_s3 + $0x10] ss:$8 sps:$4 sm:$0xff] (!%p504_p3)   ;;  %v2106_v13 = vmov (!%p504_p3), 0  }
   0x8   : > { %749 = vmatpush1.bf16.msra.mxu1 (!%p504_p3), %v2034_v10  ;;  %780 = vmatprep.mubr.bf16.mxu1 (!%p504_p3), %v2106_v13  ;;  %v2038_v14 = vld [vmem:[%s2433_s3 + $0x24] ss:$8 sps:$4 sm:$0xff] (!%p504_p3)   ;;  %v2040_v15 = vld [vmem:[%s2433_s3 + $0x20] ss:$8 sps:$4 sm:$0xff] (!%p504_p3)   ;;  %v2041_v16 = vld [vmem:[%s2433_s3 + $0x34] ss:$8 sps:$4 sm:$0xff] (!%p504_p3)  }
   0x9   : > { %750 = vmatprep.subr.bf16.mxu1 (!%p504_p3), %v2035_v11  ;;  %v2043_v17 = vld [vmem:[%s2433_s3 + $0x30] ss:$8 sps:$4 sm:$0xff] (!%p504_p3)   ;;  %v1827_v22 = vld [vmem:[%s2431_s1] ss:$0 sm:$0xff] (!%p504_p3)  ;;  %v696_v29 = vshrl.u32 (!%p504_p3), %v695_v28, 7  ;;  %v2107_v34 = vmov (!%p504_p3), 0.0  }
   0xa   : > { %v1828_v24 = vld [vmem:[%s2432_s2] ss:$0 sm:$0xff] (!%p504_p3)  ;;  %1918 = vmatprep.subr.bf16.mxu0 (!%p504_p3), %v2107_v34  ;;  %vm2108_vm1 = vmmov (!%p504_p3), 0   ;;  %s2109_s14 = smov (!%p504_p3), 80   ;;  %s2111_s16 = smov (!%p504_p3), 96   ;;  %vm810_vm2 = vcmask (!%p504_p3), 130048  }
   0xb   : > { %v697_v30 = vsub.s32 (!%p504_p3), 0, %v696_v29  ;;  %v693_v31 = vld [vmem:[%s2434_s4] sm:$0x3] (!%p504_p3)  ;;  %1920 = vmatprep.mubr.msk.bf16.mxu0 (!%p504_p3), %vm2108_vm1, %v2107_v34  ;;  %s2112_s17 = smov (!%p504_p3), 64   ;;  %v701_v45 = vsub.s32 (!%p504_p3), 1, %v696_v29  ;;  %vm1063_vm3 = vcmask (!%p504_p3), 1043456  }
   0xc   : > { %751 = vmatpush1.bf16.msra.mxu1 (!%p504_p3), %v2037_v12  ;;  %v806_v56 = vand.u32 (!%p504_p3), 127, %v695_v28  ;;  %vm1011_vm5 = vcmask (!%p504_p3), 64512   ;;  %vm1258_vm6 = vcmask (!%p504_p3), 261120   ;;  %vm1260_vm7 = vcmask (!%p504_p3), 392192  }
   0xd   : > { %752 = vmatprep.subr.bf16.mxu1 (!%p504_p3), %v2038_v14  ;;  %v698_v32 = vrot.slane (!%p504_p3), %v693_v31, %v697_v30  ;;  %v702_v47 = vrot.slane (!%p504_p3), %v693_v31, %v701_v45  ;;  %vm1585_vm8 = vcmask (!%p504_p3), 519168  }
   0xe   : > { %s2449_s25 = smov (!%p590_p4, %s2096_s25), 1  ;;  %vm807_vm4 = vcmp.lt.s32.totalorder %v806_v56, 6 }
   0xf   : > { %s1825_s29 = sshll.u32 %s2449_s25, 2 }
  0x10   : > { %s593_s15 = scalar_lea.vmem %s2430_s0, %s1825_s29  ;;  %753 = vmatpush1.bf16.msra.mxu1 %v2040_v15 }
  0x11   : > { %v648_v0 = vld [vmem:[%s593_s15] sm:$0xf]  ;;  %754 = vmatprep.subr.bf16.mxu1 %v2041_v16  ;;  %s2110_s15 = smov 112  }
  0x12   : > { %v649_v1 = vunpack.c.l.bf16 %v648_v0 }
  0x14   : > { %651 = vst.msk [vmem:[#allocation2] sm:$0xff] %vm650_vm0, %v649_v1  ;;  %755 = vmatpush1.bf16.msra.mxu1 %v2043_v17 }
  0x15   : > { %1906 = vmatprep.subr.bf16.mxu1 %v2107_v34 }
  0x1b   : > { %v2213_v2 = vld [vmem:[#allocation2] sm:$0xff] }
  0x1c   : > { %v654_v3 = vsel %vm650_vm0, %v2213_v2, 0.0 }
  0x1d   : > { %655 = vadd.xlane.f32.xlu0 %v654_v3 }
  0xaa   : > { %v656_v4 = vpop.xlane.xlu0 %655 }
  0xab   : > { %v658_v5 = vmul.f32 0.015625, %v656_v4 }
  0xad   : > { %v659_v6 = vsub.f32 %v2213_v2, %v658_v5 }
  0xaf   : > { %v660_v7 = vmul.f32 %v659_v6, %v659_v6 }
  0xb1   : > { %v661_v8 = vsel %vm650_vm0, %v660_v7, 0.0 }
  0xb2   : > { %662 = vadd.xlane.f32.xlu0 %v661_v8 }
 0x13f   : > { %v663_v18 = vpop.xlane.xlu0 %662 }
 0x140   : > { %v664_v19 = vmul.f32 0.015625, %v663_v18 }
 0x142   : > { %v665_v20 = vadd.f32 1e-06, %v664_v19 }
 0x144   : > { %2060 = vrsqrt.f32 %v665_v20 }
 0x14e   : > { %v2061_v21 = vpop.eup %2060 }
 0x14f   : > { %v667_v23 = vmul.f32 %v2061_v21, %v659_v6 }
 0x151   : > { %v675_v25 = vmul.f32 %v1827_v22, %v667_v23 }
 0x153   : > { %v683_v26 = vadd.f32 %v1828_v24, %v675_v25 }
 0x155   : > { %v684_v27 = vpack.c.bf16 %v683_v26, %v683_v26 }
 0x157   : > { %1837 = vmatmul.mubr.msk.bf16.vlgmr.msra.gmra.mrb[0].mxu1 %vm650_vm0, %v684_v27 }
 0x158   : > { %1908 = vmatprep.mubr.msk.bf16.mxu1 %vm2108_vm1, %v2107_v34 }
 0x22a   : > { %v782_v33 = vpop.f32.mrb[0].mxu1 }
 0x22b   : > { %v783_v35 = vadd.f32 %v782_v33, %v698_v32  ;;  %v784_v36 = vpop.f32.mrb[1].mxu1 }
 0x22c   : > { %v786_v37 = vpop.f32.mrb[2].mxu1  ;;  %v785_v50 = vadd.f32 %v784_v36, %v702_v47 }
 0x22d   : > { %v789_v38 = vpack.c.bf16 %v783_v35, %v783_v35  ;;  %v787_v39 = vpop.f32.mrb[3].mxu1 }
 0x22e   : > { %v2272_v53 = vpack.c.bf16 %v785_v50, %v785_v50 }
 0x22f   : > { %796 = vrot.lane.b32.xlu0 %v789_v38, %s2109_s14  ;;  %792 = vrot.lane.b32.xlu1 %v789_v38, %s2110_s15 }
 0x230   : > { %v1065_v55 = vsel %vm1063_vm3, %v2272_v53, 0 }
 0x233   : > { %794 = vrot.lane.b32.xlu1 %v789_v38, %s2111_s16 }
 0x237   : > { %808 = vrot.lane.b32.xlu1 %v789_v38, %s2112_s17 }
 0x2a1   : > { %v793_v40 = vpop.permute.xlu1 %792  ;;  %v797_v42 = vpop.permute.xlu0 %796 }
 0x2a2   : > { %857 = vrot.lane.b32.xlu1 %v793_v40, %s2112_s17 }
 0x2a5   : > { %v795_v41 = vpop.permute.xlu1 %794 }
 0x2a6   : > { %905 = vrot.lane.b32.xlu1 %v795_v41, %s2112_s17 }
 0x2a9   : > { %v809_v43 = vpop.permute.xlu1 %808 }
 0x2aa   : > { %v815_v44 = vsel %vm810_vm2, %v809_v43, 0  ;;  %953 = vrot.lane.b32.xlu1 %v797_v42, %s2112_s17  ;;  %s642_s17 = scalar_lea.vmem %s2443_s13, %s1825_s29 }
 0x2ab   : > { %1907 = vmatpush3.bf16.xpose.msra.mxu1 %v815_v44 }
 0x2ac   : > { %1912 = vmatprep.subr.bf16.mxu1 %v2107_v34 }
 0x2b2   : > { %1909 = vmatmul.mubr.msk.bf16.vlgmr.msra.gmra.mrb[4].mxu1 %vm810_vm2, %v789_v38 }
 0x2b3   : > { %1914 = vmatprep.mubr.msk.bf16.mxu1 %vm2108_vm1, %v2107_v34 }
 0x314   : > { %v858_v46 = vpop.permute.xlu1 %857 }
 0x315   : > { %v863_v48 = vsel %vm810_vm2, %v858_v46, 0 }
 0x316   : > { %1913 = vmatpush3.bf16.xpose.msra.mxu1 %v863_v48 }
 0x317   : > { %1924 = vmatprep.subr.bf16.mxu1 %v2107_v34 }
 0x318   : > { %v906_v49 = vpop.permute.xlu1 %905 }
 0x319   : > { %v911_v51 = vsel %vm810_vm2, %v906_v49, 0 }
 0x31a   : > { %1919 = vmatpush3.bf16.xpose.msra.mxu0 %v911_v51 }
 0x31b   : > { %1930 = vmatprep.subr.bf16.mxu0 %v2107_v34 }
 0x31c   : > { %v954_v52 = vpop.permute.xlu1 %953 }
 0x31d   : > { %v959_v54 = vsel %vm810_vm2, %v954_v52, 0  ;;  %1915 = vmatmul.mubr.msk.bf16.vlgmr.msra.gmra.mrb[8].mxu1 %vm810_vm2, %v793_v40 }
 0x31e   : > { %1925 = vmatpush3.bf16.xpose.msra.mxu1 %v959_v54  ;;  %1926 = vmatprep.mubr.msk.bf16.mxu1 %vm2108_vm1, %v2107_v34 }
 0x31f   : > { %1936 = vmatprep.subr.bf16.mxu1 %v2107_v34 }
 0x321   : > { %1921 = vmatmul.mubr.msk.bf16.vlgmr.msra.gmra.mrb[0].mxu0 %vm810_vm2, %v795_v41 }
 0x322   : > { %1931 = vmatpush3.bf16.msra.mxu0 %v1065_v55  ;;  %1932 = vmatprep.mubr.msk.bf16.mxu0 %vm2108_vm1, %v2107_v34 }
 0x323   : > { %1942 = vmatprep.subr.bf16.mxu0 %v2107_v34 }
 0x325   : > { %1927 = vmatmul.mubr.msk.bf16.vlgmr.msra.gmra.mrb[12].mxu1 %vm810_vm2, %v797_v42 }
 0x326   : > { %1938 = vmatprep.mubr.msk.bf16.mxu1 %vm2108_vm1, %v2107_v34 }
 0x385   : > { %v851_v57 = vpop.f32.mrb[4].mxu1 }
 0x386   : > { %v1001_v58 = vmul.f32 0.25, %v851_v57  ;;  %v1910_v59 = vpop.f32.mrb[5].mxu1 }
 0x387   : > { %v854_v60 = vpop.f32.mrb[6].mxu1 }
 0x388   : > { %v1911_v61 = vpop.f32.mrb[7].mxu1  ;;  %v1007_v62 = vsel %vm807_vm4, %v1001_v58, -1e+30 }
 0x389   : > { %v1012_v63 = vsel %vm1011_vm5, %v1007_v62, -inf }
 0x38a   : > { %1013 = vmax.xlane.f32.xlu1 %v1012_v63 }
 0x3f0   : > { %v899_v0 = vpop.f32.mrb[8].mxu1 }
 0x3f1   : > { %v1002_v1 = vmul.f32 0.25, %v899_v0  ;;  %v1916_v3 = vpop.f32.mrb[9].mxu1 }
 0x3f2   : > { %v902_v4 = vpop.f32.mrb[10].mxu1 }
 0x3f3   : > { %v1917_v5 = vpop.f32.mrb[11].mxu1  ;;  %v1008_v6 = vsel %vm807_vm4, %v1002_v1, -1e+30  ;;  %v2044_v1 = vld [vmem:[%s2435_s5] sm:$0xff]  }
 0x3f4   : > { %v947_v7 = vpop.f32.mrb[0].mxu0  ;;  %v1015_v8 = vsel %vm1011_vm5, %v1008_v6, -inf }
 0x3f5   : > { %v1003_v9 = vmul.f32 0.25, %v947_v7  ;;  %1016 = vmax.xlane.f32.xlu0 %v1015_v8  ;;  %v1922_v10 = vpop.f32.mrb[1].mxu0  ;;  %v2045_v7 = vld [vmem:[%s2435_s5 + $0x8] sm:$0xff]   ;;  %v2046_v8 = vld [vmem:[%s2435_s5 + $0x10] sm:$0xff]  }
 0x3f6   : > { %v950_v11 = vpop.f32.mrb[2].mxu0 }
 0x3f7   : > { %v1923_v12 = vpop.f32.mrb[3].mxu0  ;;  %v1009_v13 = vsel %vm807_vm4, %v1003_v9, -1e+30  ;;  %v2047_v9 = vld [vmem:[%s2435_s5 + $0x18] sm:$0xff]  }
 0x3f8   : > { %v995_v14 = vpop.f32.mrb[12].mxu1  ;;  %v1018_v15 = vsel %vm1011_vm5, %v1009_v13, -inf }
 0x3f9   : > { %v1004_v16 = vmul.f32 0.25, %v995_v14  ;;  %1019 = vmax.xlane.f32.xlu1 %v1018_v15  ;;  %v1928_v17 = vpop.f32.mrb[13].mxu1 }
 0x3fa   : > { %v998_v18 = vpop.f32.mrb[14].mxu1 }
 0x3fb   : > { %v1929_v19 = vpop.f32.mrb[15].mxu1  ;;  %v1010_v20 = vsel %vm807_vm4, %v1004_v16, -1e+30 }
 0x3fc   : > { %v1021_v21 = vsel %vm1011_vm5, %v1010_v20, -inf }
 0x3fd   : > { %1022 = vmax.xlane.f32.xlu0 %v1021_v21 }
 0x40a   : > { %799 = vrot.lane.b32.xlu1 %v2272_v53, %s2110_s15  ;;  %s2114_s15 = smov 32  }
 0x417   : > { %v1014_v22 = vpop.xlane.xlu1 %1013 }
 0x418   : > { %v1024_v23 = vsub.f32 %v1007_v62, %v1014_v22 }
 0x41a   : > { %v1028_v24 = vmul.f32 1.442695, %v1024_v23 }
 0x41c   : > { %2062 = vpow2.f32 %v1028_v24 }
 0x426   : > { %v2063_v25 = vpop.eup %2062 }
 0x427   : > { %v1036_v26 = vsel %vm1011_vm5, %v2063_v25, 0.0 }
 0x42e   : > { %1037 = vadd.xlane.f32.xlu1 %v1036_v26 }
 0x482   : > { %v1017_v27 = vpop.xlane.xlu0 %1016 }
 0x483   : > { %v1025_v28 = vsub.f32 %v1008_v6, %v1017_v27 }
 0x485   : > { %v1030_v29 = vmul.f32 1.442695, %v1025_v28 }
 0x486   : > { %v1020_v30 = vpop.xlane.xlu1 %1019 }
 0x487   : > { %2064 = vpow2.f32 %v1030_v29  ;;  %v1026_v31 = vsub.f32 %v1009_v13, %v1020_v30  ;;  %v1846_v29 = vld [vmem:[%s2436_s6] ss:$0 sm:$0xff] }
 0x489   : > { %v1032_v32 = vmul.f32 1.442695, %v1026_v31 }
 0x48a   : > { %v1023_v33 = vpop.xlane.xlu0 %1022  ;;  %v800_v35 = vpop.permute.xlu1 %799 }
 0x48b   : > { %2066 = vpow2.f32 %v1032_v32  ;;  %v1027_v36 = vsub.f32 %v1010_v20, %v1023_v33  ;;  %v1111_v37 = vsel %vm1063_vm3, %v800_v35, 0 }
 0x48c   : > { %1937 = vmatpush3.bf16.msra.mxu1 %v1111_v37 }
 0x48d   : > { %v1034_v38 = vmul.f32 1.442695, %v1027_v36  ;;  %1948 = vmatprep.subr.bf16.mxu1 %v2107_v34 }
 0x48f   : > { %2068 = vpow2.f32 %v1034_v38 }
 0x491   : > { %v2065_v39 = vpop.eup %2064 }
 0x492   : > { %v1039_v40 = vsel %vm1011_vm5, %v2065_v39, 0.0 }
 0x493   : > { %1040 = vadd.xlane.f32.xlu0 %v1039_v40 }
 0x495   : > { %v2067_v41 = vpop.eup %2066 }
 0x496   : > { %v1042_v42 = vsel %vm1011_vm5, %v2067_v41, 0.0 }
 0x497   : > { %1043 = vadd.xlane.f32.xlu1 %v1042_v42 }
 0x499   : > { %v2069_v43 = vpop.eup %2068 }
 0x49a   : > { %v1045_v44 = vsel %vm1011_vm5, %v2069_v43, 0.0 }
 0x49b   : > { %1046 = vadd.xlane.f32.xlu0 %v1045_v44  ;;  %v2050_v44 = vld [vmem:[%s2439_s9 + $0x10] sm:$0xff]  }
 0x4a8   : > { %803 = vrot.lane.b32.xlu1 %v2272_v53, %s2109_s14  ;;  %s2113_s14 = smov 16  }
 0x4b1   : > { %801 = vrot.lane.b32.xlu0 %v2272_v53, %s2111_s16  ;;  %s2115_s16 = smov 48  }
 0x4bb   : > { %v1038_v45 = vpop.xlane.xlu1 %1037 }
 0x4bc   : > { %2070 = vrcp.f32 %v1038_v45  ;;  %v2051_v45 = vld [vmem:[%s2439_s9 + $0x18] sm:$0xff]  }
 0x4c6   : > { %v2071_v46 = vpop.eup %2070 }
 0x4c7   : > { %v1052_v47 = vmul.f32 %v2071_v46, %v2063_v25 }
 0x4c9   : > { %v1056_v48 = vpack.c.bf16 %v1052_v47, %v1052_v47 }
 0x4cb   : > { %1933 = vmatmul.mubr.msk.bf16.vlgmr.msra.gmra.mrb[4].mxu0 %vm1011_vm5, %v1056_v48 }
 0x4cc   : > { %1944 = vmatprep.mubr.msk.bf16.mxu0 %vm2108_vm1, %v2107_v34 }
 0x520   : > { %v1041_v49 = vpop.xlane.xlu0 %1040 }
 0x521   : > { %2072 = vrcp.f32 %v1041_v49 }
 0x524   : > { %v1044_v50 = vpop.xlane.xlu1 %1043 }
 0x525   : > { %2074 = vrcp.f32 %v1044_v50  ;;  %v1852_v50 = vld [vmem:[%s2437_s7] ss:$0 sm:$0xff] }
 0x528   : > { %v1047_v51 = vpop.xlane.xlu0 %1046  ;;  %v804_v53 = vpop.permute.xlu1 %803 }
 0x529   : > { %2076 = vrcp.f32 %v1047_v51  ;;  %v1203_v60 = vsel %vm1063_vm3, %v804_v53, 0 }
 0x52b   : > { %v2073_v52 = vpop.eup %2072 }
 0x52c   : > { %v1053_v54 = vmul.f32 %v2073_v52, %v2065_v39  ;;  %v802_v55 = vpop.permute.xlu0 %801  ;;  %v1853_v52 = vld [vmem:[%s2438_s8] ss:$0 sm:$0xff] }
 0x52d   : > { %v1157_v56 = vsel %vm1063_vm3, %v802_v55, 0 }
 0x52e   : > { %1943 = vmatpush3.bf16.msra.mxu0 %v1157_v56  ;;  %v1057_v57 = vpack.c.bf16 %v1053_v54, %v1053_v54  ;;  %v2052_v56 = vld [vmem:[%s2441_s11] sm:$0xff]  }
 0x52f   : > { %v2075_v58 = vpop.eup %2074  ;;  %1954 = vmatprep.subr.bf16.mxu0 %v2107_v34 }
 0x530   : > { %v1054_v59 = vmul.f32 %v2075_v58, %v2067_v41  ;;  %1939 = vmatmul.mubr.msk.bf16.vlgmr.msra.gmra.mrb[16].mxu1 %vm1011_vm5, %v1057_v57  ;;  %v2053_v57 = vld [vmem:[%s2441_s11 + $0x8] sm:$0xff]   ;;  %v2054_v58 = vld [vmem:[%s2441_s11 + $0x10] sm:$0xff]  }
 0x531   : > { %1949 = vmatpush3.bf16.msra.mxu1 %v1203_v60  ;;  %1950 = vmatprep.mubr.msk.bf16.mxu1 %vm2108_vm1, %v2107_v34  ;;  %v2056_v60 = vld [vmem:[%s2441_s11 + $0x20] sm:$0xff]  }
 0x532   : > { %v1058_v61 = vpack.c.bf16 %v1054_v59, %v1054_v59  ;;  %1966 = vmatprep.subr.bf16.mxu1 %v2107_v34  ;;  %v2055_v59 = vld [vmem:[%s2441_s11 + $0x18] sm:$0xff]  }
 0x533   : > { %v2077_v62 = vpop.eup %2076 }
 0x534   : > { %v1055_v63 = vmul.f32 %v2077_v62, %v2069_v43  ;;  %1945 = vmatmul.mubr.msk.bf16.vlgmr.msra.gmra.mrb[8].mxu0 %vm1011_vm5, %v1058_v61  ;;  %v2048_v43 = vld [vmem:[%s2439_s9] sm:$0xff]   ;;  %v2057_v61 = vld [vmem:[%s2441_s11 + $0x28] sm:$0xff]   ;;  %v2058_v62 = vld [vmem:[%s2441_s11 + $0x30] sm:$0xff]  }
 0x535   : > { %1962 = vmatprep.mubr.msk.bf16.mxu0 %vm2108_vm1, %v2107_v34  ;;  %1955 = vmatpush3.bf16.msra.mxu0 %v2044_v1 }
 0x536   : > { %v1059_v0 = vpack.c.bf16 %v1055_v63, %v1055_v63  ;;  %1956 = vmatprep.subr.bf16.mxu0 %v2107_v34  ;;  %v2059_v63 = vld [vmem:[%s2441_s11 + $0x38] sm:$0xff]  }
 0x538   : > { %1951 = vmatmul.mubr.msk.bf16.vlgmr.msra.gmra.mrb[20].mxu1 %vm1011_vm5, %v1059_v0  ;;  %v1854_v0 = vld [vmem:[%s2440_s10] ss:$0 sm:$0xff] }
 0x539   : > { %1974 = vmatprep.mubr.msk.bf16.mxu1 %vm2108_vm1, %v2107_v34  ;;  %1957 = vmatpush3.bf16.msra.mxu0 %v2045_v7 }
 0x53a   : > { %1958 = vmatprep.subr.bf16.mxu0 %v2107_v34  ;;  %1967 = vmatpush3.bf16.msra.mxu1 %v2048_v43 }
 0x53b   : > { %1968 = vmatprep.subr.bf16.mxu1 %v2107_v34 }
 0x53d   : > { %1959 = vmatpush3.bf16.msra.mxu0 %v2046_v8 }
 0x53e   : > { %1960 = vmatprep.subr.bf16.mxu0 %v2107_v34 }
 0x541   : > { %1961 = vmatpush3.bf16.msra.mxu0 %v2047_v9 }
 0x542   : > { %1978 = vmatprep.subr.bf16.mxu0 %v2107_v34 }
 0x59e   : > { %v1101_v3 = vpop.f32.mrb[4].mxu0 }
 0x59f   : > { %v1934_v4 = vpop.f32.mrb[5].mxu0 }
 0x5a0   : > { %v1104_v5 = vpop.f32.mrb[6].mxu0 }
 0x5a1   : > { %v1935_v6 = vpop.f32.mrb[7].mxu0 }
 0x603   : > { %v1147_v10 = vpop.f32.mrb[16].mxu1 }
 0x604   : > { %1246 = vrot.lane.b32.xlu1 %v1147_v10, %s2113_s14  ;;  %v1940_v11 = vpop.f32.mrb[17].mxu1 }
 0x605   : > { %v1150_v12 = vpop.f32.mrb[18].mxu1 }
 0x606   : > { %v1941_v13 = vpop.f32.mrb[19].mxu1 }
 0x607   : > { %v1193_v14 = vpop.f32.mrb[8].mxu0 }
 0x608   : > { %1250 = vrot.lane.b32.xlu0 %v1193_v14, %s2114_s15  ;;  %v1946_v15 = vpop.f32.mrb[9].mxu0 }
 0x609   : > { %v1196_v16 = vpop.f32.mrb[10].mxu0 }
 0x60a   : > { %v1947_v17 = vpop.f32.mrb[11].mxu0  ;;  %v1860_v16 = vld [vmem:[%s2442_s12] ss:$0 sm:$0xff] }
 0x60b   : > { %v1239_v18 = vpop.f32.mrb[20].mxu1 }
 0x60c   : > { %1254 = vrot.lane.b32.xlu1 %v1239_v18, %s2115_s16  ;;  %v1952_v19 = vpop.f32.mrb[21].mxu1 }
 0x60d   : > { %v1242_v20 = vpop.f32.mrb[22].mxu1 }
 0x60e   : > { %v1953_v21 = vpop.f32.mrb[23].mxu1 }
 0x676   : > { %v1247_v22 = vpop.permute.xlu1 %1246 }
 0x677   : > { %v1257_v24 = vsel %vm810_vm2, %v1101_v3, %v1247_v22 }
 0x67a   : > { %v1251_v23 = vpop.permute.xlu0 %1250 }
 0x67b   : > { %v1259_v25 = vsel %vm1258_vm6, %v1257_v24, %v1251_v23 }
 0x67e   : > { %v1255_v26 = vpop.permute.xlu1 %1254 }
 0x67f   : > { %v1261_v27 = vsel %vm1260_vm7, %v1259_v25, %v1255_v26 }
 0x680   : > { %v1262_v28 = vpack.c.bf16 %v1261_v27, %v1261_v27 }
 0x682   : > { %1963 = vmatmul.mubr.msk.bf16.vlgmr.msra.gmra.mrb[12].mxu0 %vm650_vm0, %v1262_v28 }
 0x683   : > { %1994 = vmatprep.mubr.msk.bf16.mxu0 %vm2108_vm1, %v2107_v34  ;;  %1979 = vmatpush3.bf16.msra.mxu0 %v2052_v56 }
 0x684   : > { %1980 = vmatprep.subr.bf16.mxu0 %v2107_v34 }
 0x687   : > { %1981 = vmatpush3.bf16.msra.mxu0 %v2053_v57 }
 0x688   : > { %1982 = vmatprep.subr.bf16.mxu0 %v2107_v34 }
 0x68b   : > { %1983 = vmatpush3.bf16.msra.mxu0 %v2054_v58 }
 0x68c   : > { %1984 = vmatprep.subr.bf16.mxu0 %v2107_v34 }
 0x68f   : > { %1985 = vmatpush3.bf16.msra.mxu0 %v2055_v59 }
 0x690   : > { %1986 = vmatprep.subr.bf16.mxu0 %v2107_v34 }
 0x693   : > { %1987 = vmatpush3.bf16.msra.mxu0 %v2056_v60 }
 0x694   : > { %1988 = vmatprep.subr.bf16.mxu0 %v2107_v34 }
 0x697   : > { %1989 = vmatpush3.bf16.msra.mxu0 %v2057_v61 }
 0x698   : > { %1990 = vmatprep.subr.bf16.mxu0 %v2107_v34 }
 0x69b   : > { %1991 = vmatpush3.bf16.msra.mxu0 %v2058_v62 }
 0x69c   : > { %1992 = vmatprep.subr.bf16.mxu0 %v2107_v34 }
 0x69f   : > { %1993 = vmatpush3.bf16.msra.mxu0 %v2059_v63 }
 0x755   : > { %v1339_v30 = vpop.f32.mrb[12].mxu0 }
 0x756   : > { %v1340_v31 = vadd.f32 %v1846_v29, %v1339_v30  ;;  %v1964_v32 = vpop.f32.mrb[13].mxu0 }
 0x757   : > { %v1342_v33 = vpop.f32.mrb[14].mxu0 }
 0x758   : > { %v2349_v35 = vadd.f32 %v1340_v31, %v2213_v2  ;;  %v1965_v36 = vpop.f32.mrb[15].mxu0  ;;  %v2049_v2 = vld [vmem:[%s2439_s9 + $0x8] sm:$0xff]  }
 0x759   : > { %1969 = vmatpush3.bf16.msra.mxu1 %v2049_v2 }
 0x75a   : > { %v1346_v37 = vsel %vm650_vm0, %v2349_v35, 0.0  ;;  %1970 = vmatprep.subr.bf16.mxu1 %v2107_v34 }
 0x75b   : > { %1347 = vadd.xlane.f32.xlu0 %v1346_v37 }
 0x75d   : > { %1971 = vmatpush3.bf16.msra.mxu1 %v2050_v44 }
 0x75e   : > { %1972 = vmatprep.subr.bf16.mxu1 %v2107_v34 }
 0x761   : > { %1973 = vmatpush3.bf16.msra.mxu1 %v2051_v45 }
 0x7e8   : > { %v1348_v38 = vpop.xlane.xlu0 %1347 }
 0x7e9   : > { %v1349_v39 = vmul.f32 0.015625, %v1348_v38 }
 0x7eb   : > { %v1350_v40 = vsub.f32 %v2349_v35, %v1349_v39 }
 0x7ed   : > { %v1351_v41 = vmul.f32 %v1350_v40, %v1350_v40 }
 0x7ef   : > { %v1352_v42 = vsel %vm650_vm0, %v1351_v41, 0.0 }
 0x7f0   : > { %1353 = vadd.xlane.f32.xlu1 %v1352_v42 }
 0x87d   : > { %v1354_v46 = vpop.xlane.xlu1 %1353 }
 0x87e   : > { %v1355_v47 = vmul.f32 0.015625, %v1354_v46 }
 0x880   : > { %v1356_v48 = vadd.f32 1e-06, %v1355_v47 }
 0x882   : > { %2078 = vrsqrt.f32 %v1356_v48 }
 0x88c   : > { %v2079_v49 = vpop.eup %2078 }
 0x88d   : > { %v1358_v51 = vmul.f32 %v2079_v49, %v1350_v40 }
 0x88f   : > { %v1366_v54 = vmul.f32 %v1852_v50, %v1358_v51 }
 0x891   : > { %v1374_v55 = vadd.f32 %v1853_v52, %v1366_v54 }
 0x893   : > { %v1375_v53 = vpack.c.bf16 %v1374_v55, %v1374_v55 }
 0x895   : > { %1975 = vmatmul.mubr.msk.bf16.vlgmr.msra.gmra.mrb[24].mxu1 %vm650_vm0, %v1375_v53 }
 0x968   : > { %v1452_v1 = vpop.f32.mrb[24].mxu1 }
 0x969   : > { %v1453_v3 = vadd.f32 %v1854_v0, %v1452_v1  ;;  %v1976_v4 = vpop.f32.mrb[25].mxu1 }
 0x96a   : > { %v1455_v5 = vpop.f32.mrb[26].mxu1 }
 0x96b   : > { %v1458_v6 = vmul.f32 %v1453_v3, %v1453_v3  ;;  %v1977_v7 = vpop.f32.mrb[27].mxu1 }
 0x96d   : > { %v1459_v8 = vmul.f32 %v1458_v6, %v1453_v3 }
 0x96f   : > { %v1460_v9 = vmul.f32 0.044715, %v1459_v8 }
 0x971   : > { %v1461_v10 = vadd.f32 %v1460_v9, %v1453_v3 }
 0x973   : > { %v1462_v11 = vmul.f32 0.7978846, %v1461_v10 }
 0x975   : > { %2080 = vtanh.f32 %v1462_v11 }
 0x97f   : > { %v2081_v12 = vpop.eup %2080 }
 0x980   : > { %v1464_v13 = vadd.f32 1.0, %v2081_v12 }
 0x982   : > { %v1465_v34 = vmul.f32 0.5, %v1464_v13 }
 0x984   : > { %v1466_v14 = vmul.f32 %v1465_v34, %v1453_v3 }
 0x986   : > { %v1467_v15 = vpack.c.bf16 %v1466_v14, %v1466_v14 }
 0x988   : > { %1995 = vmatmul.mubr.bf16.vlgmr.msra.gmra.mrb[16].mxu0 %v1467_v15 }
 0xa5b   : > { %v1573_v17 = vpop.f32.mrb[16].mxu0 }
 0xa5c   : > { %v1574_v18 = vadd.f32 %v1860_v16, %v1573_v17  ;;  %v1996_v19 = vpop.f32.mrb[17].mxu0 }
 0xa5d   : > { %v1576_v20 = vpop.f32.mrb[18].mxu0 }
 0xa5e   : > { %v1579_v21 = vadd.f32 %v1574_v18, %v2349_v35  ;;  %v1997_v22 = vpop.f32.mrb[19].mxu0 }
 0xa60   : > { %1580 = vst.msk [vmem:[#allocation2] sm:$0xff] %vm650_vm0, %v1579_v21  ;;  %v1584_v23 = vpack.c.bf16 %v1579_v21, %v1579_v21 }
 0xa62   : > { %1586 = vst.msk [vmem:[%s642_s17] sm:$0xf] %vm1585_vm8, %v1584_v23 }
 0xa63 PF: > { %s23_s27 = sadd.s32 1, %s2104_s27   ;;  %s2444_s25 = smov %s2100_s26 }
 0xa64   : > { %p20_p5 = scmp.ge.s32.totalorder %s23_s27, 4   ;;  %s2445_s26 = smov %s2447_s28 }
 0xa66   :  { %22 = sbr.rel (!%p20_p5) target bundleno = 2 (0x2), region = 146 }

</bundles_post_ra>
